<compile_context>
chip_gen: v6e
topology: v6e:2x2x1
jax: 0.10.0
libtpu: 0.0.40
codegen_flags: <defaults>
</compile_context>

<pallas_src>
import jax
import jax.numpy as jnp
from jax import lax
from jax.experimental import pallas as pl
from jax.experimental.pallas import tpu as pltpu

_EPS = 1e-5     # nn.InstanceNorm2d default eps
_SLOPE = 0.2    # LeakyReLU negative slope


def _lrelu(x):
    return jnp.where(x >= 0, x, _SLOPE * x)


# --------------------------------------------------------------------------
# Fused kernel: whole Discriminator2 forward for one image per grid step.
# --------------------------------------------------------------------------
def _disc2_kernel(y1_ref, w1_ref, b1_ref, w2_ref, b2_ref, w3_ref, b3_ref,
                  ceff_ref, b4_ref, o_ref, a1_ref, a2_ref):
    """Refs:
    y1_ref   : (H1+1, W1+1, 4*Cin)  space-to-depth packed, zero-padded image
    w1_ref   : (4, 4*Cin, C1)       block1 weight, tap index 2*dh+dw
    w2_ref   : (16, C1, C2)         block2 weight, tap index kh*4+kw
    w3_ref   : (16, C2, C3)         block3 weight, tap index kh*4+kw
    b*_ref   : (1, C*)              biases
    ceff_ref : (H3*W3, C3)          final conv + global-mean folded coeffs
    b4_ref   : (1, 1)
    o_ref    : (1, 1)               per-image scalar output
    a1_ref   : (H1+2, W1+2, C1)     VMEM scratch: padded block1 activations
    a2_ref   : (H2+2, W2+2, C2)     VMEM scratch: padded block2 activations
    """
    H1, W1, C1 = a1_ref.shape[0] - 2, a1_ref.shape[1] - 2, a1_ref.shape[2]
    H2, W2, C2 = a2_ref.shape[0] - 2, a2_ref.shape[1] - 2, a2_ref.shape[2]
    H3, W3 = H2 // 2, W2 // 2
    C3 = ceff_ref.shape[1]

    # Padded scratches: border must be zero on every grid step (scratch
    # persists across iterations and the batch axis may be core-split).
    a1_ref[...] = jnp.zeros(a1_ref.shape, jnp.float32)
    a2_ref[...] = jnp.zeros(a2_ref.shape, jnp.float32)

    # ---- block1: Conv2d(Cin->C1, k4 s2 p1) + LeakyReLU ---------------------
    # 4 whole-image matmuls over the space-to-depth packed input.
    acc1 = jnp.zeros((H1 * W1, C1), jnp.float32)
    for dh in range(2):
        for dw in range(2):
            tap = y1_ref[pl.ds(dh, H1), pl.ds(dw, W1), :]        # (H1, W1, 4Cin)
            acc1 = acc1 + jnp.dot(tap.reshape(H1 * W1, tap.shape[-1]),
                                  w1_ref[2 * dh + dw],
                                  preferred_element_type=jnp.float32)
    acc1 = _lrelu(acc1 + b1_ref[...])
    a1_ref[pl.ds(1, H1), pl.ds(1, W1), :] = acc1.reshape(H1, W1, C1)

    # ---- block2: Conv2d(C1->C2, k4 s2 p1) + InstanceNorm + LeakyReLU -------
    # 16 whole-image matmuls; taps are stride-2 windows of the padded scratch.
    acc2 = jnp.zeros((H2 * W2, C2), jnp.float32)
    for kh in range(4):
        for kw in range(4):
            tap = a1_ref[pl.ds(kh, H2, 2), pl.ds(kw, W2, 2), :]  # (H2, W2, C1)
            acc2 = acc2 + jnp.dot(tap.reshape(H2 * W2, C1),
                                  w2_ref[kh * 4 + kw],
                                  preferred_element_type=jnp.float32)
    acc2 = acc2 + b2_ref[...]
    mu2 = jnp.mean(acc2, axis=0, keepdims=True)
    xc2 = acc2 - mu2
    var2 = jnp.mean(xc2 * xc2, axis=0, keepdims=True)
    acc2 = _lrelu(xc2 * lax.rsqrt(var2 + _EPS))
    a2_ref[pl.ds(1, H2), pl.ds(1, W2), :] = acc2.reshape(H2, W2, C2)

    # ---- block3: Conv2d(C2->C3, k4 s2 p1) + InstanceNorm + LeakyReLU -------
    # Same strided-window decomposition as block2 (Slice-only ref indexing).
    acc3 = jnp.zeros((H3 * W3, C3), jnp.float32)
    for kh in range(4):
        for kw in range(4):
            tap = a2_ref[pl.ds(kh, H3, 2), pl.ds(kw, W3, 2), :]  # (H3, W3, C2)
            acc3 = acc3 + jnp.dot(tap.reshape(H3 * W3, C2),
                                  w3_ref[kh * 4 + kw],
                                  preferred_element_type=jnp.float32)
    acc3 = acc3 + b3_ref[...]
    mu3 = jnp.mean(acc3, axis=0, keepdims=True)
    xc3 = acc3 - mu3
    var3 = jnp.mean(xc3 * xc3, axis=0, keepdims=True)
    act3 = _lrelu(xc3 * lax.rsqrt(var3 + _EPS))

    # ---- final Conv2d(C3->1, k4 s1 p1) + global mean (folded into ceff) ----
    part = jnp.sum(act3 * ceff_ref[...], axis=1, keepdims=True)   # (H3*W3, 1)
    o_ref[...] = jnp.sum(part, axis=0, keepdims=True) + b4_ref[...]


# --------------------------------------------------------------------------
# JAX-side layout glue + pallas_call plumbing
# --------------------------------------------------------------------------
def _space_to_depth_pad(x):
    # (B, H, W, C) -> (B, H//2 + 1, W//2 + 1, 4*C): pad by 1, pack 2x2 blocks.
    B, H, W, C = x.shape
    xp = jnp.pad(x, ((0, 0), (1, 1), (1, 1), (0, 0)))
    Hp, Wp = H + 2, W + 2
    y = xp.reshape(B, Hp // 2, 2, Wp // 2, 2, C).transpose(0, 1, 3, 2, 4, 5)
    return y.reshape(B, Hp // 2, Wp // 2, 4 * C)


def _rearrange_weight_s2(w):
    # HWIO (4, 4, Cin, Cout) -> (4, 4*Cin, Cout); tap index 2*dh+dw, channel
    # packing (r, s, ci) matching _space_to_depth_pad.
    Cin, Cout = w.shape[2], w.shape[3]
    w6 = w.reshape(2, 2, 2, 2, Cin, Cout).transpose(0, 2, 1, 3, 4, 5)
    return w6.reshape(4, 4 * Cin, Cout)


def _final_coeff(w4, H3, W3):
    # Fold Conv2d(C3->1, k=4, s=1, p=1) followed by a global average pool over
    # its (H3-1, W3-1) output into one coefficient per block3 output pixel.
    w = w4[..., 0]                                  # (4, 4, C3)
    Hf, Wf = H3 - 1, W3 - 1
    rows = []
    for h in range(H3):
        cols = []
        for v in range(W3):
            kh0, kh1 = max(0, h + 2 - Hf), min(3, h + 1)
            kw0, kw1 = max(0, v + 2 - Wf), min(3, v + 1)
            cols.append(jnp.sum(w[kh0:kh1 + 1, kw0:kw1 + 1, :], axis=(0, 1)))
        rows.append(jnp.stack(cols, axis=0))
    return jnp.stack(rows, axis=0) / float(Hf * Wf)  # (H3, W3, C3)


def discriminator2_forward(img_nchw, params):
    # img_nchw: (B, 3, H, W) exactly like the PyTorch module; returns (B, 1).
    x = jnp.transpose(img_nchw, (0, 2, 3, 1)).astype(jnp.float32)
    B, H, W, Cin = x.shape
    H1, W1 = H // 2, W // 2
    H2, W2 = H1 // 2, W1 // 2
    H3, W3 = H2 // 2, W2 // 2
    C1 = params["w1"].shape[-1]
    C2 = params["w2"].shape[-1]
    C3 = params["w3"].shape[-1]

    y1 = _space_to_depth_pad(x)                                   # (B,H1+1,W1+1,4Cin)
    w1p = _rearrange_weight_s2(params["w1"]).astype(jnp.float32)  # (4, 4Cin, C1)
    w2p = params["w2"].reshape(16, C1, C2).astype(jnp.float32)
    w3p = params["w3"].reshape(16, C2, C3).astype(jnp.float32)
    ceff = _final_coeff(params["w4"].astype(jnp.float32), H3, W3)
    ceff = ceff.reshape(H3 * W3, C3)                              # (16, C3)
    b1 = params["b1"].reshape(1, C1).astype(jnp.float32)
    b2 = params["b2"].reshape(1, C2).astype(jnp.float32)
    b3 = params["b3"].reshape(1, C3).astype(jnp.float32)
    b4 = params["b4"].reshape(1, 1).astype(jnp.float32)

    out = pl.pallas_call(
        _disc2_kernel,
        out_shape=jax.ShapeDtypeStruct((B, 1, 1), jnp.float32),
        grid=(B,),
        in_specs=[
            pl.BlockSpec((None, H1 + 1, W1 + 1, 4 * Cin), lambda i: (i, 0, 0, 0)),
            pl.BlockSpec((4, 4 * Cin, C1), lambda i: (0, 0, 0)),
            pl.BlockSpec((1, C1), lambda i: (0, 0)),
            pl.BlockSpec((16, C1, C2), lambda i: (0, 0, 0)),
            pl.BlockSpec((1, C2), lambda i: (0, 0)),
            pl.BlockSpec((16, C2, C3), lambda i: (0, 0, 0)),
            pl.BlockSpec((1, C3), lambda i: (0, 0)),
            pl.BlockSpec((H3 * W3, C3), lambda i: (0, 0)),
            pl.BlockSpec((1, 1), lambda i: (0, 0)),
        ],
        out_specs=pl.BlockSpec((None, 1, 1), lambda i: (i, 0, 0)),
        scratch_shapes=[
            pltpu.VMEM((H1 + 2, W1 + 2, C1), jnp.float32),
            pltpu.VMEM((H2 + 2, W2 + 2, C2), jnp.float32),
        ],
        compiler_params=pltpu.CompilerParams(
            dimension_semantics=("parallel",)),
    )(y1, w1p, b1, w2p, b2, w3p, b3, ceff, b4)
    return out.reshape(B, 1)


# --------------------------------------------------------------------------
# Pure-JAX reference (for correctness check)
# --------------------------------------------------------------------------
def _reference_forward(img_nchw, params):
    x = jnp.transpose(img_nchw, (0, 2, 3, 1)).astype(jnp.float32)

    def conv(x, w, b, stride, pad):
        y = lax.conv_general_dilated(
            x, w, window_strides=(stride, stride),
            padding=[(pad, pad), (pad, pad)],
            dimension_numbers=("NHWC", "HWIO", "NHWC"))
        return y + b.reshape(1, 1, 1, -1)

    def inorm(x):
        mu = jnp.mean(x, axis=(1, 2), keepdims=True)
        var = jnp.var(x, axis=(1, 2), keepdims=True)
        return (x - mu) / jnp.sqrt(var + _EPS)

    x = _lrelu(conv(x, params["w1"], params["b1"], 2, 1))
    x = _lrelu(inorm(conv(x, params["w2"], params["b2"], 2, 1)))
    x = _lrelu(inorm(conv(x, params["w3"], params["b3"], 2, 1)))
    x = conv(x, params["w4"], params["b4"], 1, 1)
    return jnp.mean(x, axis=(1, 2)).reshape(x.shape[0], -1)


# --------------------------------------------------------------------------
# Main
# --------------------------------------------------------------------------
if __name__ == "__main__":
    B, C_IN, H, W = 2, 3, 32, 32
    NGF = 32

    key = jax.random.PRNGKey(0)
    keys = jax.random.split(key, 9)
    img = jax.random.normal(keys[0], (B, C_IN, H, W), jnp.float32)

    def init_conv(kw, kb, cin, cout, k=4):
        w = 0.05 * jax.random.normal(kw, (k, k, cin, cout), jnp.float32)  # HWIO
        b = 0.01 * jax.random.normal(kb, (cout,), jnp.float32)
        return w, b

    w1, b1 = init_conv(keys[1], keys[2], C_IN, NGF)
    w2, b2 = init_conv(keys[3], keys[4], NGF, 2 * NGF)
    w3, b3 = init_conv(keys[5], keys[6], 2 * NGF, 4 * NGF)
    w4, b4 = init_conv(keys[7], keys[8], 4 * NGF, 1)
    params = dict(w1=w1, b1=b1, w2=w2, b2=b2, w3=w3, b3=b3, w4=w4, b4=b4)

    out = jax.block_until_ready(discriminator2_forward(img, params))
    assert out.shape == (B, 1), out.shape

    ref = jax.block_until_ready(_reference_forward(img, params))
    if not bool(jnp.allclose(out, ref, rtol=1e-2, atol=1e-3)):
        raise AssertionError(f"mismatch: pallas={out} ref={ref}")

    print("KERNEL_OK")
</pallas_src>

<mosaic_0001>
module attributes {stable_mosaic.version = 11 : i64} {
  func.func @_disc2_kernel(%arg0: i32, %arg1: memref<1x17x17x12xf32, #tpu.memory_space<vmem>>, %arg2: memref<4x12x32xf32, #tpu.memory_space<vmem>>, %arg3: memref<1x32xf32, #tpu.memory_space<vmem>>, %arg4: memref<16x32x64xf32, #tpu.memory_space<vmem>>, %arg5: memref<1x64xf32, #tpu.memory_space<vmem>>, %arg6: memref<16x64x128xf32, #tpu.memory_space<vmem>>, %arg7: memref<1x128xf32, #tpu.memory_space<vmem>>, %arg8: memref<16x128xf32, #tpu.memory_space<vmem>>, %arg9: memref<1x1xf32, #tpu.memory_space<vmem>>, %arg10: memref<1x1x1xf32, #tpu.memory_space<vmem>>, %arg11: memref<18x18x32xf32, #tpu.memory_space<vmem>>, %arg12: memref<10x10x64xf32, #tpu.memory_space<vmem>>) attributes {dimension_semantics = [#tpu.dimension_semantics<parallel>], iteration_bounds = array<i64: 2>, scalar_prefetch = 0 : i64, scratch_operands = 2 : i64, tpu.core_type = #tpu.core_type<tc>, window_params = [{transform_indices = @transform_0, window_bounds = array<i64: 1, 17, 17, 12>}, {pipeline_mode = #tpu.pipeline_mode<synchronous>, transform_indices = @transform_1, window_bounds = array<i64: 4, 12, 32>}, {pipeline_mode = #tpu.pipeline_mode<synchronous>, transform_indices = @transform_2, window_bounds = array<i64: 1, 32>}, {pipeline_mode = #tpu.pipeline_mode<synchronous>, transform_indices = @transform_3, window_bounds = array<i64: 16, 32, 64>}, {pipeline_mode = #tpu.pipeline_mode<synchronous>, transform_indices = @transform_4, window_bounds = array<i64: 1, 64>}, {pipeline_mode = #tpu.pipeline_mode<synchronous>, transform_indices = @transform_5, window_bounds = array<i64: 16, 64, 128>}, {pipeline_mode = #tpu.pipeline_mode<synchronous>, transform_indices = @transform_6, window_bounds = array<i64: 1, 128>}, {pipeline_mode = #tpu.pipeline_mode<synchronous>, transform_indices = @transform_7, window_bounds = array<i64: 16, 128>}, {pipeline_mode = #tpu.pipeline_mode<synchronous>, transform_indices = @transform_8, window_bounds = array<i64: 1, 1>}, {transform_indices = @transform_9, window_bounds = array<i64: 1, 1, 1>}]} {
    %cst = arith.constant 0.000000e+00 : f32
    %0 = vector.broadcast %cst : f32 to vector<18x18x32xf32>
    %c0 = arith.constant 0 : index
    %c0_0 = arith.constant 0 : index
    %c0_1 = arith.constant 0 : index
    %1 = vector.load %arg11[%c0, %c0_0, %c0_1] : memref<18x18x32xf32, #tpu.memory_space<vmem>>, vector<18x18x32xf32>
    tpu.vector_store %arg11[%c0, %c0_0, %c0_1], %0 {strides = array<i32>} : memref<18x18x32xf32, #tpu.memory_space<vmem>>, vector<18x18x32xf32>,
    %cst_2 = arith.constant 0.000000e+00 : f32
    %2 = vector.broadcast %cst_2 : f32 to vector<10x10x64xf32>
    %c0_3 = arith.constant 0 : index
    %c0_4 = arith.constant 0 : index
    %c0_5 = arith.constant 0 : index
    %3 = vector.load %arg12[%c0_3, %c0_4, %c0_5] : memref<10x10x64xf32, #tpu.memory_space<vmem>>, vector<10x10x64xf32>
    tpu.vector_store %arg12[%c0_3, %c0_4, %c0_5], %2 {strides = array<i32>} : memref<10x10x64xf32, #tpu.memory_space<vmem>>, vector<10x10x64xf32>,
    %cst_6 = arith.constant 0.000000e+00 : f32
    %4 = vector.broadcast %cst_6 : f32 to vector<256x32xf32>
    %c0_7 = arith.constant 0 : index
    %c0_8 = arith.constant 0 : index
    %c0_9 = arith.constant 0 : index
    %c0_10 = arith.constant 0 : index
    %5 = vector.load %arg1[%c0_7, %c0_8, %c0_9, %c0_10] : memref<1x17x17x12xf32, #tpu.memory_space<vmem>>, vector<1x16x16x12xf32>
    %6 = vector.shape_cast %5 : vector<1x16x16x12xf32> to vector<16x16x12xf32>
    %7 = vector.shape_cast %6 : vector<16x16x12xf32> to vector<256x12xf32>
    %c0_11 = arith.constant 0 : index
    %c0_12 = arith.constant 0 : index
    %c0_13 = arith.constant 0 : index
    %8 = vector.load %arg2[%c0_11, %c0_12, %c0_13] : memref<4x12x32xf32, #tpu.memory_space<vmem>>, vector<1x12x32xf32>
    %9 = vector.shape_cast %8 : vector<1x12x32xf32> to vector<12x32xf32>
    %cst_14 = arith.constant dense<0.000000e+00> : vector<256x32xf32>
    %10 = tpu.matmul %7, %9, %cst_14 {dimension_numbers = #tpu.dot_dimension_numbers<[1], [0], [0], [1], [0, 0, 1, 1], [], []>} : vector<256x12xf32>, vector<12x32xf32>, vector<256x32xf32> -> vector<256x32xf32>
    %11 = arith.addf %4, %10 : vector<256x32xf32>
    %c0_15 = arith.constant 0 : index
    %c0_16 = arith.constant 0 : index
    %c1 = arith.constant 1 : index
    %c0_17 = arith.constant 0 : index
    %12 = vector.load %arg1[%c0_15, %c0_16, %c1, %c0_17] : memref<1x17x17x12xf32, #tpu.memory_space<vmem>>, vector<1x16x16x12xf32>
    %13 = vector.shape_cast %12 : vector<1x16x16x12xf32> to vector<16x16x12xf32>
    %14 = vector.shape_cast %13 : vector<16x16x12xf32> to vector<256x12xf32>
    %c1_18 = arith.constant 1 : index
    %c0_19 = arith.constant 0 : index
    %c0_20 = arith.constant 0 : index
    %15 = vector.load %arg2[%c1_18, %c0_19, %c0_20] : memref<4x12x32xf32, #tpu.memory_space<vmem>>, vector<1x12x32xf32>
    %16 = vector.shape_cast %15 : vector<1x12x32xf32> to vector<12x32xf32>
    %cst_21 = arith.constant dense<0.000000e+00> : vector<256x32xf32>
    %17 = tpu.matmul %14, %16, %cst_21 {dimension_numbers = #tpu.dot_dimension_numbers<[1], [0], [0], [1], [0, 0, 1, 1], [], []>} : vector<256x12xf32>, vector<12x32xf32>, vector<256x32xf32> -> vector<256x32xf32>
    %18 = arith.addf %11, %17 : vector<256x32xf32>
    %c0_22 = arith.constant 0 : index
    %c1_23 = arith.constant 1 : index
    %c0_24 = arith.constant 0 : index
    %c0_25 = arith.constant 0 : index
    %19 = vector.load %arg1[%c0_22, %c1_23, %c0_24, %c0_25] : memref<1x17x17x12xf32, #tpu.memory_space<vmem>>, vector<1x16x16x12xf32>
    %20 = vector.shape_cast %19 : vector<1x16x16x12xf32> to vector<16x16x12xf32>
    %21 = vector.shape_cast %20 : vector<16x16x12xf32> to vector<256x12xf32>
    %c2 = arith.constant 2 : index
    %c0_26 = arith.constant 0 : index
    %c0_27 = arith.constant 0 : index
    %22 = vector.load %arg2[%c2, %c0_26, %c0_27] : memref<4x12x32xf32, #tpu.memory_space<vmem>>, vector<1x12x32xf32>
    %23 = vector.shape_cast %22 : vector<1x12x32xf32> to vector<12x32xf32>
    %cst_28 = arith.constant dense<0.000000e+00> : vector<256x32xf32>
    %24 = tpu.matmul %21, %23, %cst_28 {dimension_numbers = #tpu.dot_dimension_numbers<[1], [0], [0], [1], [0, 0, 1, 1], [], []>} : vector<256x12xf32>, vector<12x32xf32>, vector<256x32xf32> -> vector<256x32xf32>
    %25 = arith.addf %18, %24 : vector<256x32xf32>
    %c0_29 = arith.constant 0 : index
    %c1_30 = arith.constant 1 : index
    %c1_31 = arith.constant 1 : index
    %c0_32 = arith.constant 0 : index
    %26 = vector.load %arg1[%c0_29, %c1_30, %c1_31, %c0_32] : memref<1x17x17x12xf32, #tpu.memory_space<vmem>>, vector<1x16x16x12xf32>
    %27 = vector.shape_cast %26 : vector<1x16x16x12xf32> to vector<16x16x12xf32>
    %28 = vector.shape_cast %27 : vector<16x16x12xf32> to vector<256x12xf32>
    %c3 = arith.constant 3 : index
    %c0_33 = arith.constant 0 : index
    %c0_34 = arith.constant 0 : index
    %29 = vector.load %arg2[%c3, %c0_33, %c0_34] : memref<4x12x32xf32, #tpu.memory_space<vmem>>, vector<1x12x32xf32>
    %30 = vector.shape_cast %29 : vector<1x12x32xf32> to vector<12x32xf32>
    %cst_35 = arith.constant dense<0.000000e+00> : vector<256x32xf32>
    %31 = tpu.matmul %28, %30, %cst_35 {dimension_numbers = #tpu.dot_dimension_numbers<[1], [0], [0], [1], [0, 0, 1, 1], [], []>} : vector<256x12xf32>, vector<12x32xf32>, vector<256x32xf32> -> vector<256x32xf32>
    %32 = arith.addf %25, %31 : vector<256x32xf32>
    %c0_36 = arith.constant 0 : index
    %c0_37 = arith.constant 0 : index
    %33 = vector.load %arg3[%c0_36, %c0_37] : memref<1x32xf32, #tpu.memory_space<vmem>>, vector<1x32xf32>
    %34 = vector.broadcast %33 : vector<1x32xf32> to vector<256x32xf32>
    %35 = arith.addf %32, %34 : vector<256x32xf32>
    %cst_38 = arith.constant 0.000000e+00 : f32
    %36 = vector.broadcast %cst_38 : f32 to vector<256x32xf32>
    %37 = arith.cmpf oge, %35, %36 : vector<256x32xf32>
    %cst_39 = arith.constant 2.000000e-01 : f32
    %38 = vector.broadcast %cst_39 : f32 to vector<256x32xf32>
    %39 = arith.mulf %38, %35 : vector<256x32xf32>
    %40 = arith.select %37, %35, %39 : vector<256x32xi1>, vector<256x32xf32>
    %41 = vector.shape_cast %40 : vector<256x32xf32> to vector<16x16x32xf32>
    %c1_40 = arith.constant 1 : index
    %c1_41 = arith.constant 1 : index
    %c0_42 = arith.constant 0 : index
    %42 = vector.load %arg11[%c1_40, %c1_41, %c0_42] : memref<18x18x32xf32, #tpu.memory_space<vmem>>, vector<16x16x32xf32>
    tpu.vector_store %arg11[%c1_40, %c1_41, %c0_42], %41 {strides = array<i32>} : memref<18x18x32xf32, #tpu.memory_space<vmem>>, vector<16x16x32xf32>,
    %cst_43 = arith.constant 0.000000e+00 : f32
    %43 = vector.broadcast %cst_43 : f32 to vector<64x64xf32>
    %c0_44 = arith.constant 0 : index
    %c0_45 = arith.constant 0 : index
    %c0_46 = arith.constant 0 : index
    %44 = tpu.strided_load %arg11[%c0_44, %c0_45, %c0_46] {strides = array<i32: 2, 2, 1>} : memref<18x18x32xf32, #tpu.memory_space<vmem>>, vector<8x8x32xf32>
    %45 = vector.shape_cast %44 : vector<8x8x32xf32> to vector<64x32xf32>
    %c0_47 = arith.constant 0 : index
    %c0_48 = arith.constant 0 : index
    %c0_49 = arith.constant 0 : index
    %46 = vector.load %arg4[%c0_47, %c0_48, %c0_49] : memref<16x32x64xf32, #tpu.memory_space<vmem>>, vector<1x32x64xf32>
    %47 = vector.shape_cast %46 : vector<1x32x64xf32> to vector<32x64xf32>
    %cst_50 = arith.constant dense<0.000000e+00> : vector<64x64xf32>
    %48 = tpu.matmul %45, %47, %cst_50 {dimension_numbers = #tpu.dot_dimension_numbers<[1], [0], [0], [1], [0, 0, 1, 1], [], []>} : vector<64x32xf32>, vector<32x64xf32>, vector<64x64xf32> -> vector<64x64xf32>
    %49 = arith.addf %43, %48 : vector<64x64xf32>
    %c0_51 = arith.constant 0 : index
    %c1_52 = arith.constant 1 : index
    %c0_53 = arith.constant 0 : index
    %50 = tpu.strided_load %arg11[%c0_51, %c1_52, %c0_53] {strides = array<i32: 2, 2, 1>} : memref<18x18x32xf32, #tpu.memory_space<vmem>>, vector<8x8x32xf32>
    %51 = vector.shape_cast %50 : vector<8x8x32xf32> to vector<64x32xf32>
    %c1_54 = arith.constant 1 : index
    %c0_55 = arith.constant 0 : index
    %c0_56 = arith.constant 0 : index
    %52 = vector.load %arg4[%c1_54, %c0_55, %c0_56] : memref<16x32x64xf32, #tpu.memory_space<vmem>>, vector<1x32x64xf32>
    %53 = vector.shape_cast %52 : vector<1x32x64xf32> to vector<32x64xf32>
    %cst_57 = arith.constant dense<0.000000e+00> : vector<64x64xf32>
    %54 = tpu.matmul %51, %53, %cst_57 {dimension_numbers = #tpu.dot_dimension_numbers<[1], [0], [0], [1], [0, 0, 1, 1], [], []>} : vector<64x32xf32>, vector<32x64xf32>, vector<64x64xf32> -> vector<64x64xf32>
    %55 = arith.addf %49, %54 : vector<64x64xf32>
    %c0_58 = arith.constant 0 : index
    %c2_59 = arith.constant 2 : index
    %c0_60 = arith.constant 0 : index
    %56 = tpu.strided_load %arg11[%c0_58, %c2_59, %c0_60] {strides = array<i32: 2, 2, 1>} : memref<18x18x32xf32, #tpu.memory_space<vmem>>, vector<8x8x32xf32>
    %57 = vector.shape_cast %56 : vector<8x8x32xf32> to vector<64x32xf32>
    %c2_61 = arith.constant 2 : index
    %c0_62 = arith.constant 0 : index
    %c0_63 = arith.constant 0 : index
    %58 = vector.load %arg4[%c2_61, %c0_62, %c0_63] : memref<16x32x64xf32, #tpu.memory_space<vmem>>, vector<1x32x64xf32>
    %59 = vector.shape_cast %58 : vector<1x32x64xf32> to vector<32x64xf32>
    %cst_64 = arith.constant dense<0.000000e+00> : vector<64x64xf32>
    %60 = tpu.matmul %57, %59, %cst_64 {dimension_numbers = #tpu.dot_dimension_numbers<[1], [0], [0], [1], [0, 0, 1, 1], [], []>} : vector<64x32xf32>, vector<32x64xf32>, vector<64x64xf32> -> vector<64x64xf32>
    %61 = arith.addf %55, %60 : vector<64x64xf32>
    %c0_65 = arith.constant 0 : index
    %c3_66 = arith.constant 3 : index
    %c0_67 = arith.constant 0 : index
    %62 = tpu.strided_load %arg11[%c0_65, %c3_66, %c0_67] {strides = array<i32: 2, 2, 1>} : memref<18x18x32xf32, #tpu.memory_space<vmem>>, vector<8x8x32xf32>
    %63 = vector.shape_cast %62 : vector<8x8x32xf32> to vector<64x32xf32>
    %c3_68 = arith.constant 3 : index
    %c0_69 = arith.constant 0 : index
    %c0_70 = arith.constant 0 : index
    %64 = vector.load %arg4[%c3_68, %c0_69, %c0_70] : memref<16x32x64xf32, #tpu.memory_space<vmem>>, vector<1x32x64xf32>
    %65 = vector.shape_cast %64 : vector<1x32x64xf32> to vector<32x64xf32>
    %cst_71 = arith.constant dense<0.000000e+00> : vector<64x64xf32>
    %66 = tpu.matmul %63, %65, %cst_71 {dimension_numbers = #tpu.dot_dimension_numbers<[1], [0], [0], [1], [0, 0, 1, 1], [], []>} : vector<64x32xf32>, vector<32x64xf32>, vector<64x64xf32> -> vector<64x64xf32>
    %67 = arith.addf %61, %66 : vector<64x64xf32>
    %c1_72 = arith.constant 1 : index
    %c0_73 = arith.constant 0 : index
    %c0_74 = arith.constant 0 : index
    %68 = tpu.strided_load %arg11[%c1_72, %c0_73, %c0_74] {strides = array<i32: 2, 2, 1>} : memref<18x18x32xf32, #tpu.memory_space<vmem>>, vector<8x8x32xf32>
    %69 = vector.shape_cast %68 : vector<8x8x32xf32> to vector<64x32xf32>
    %c4 = arith.constant 4 : index
    %c0_75 = arith.constant 0 : index
    %c0_76 = arith.constant 0 : index
    %70 = vector.load %arg4[%c4, %c0_75, %c0_76] : memref<16x32x64xf32, #tpu.memory_space<vmem>>, vector<1x32x64xf32>
    %71 = vector.shape_cast %70 : vector<1x32x64xf32> to vector<32x64xf32>
    %cst_77 = arith.constant dense<0.000000e+00> : vector<64x64xf32>
    %72 = tpu.matmul %69, %71, %cst_77 {dimension_numbers = #tpu.dot_dimension_numbers<[1], [0], [0], [1], [0, 0, 1, 1], [], []>} : vector<64x32xf32>, vector<32x64xf32>, vector<64x64xf32> -> vector<64x64xf32>
    %73 = arith.addf %67, %72 : vector<64x64xf32>
    %c1_78 = arith.constant 1 : index
    %c1_79 = arith.constant 1 : index
    %c0_80 = arith.constant 0 : index
    %74 = tpu.strided_load %arg11[%c1_78, %c1_79, %c0_80] {strides = array<i32: 2, 2, 1>} : memref<18x18x32xf32, #tpu.memory_space<vmem>>, vector<8x8x32xf32>
    %75 = vector.shape_cast %74 : vector<8x8x32xf32> to vector<64x32xf32>
    %c5 = arith.constant 5 : index
    %c0_81 = arith.constant 0 : index
    %c0_82 = arith.constant 0 : index
    %76 = vector.load %arg4[%c5, %c0_81, %c0_82] : memref<16x32x64xf32, #tpu.memory_space<vmem>>, vector<1x32x64xf32>
    %77 = vector.shape_cast %76 : vector<1x32x64xf32> to vector<32x64xf32>
    %cst_83 = arith.constant dense<0.000000e+00> : vector<64x64xf32>
    %78 = tpu.matmul %75, %77, %cst_83 {dimension_numbers = #tpu.dot_dimension_numbers<[1], [0], [0], [1], [0, 0, 1, 1], [], []>} : vector<64x32xf32>, vector<32x64xf32>, vector<64x64xf32> -> vector<64x64xf32>
    %79 = arith.addf %73, %78 : vector<64x64xf32>
    %c1_84 = arith.constant 1 : index
    %c2_85 = arith.constant 2 : index
    %c0_86 = arith.constant 0 : index
    %80 = tpu.strided_load %arg11[%c1_84, %c2_85, %c0_86] {strides = array<i32: 2, 2, 1>} : memref<18x18x32xf32, #tpu.memory_space<vmem>>, vector<8x8x32xf32>
    %81 = vector.shape_cast %80 : vector<8x8x32xf32> to vector<64x32xf32>
    %c6 = arith.constant 6 : index
    %c0_87 = arith.constant 0 : index
    %c0_88 = arith.constant 0 : index
    %82 = vector.load %arg4[%c6, %c0_87, %c0_88] : memref<16x32x64xf32, #tpu.memory_space<vmem>>, vector<1x32x64xf32>
    %83 = vector.shape_cast %82 : vector<1x32x64xf32> to vector<32x64xf32>
    %cst_89 = arith.constant dense<0.000000e+00> : vector<64x64xf32>
    %84 = tpu.matmul %81, %83, %cst_89 {dimension_numbers = #tpu.dot_dimension_numbers<[1], [0], [0], [1], [0, 0, 1, 1], [], []>} : vector<64x32xf32>, vector<32x64xf32>, vector<64x64xf32> -> vector<64x64xf32>
    %85 = arith.addf %79, %84 : vector<64x64xf32>
    %c1_90 = arith.constant 1 : index
    %c3_91 = arith.constant 3 : index
    %c0_92 = arith.constant 0 : index
    %86 = tpu.strided_load %arg11[%c1_90, %c3_91, %c0_92] {strides = array<i32: 2, 2, 1>} : memref<18x18x32xf32, #tpu.memory_space<vmem>>, vector<8x8x32xf32>
    %87 = vector.shape_cast %86 : vector<8x8x32xf32> to vector<64x32xf32>
    %c7 = arith.constant 7 : index
    %c0_93 = arith.constant 0 : index
    %c0_94 = arith.constant 0 : index
    %88 = vector.load %arg4[%c7, %c0_93, %c0_94] : memref<16x32x64xf32, #tpu.memory_space<vmem>>, vector<1x32x64xf32>
    %89 = vector.shape_cast %88 : vector<1x32x64xf32> to vector<32x64xf32>
    %cst_95 = arith.constant dense<0.000000e+00> : vector<64x64xf32>
    %90 = tpu.matmul %87, %89, %cst_95 {dimension_numbers = #tpu.dot_dimension_numbers<[1], [0], [0], [1], [0, 0, 1, 1], [], []>} : vector<64x32xf32>, vector<32x64xf32>, vector<64x64xf32> -> vector<64x64xf32>
    %91 = arith.addf %85, %90 : vector<64x64xf32>
    %c2_96 = arith.constant 2 : index
    %c0_97 = arith.constant 0 : index
    %c0_98 = arith.constant 0 : index
    %92 = tpu.strided_load %arg11[%c2_96, %c0_97, %c0_98] {strides = array<i32: 2, 2, 1>} : memref<18x18x32xf32, #tpu.memory_space<vmem>>, vector<8x8x32xf32>
    %93 = vector.shape_cast %92 : vector<8x8x32xf32> to vector<64x32xf32>
    %c8 = arith.constant 8 : index
    %c0_99 = arith.constant 0 : index
    %c0_100 = arith.constant 0 : index
    %94 = vector.load %arg4[%c8, %c0_99, %c0_100] : memref<16x32x64xf32, #tpu.memory_space<vmem>>, vector<1x32x64xf32>
    %95 = vector.shape_cast %94 : vector<1x32x64xf32> to vector<32x64xf32>
    %cst_101 = arith.constant dense<0.000000e+00> : vector<64x64xf32>
    %96 = tpu.matmul %93, %95, %cst_101 {dimension_numbers = #tpu.dot_dimension_numbers<[1], [0], [0], [1], [0, 0, 1, 1], [], []>} : vector<64x32xf32>, vector<32x64xf32>, vector<64x64xf32> -> vector<64x64xf32>
    %97 = arith.addf %91, %96 : vector<64x64xf32>
    %c2_102 = arith.constant 2 : index
    %c1_103 = arith.constant 1 : index
    %c0_104 = arith.constant 0 : index
    %98 = tpu.strided_load %arg11[%c2_102, %c1_103, %c0_104] {strides = array<i32: 2, 2, 1>} : memref<18x18x32xf32, #tpu.memory_space<vmem>>, vector<8x8x32xf32>
    %99 = vector.shape_cast %98 : vector<8x8x32xf32> to vector<64x32xf32>
    %c9 = arith.constant 9 : index
    %c0_105 = arith.constant 0 : index
    %c0_106 = arith.constant 0 : index
    %100 = vector.load %arg4[%c9, %c0_105, %c0_106] : memref<16x32x64xf32, #tpu.memory_space<vmem>>, vector<1x32x64xf32>
    %101 = vector.shape_cast %100 : vector<1x32x64xf32> to vector<32x64xf32>
    %cst_107 = arith.constant dense<0.000000e+00> : vector<64x64xf32>
    %102 = tpu.matmul %99, %101, %cst_107 {dimension_numbers = #tpu.dot_dimension_numbers<[1], [0], [0], [1], [0, 0, 1, 1], [], []>} : vector<64x32xf32>, vector<32x64xf32>, vector<64x64xf32> -> vector<64x64xf32>
    %103 = arith.addf %97, %102 : vector<64x64xf32>
    %c2_108 = arith.constant 2 : index
    %c2_109 = arith.constant 2 : index
    %c0_110 = arith.constant 0 : index
    %104 = tpu.strided_load %arg11[%c2_108, %c2_109, %c0_110] {strides = array<i32: 2, 2, 1>} : memref<18x18x32xf32, #tpu.memory_space<vmem>>, vector<8x8x32xf32>
    %105 = vector.shape_cast %104 : vector<8x8x32xf32> to vector<64x32xf32>
    %c10 = arith.constant 10 : index
    %c0_111 = arith.constant 0 : index
    %c0_112 = arith.constant 0 : index
    %106 = vector.load %arg4[%c10, %c0_111, %c0_112] : memref<16x32x64xf32, #tpu.memory_space<vmem>>, vector<1x32x64xf32>
    %107 = vector.shape_cast %106 : vector<1x32x64xf32> to vector<32x64xf32>
    %cst_113 = arith.constant dense<0.000000e+00> : vector<64x64xf32>
    %108 = tpu.matmul %105, %107, %cst_113 {dimension_numbers = #tpu.dot_dimension_numbers<[1], [0], [0], [1], [0, 0, 1, 1], [], []>} : vector<64x32xf32>, vector<32x64xf32>, vector<64x64xf32> -> vector<64x64xf32>
    %109 = arith.addf %103, %108 : vector<64x64xf32>
    %c2_114 = arith.constant 2 : index
    %c3_115 = arith.constant 3 : index
    %c0_116 = arith.constant 0 : index
    %110 = tpu.strided_load %arg11[%c2_114, %c3_115, %c0_116] {strides = array<i32: 2, 2, 1>} : memref<18x18x32xf32, #tpu.memory_space<vmem>>, vector<8x8x32xf32>
    %111 = vector.shape_cast %110 : vector<8x8x32xf32> to vector<64x32xf32>
    %c11 = arith.constant 11 : index
    %c0_117 = arith.constant 0 : index
    %c0_118 = arith.constant 0 : index
    %112 = vector.load %arg4[%c11, %c0_117, %c0_118] : memref<16x32x64xf32, #tpu.memory_space<vmem>>, vector<1x32x64xf32>
    %113 = vector.shape_cast %112 : vector<1x32x64xf32> to vector<32x64xf32>
    %cst_119 = arith.constant dense<0.000000e+00> : vector<64x64xf32>
    %114 = tpu.matmul %111, %113, %cst_119 {dimension_numbers = #tpu.dot_dimension_numbers<[1], [0], [0], [1], [0, 0, 1, 1], [], []>} : vector<64x32xf32>, vector<32x64xf32>, vector<64x64xf32> -> vector<64x64xf32>
    %115 = arith.addf %109, %114 : vector<64x64xf32>
    %c3_120 = arith.constant 3 : index
    %c0_121 = arith.constant 0 : index
    %c0_122 = arith.constant 0 : index
    %116 = tpu.strided_load %arg11[%c3_120, %c0_121, %c0_122] {strides = array<i32: 2, 2, 1>} : memref<18x18x32xf32, #tpu.memory_space<vmem>>, vector<8x8x32xf32>
    %117 = vector.shape_cast %116 : vector<8x8x32xf32> to vector<64x32xf32>
    %c12 = arith.constant 12 : index
    %c0_123 = arith.constant 0 : index
    %c0_124 = arith.constant 0 : index
    %118 = vector.load %arg4[%c12, %c0_123, %c0_124] : memref<16x32x64xf32, #tpu.memory_space<vmem>>, vector<1x32x64xf32>
    %119 = vector.shape_cast %118 : vector<1x32x64xf32> to vector<32x64xf32>
    %cst_125 = arith.constant dense<0.000000e+00> : vector<64x64xf32>
    %120 = tpu.matmul %117, %119, %cst_125 {dimension_numbers = #tpu.dot_dimension_numbers<[1], [0], [0], [1], [0, 0, 1, 1], [], []>} : vector<64x32xf32>, vector<32x64xf32>, vector<64x64xf32> -> vector<64x64xf32>
    %121 = arith.addf %115, %120 : vector<64x64xf32>
    %c3_126 = arith.constant 3 : index
    %c1_127 = arith.constant 1 : index
    %c0_128 = arith.constant 0 : index
    %122 = tpu.strided_load %arg11[%c3_126, %c1_127, %c0_128] {strides = array<i32: 2, 2, 1>} : memref<18x18x32xf32, #tpu.memory_space<vmem>>, vector<8x8x32xf32>
    %123 = vector.shape_cast %122 : vector<8x8x32xf32> to vector<64x32xf32>
    %c13 = arith.constant 13 : index
    %c0_129 = arith.constant 0 : index
    %c0_130 = arith.constant 0 : index
    %124 = vector.load %arg4[%c13, %c0_129, %c0_130] : memref<16x32x64xf32, #tpu.memory_space<vmem>>, vector<1x32x64xf32>
    %125 = vector.shape_cast %124 : vector<1x32x64xf32> to vector<32x64xf32>
    %cst_131 = arith.constant dense<0.000000e+00> : vector<64x64xf32>
    %126 = tpu.matmul %123, %125, %cst_131 {dimension_numbers = #tpu.dot_dimension_numbers<[1], [0], [0], [1], [0, 0, 1, 1], [], []>} : vector<64x32xf32>, vector<32x64xf32>, vector<64x64xf32> -> vector<64x64xf32>
    %127 = arith.addf %121, %126 : vector<64x64xf32>
    %c3_132 = arith.constant 3 : index
    %c2_133 = arith.constant 2 : index
    %c0_134 = arith.constant 0 : index
    %128 = tpu.strided_load %arg11[%c3_132, %c2_133, %c0_134] {strides = array<i32: 2, 2, 1>} : memref<18x18x32xf32, #tpu.memory_space<vmem>>, vector<8x8x32xf32>
    %129 = vector.shape_cast %128 : vector<8x8x32xf32> to vector<64x32xf32>
    %c14 = arith.constant 14 : index
    %c0_135 = arith.constant 0 : index
    %c0_136 = arith.constant 0 : index
    %130 = vector.load %arg4[%c14, %c0_135, %c0_136] : memref<16x32x64xf32, #tpu.memory_space<vmem>>, vector<1x32x64xf32>
    %131 = vector.shape_cast %130 : vector<1x32x64xf32> to vector<32x64xf32>
    %cst_137 = arith.constant dense<0.000000e+00> : vector<64x64xf32>
    %132 = tpu.matmul %129, %131, %cst_137 {dimension_numbers = #tpu.dot_dimension_numbers<[1], [0], [0], [1], [0, 0, 1, 1], [], []>} : vector<64x32xf32>, vector<32x64xf32>, vector<64x64xf32> -> vector<64x64xf32>
    %133 = arith.addf %127, %132 : vector<64x64xf32>
    %c3_138 = arith.constant 3 : index
    %c3_139 = arith.constant 3 : index
    %c0_140 = arith.constant 0 : index
    %134 = tpu.strided_load %arg11[%c3_138, %c3_139, %c0_140] {strides = array<i32: 2, 2, 1>} : memref<18x18x32xf32, #tpu.memory_space<vmem>>, vector<8x8x32xf32>
    %135 = vector.shape_cast %134 : vector<8x8x32xf32> to vector<64x32xf32>
    %c15 = arith.constant 15 : index
    %c0_141 = arith.constant 0 : index
    %c0_142 = arith.constant 0 : index
    %136 = vector.load %arg4[%c15, %c0_141, %c0_142] : memref<16x32x64xf32, #tpu.memory_space<vmem>>, vector<1x32x64xf32>
    %137 = vector.shape_cast %136 : vector<1x32x64xf32> to vector<32x64xf32>
    %cst_143 = arith.constant dense<0.000000e+00> : vector<64x64xf32>
    %138 = tpu.matmul %135, %137, %cst_143 {dimension_numbers = #tpu.dot_dimension_numbers<[1], [0], [0], [1], [0, 0, 1, 1], [], []>} : vector<64x32xf32>, vector<32x64xf32>, vector<64x64xf32> -> vector<64x64xf32>
    %139 = arith.addf %133, %138 : vector<64x64xf32>
    %c0_144 = arith.constant 0 : index
    %c0_145 = arith.constant 0 : index
    %140 = vector.load %arg5[%c0_144, %c0_145] : memref<1x64xf32, #tpu.memory_space<vmem>>, vector<1x64xf32>
    %141 = vector.broadcast %140 : vector<1x64xf32> to vector<64x64xf32>
    %142 = arith.addf %139, %141 : vector<64x64xf32>
    %cst_146 = arith.constant dense<0.000000e+00> : vector<64xf32>
    %143 = vector.multi_reduction <add>, %142, %cst_146 [0] : vector<64x64xf32> to vector<64xf32>
    %144 = vector.shape_cast %143 : vector<64xf32> to vector<1x64xf32>
    %cst_147 = arith.constant 6.400000e+01 : f32
    %145 = vector.broadcast %cst_147 : f32 to vector<1x64xf32>
    %146 = arith.divf %144, %145 : vector<1x64xf32>
    %147 = vector.broadcast %146 : vector<1x64xf32> to vector<64x64xf32>
    %148 = arith.subf %142, %147 : vector<64x64xf32>
    %149 = arith.mulf %148, %148 : vector<64x64xf32>
    %cst_148 = arith.constant dense<0.000000e+00> : vector<64xf32>
    %150 = vector.multi_reduction <add>, %149, %cst_148 [0] : vector<64x64xf32> to vector<64xf32>
    %151 = vector.shape_cast %150 : vector<64xf32> to vector<1x64xf32>
    %cst_149 = arith.constant 6.400000e+01 : f32
    %152 = vector.broadcast %cst_149 : f32 to vector<1x64xf32>
    %153 = arith.divf %151, %152 : vector<1x64xf32>
    %cst_150 = arith.constant 9.99999974E-6 : f32
    %154 = vector.broadcast %cst_150 : f32 to vector<1x64xf32>
    %155 = arith.addf %153, %154 : vector<1x64xf32>
    %156 = math.rsqrt %155 : vector<1x64xf32>
    %157 = vector.broadcast %156 : vector<1x64xf32> to vector<64x64xf32>
    %158 = arith.mulf %148, %157 : vector<64x64xf32>
    %cst_151 = arith.constant 0.000000e+00 : f32
    %159 = vector.broadcast %cst_151 : f32 to vector<64x64xf32>
    %160 = arith.cmpf oge, %158, %159 : vector<64x64xf32>
    %cst_152 = arith.constant 2.000000e-01 : f32
    %161 = vector.broadcast %cst_152 : f32 to vector<64x64xf32>
    %162 = arith.mulf %161, %158 : vector<64x64xf32>
    %163 = arith.select %160, %158, %162 : vector<64x64xi1>, vector<64x64xf32>
    %164 = vector.shape_cast %163 : vector<64x64xf32> to vector<8x8x64xf32>
    %c1_153 = arith.constant 1 : index
    %c1_154 = arith.constant 1 : index
    %c0_155 = arith.constant 0 : index
    %165 = vector.load %arg12[%c1_153, %c1_154, %c0_155] : memref<10x10x64xf32, #tpu.memory_space<vmem>>, vector<8x8x64xf32>
    tpu.vector_store %arg12[%c1_153, %c1_154, %c0_155], %164 {strides = array<i32>} : memref<10x10x64xf32, #tpu.memory_space<vmem>>, vector<8x8x64xf32>,
    %cst_156 = arith.constant 0.000000e+00 : f32
    %166 = vector.broadcast %cst_156 : f32 to vector<16x128xf32>
    %c0_157 = arith.constant 0 : index
    %c0_158 = arith.constant 0 : index
    %c0_159 = arith.constant 0 : index
    %167 = tpu.strided_load %arg12[%c0_157, %c0_158, %c0_159] {strides = array<i32: 2, 2, 1>} : memref<10x10x64xf32, #tpu.memory_space<vmem>>, vector<4x4x64xf32>
    %168 = vector.shape_cast %167 : vector<4x4x64xf32> to vector<16x64xf32>
    %c0_160 = arith.constant 0 : index
    %c0_161 = arith.constant 0 : index
    %c0_162 = arith.constant 0 : index
    %169 = vector.load %arg6[%c0_160, %c0_161, %c0_162] : memref<16x64x128xf32, #tpu.memory_space<vmem>>, vector<1x64x128xf32>
    %170 = vector.shape_cast %169 : vector<1x64x128xf32> to vector<64x128xf32>
    %cst_163 = arith.constant dense<0.000000e+00> : vector<16x128xf32>
    %171 = tpu.matmul %168, %170, %cst_163 {dimension_numbers = #tpu.dot_dimension_numbers<[1], [0], [0], [1], [0, 0, 1, 1], [], []>} : vector<16x64xf32>, vector<64x128xf32>, vector<16x128xf32> -> vector<16x128xf32>
    %172 = arith.addf %166, %171 : vector<16x128xf32>
    %c0_164 = arith.constant 0 : index
    %c1_165 = arith.constant 1 : index
    %c0_166 = arith.constant 0 : index
    %173 = tpu.strided_load %arg12[%c0_164, %c1_165, %c0_166] {strides = array<i32: 2, 2, 1>} : memref<10x10x64xf32, #tpu.memory_space<vmem>>, vector<4x4x64xf32>
    %174 = vector.shape_cast %173 : vector<4x4x64xf32> to vector<16x64xf32>
    %c1_167 = arith.constant 1 : index
    %c0_168 = arith.constant 0 : index
    %c0_169 = arith.constant 0 : index
    %175 = vector.load %arg6[%c1_167, %c0_168, %c0_169] : memref<16x64x128xf32, #tpu.memory_space<vmem>>, vector<1x64x128xf32>
    %176 = vector.shape_cast %175 : vector<1x64x128xf32> to vector<64x128xf32>
    %cst_170 = arith.constant dense<0.000000e+00> : vector<16x128xf32>
    %177 = tpu.matmul %174, %176, %cst_170 {dimension_numbers = #tpu.dot_dimension_numbers<[1], [0], [0], [1], [0, 0, 1, 1], [], []>} : vector<16x64xf32>, vector<64x128xf32>, vector<16x128xf32> -> vector<16x128xf32>
    %178 = arith.addf %172, %177 : vector<16x128xf32>
    %c0_171 = arith.constant 0 : index
    %c2_172 = arith.constant 2 : index
    %c0_173 = arith.constant 0 : index
    %179 = tpu.strided_load %arg12[%c0_171, %c2_172, %c0_173] {strides = array<i32: 2, 2, 1>} : memref<10x10x64xf32, #tpu.memory_space<vmem>>, vector<4x4x64xf32>
    %180 = vector.shape_cast %179 : vector<4x4x64xf32> to vector<16x64xf32>
    %c2_174 = arith.constant 2 : index
    %c0_175 = arith.constant 0 : index
    %c0_176 = arith.constant 0 : index
    %181 = vector.load %arg6[%c2_174, %c0_175, %c0_176] : memref<16x64x128xf32, #tpu.memory_space<vmem>>, vector<1x64x128xf32>
    %182 = vector.shape_cast %181 : vector<1x64x128xf32> to vector<64x128xf32>
    %cst_177 = arith.constant dense<0.000000e+00> : vector<16x128xf32>
    %183 = tpu.matmul %180, %182, %cst_177 {dimension_numbers = #tpu.dot_dimension_numbers<[1], [0], [0], [1], [0, 0, 1, 1], [], []>} : vector<16x64xf32>, vector<64x128xf32>, vector<16x128xf32> -> vector<16x128xf32>
    %184 = arith.addf %178, %183 : vector<16x128xf32>
    %c0_178 = arith.constant 0 : index
    %c3_179 = arith.constant 3 : index
    %c0_180 = arith.constant 0 : index
    %185 = tpu.strided_load %arg12[%c0_178, %c3_179, %c0_180] {strides = array<i32: 2, 2, 1>} : memref<10x10x64xf32, #tpu.memory_space<vmem>>, vector<4x4x64xf32>
    %186 = vector.shape_cast %185 : vector<4x4x64xf32> to vector<16x64xf32>
    %c3_181 = arith.constant 3 : index
    %c0_182 = arith.constant 0 : index
    %c0_183 = arith.constant 0 : index
    %187 = vector.load %arg6[%c3_181, %c0_182, %c0_183] : memref<16x64x128xf32, #tpu.memory_space<vmem>>, vector<1x64x128xf32>
    %188 = vector.shape_cast %187 : vector<1x64x128xf32> to vector<64x128xf32>
    %cst_184 = arith.constant dense<0.000000e+00> : vector<16x128xf32>
    %189 = tpu.matmul %186, %188, %cst_184 {dimension_numbers = #tpu.dot_dimension_numbers<[1], [0], [0], [1], [0, 0, 1, 1], [], []>} : vector<16x64xf32>, vector<64x128xf32>, vector<16x128xf32> -> vector<16x128xf32>
    %190 = arith.addf %184, %189 : vector<16x128xf32>
    %c1_185 = arith.constant 1 : index
    %c0_186 = arith.constant 0 : index
    %c0_187 = arith.constant 0 : index
    %191 = tpu.strided_load %arg12[%c1_185, %c0_186, %c0_187] {strides = array<i32: 2, 2, 1>} : memref<10x10x64xf32, #tpu.memory_space<vmem>>, vector<4x4x64xf32>
    %192 = vector.shape_cast %191 : vector<4x4x64xf32> to vector<16x64xf32>
    %c4_188 = arith.constant 4 : index
    %c0_189 = arith.constant 0 : index
    %c0_190 = arith.constant 0 : index
    %193 = vector.load %arg6[%c4_188, %c0_189, %c0_190] : memref<16x64x128xf32, #tpu.memory_space<vmem>>, vector<1x64x128xf32>
    %194 = vector.shape_cast %193 : vector<1x64x128xf32> to vector<64x128xf32>
    %cst_191 = arith.constant dense<0.000000e+00> : vector<16x128xf32>
    %195 = tpu.matmul %192, %194, %cst_191 {dimension_numbers = #tpu.dot_dimension_numbers<[1], [0], [0], [1], [0, 0, 1, 1], [], []>} : vector<16x64xf32>, vector<64x128xf32>, vector<16x128xf32> -> vector<16x128xf32>
    %196 = arith.addf %190, %195 : vector<16x128xf32>
    %c1_192 = arith.constant 1 : index
    %c1_193 = arith.constant 1 : index
    %c0_194 = arith.constant 0 : index
    %197 = tpu.strided_load %arg12[%c1_192, %c1_193, %c0_194] {strides = array<i32: 2, 2, 1>} : memref<10x10x64xf32, #tpu.memory_space<vmem>>, vector<4x4x64xf32>
    %198 = vector.shape_cast %197 : vector<4x4x64xf32> to vector<16x64xf32>
    %c5_195 = arith.constant 5 : index
    %c0_196 = arith.constant 0 : index
    %c0_197 = arith.constant 0 : index
    %199 = vector.load %arg6[%c5_195, %c0_196, %c0_197] : memref<16x64x128xf32, #tpu.memory_space<vmem>>, vector<1x64x128xf32>
    %200 = vector.shape_cast %199 : vector<1x64x128xf32> to vector<64x128xf32>
    %cst_198 = arith.constant dense<0.000000e+00> : vector<16x128xf32>
    %201 = tpu.matmul %198, %200, %cst_198 {dimension_numbers = #tpu.dot_dimension_numbers<[1], [0], [0], [1], [0, 0, 1, 1], [], []>} : vector<16x64xf32>, vector<64x128xf32>, vector<16x128xf32> -> vector<16x128xf32>
    %202 = arith.addf %196, %201 : vector<16x128xf32>
    %c1_199 = arith.constant 1 : index
    %c2_200 = arith.constant 2 : index
    %c0_201 = arith.constant 0 : index
    %203 = tpu.strided_load %arg12[%c1_199, %c2_200, %c0_201] {strides = array<i32: 2, 2, 1>} : memref<10x10x64xf32, #tpu.memory_space<vmem>>, vector<4x4x64xf32>
    %204 = vector.shape_cast %203 : vector<4x4x64xf32> to vector<16x64xf32>
    %c6_202 = arith.constant 6 : index
    %c0_203 = arith.constant 0 : index
    %c0_204 = arith.constant 0 : index
    %205 = vector.load %arg6[%c6_202, %c0_203, %c0_204] : memref<16x64x128xf32, #tpu.memory_space<vmem>>, vector<1x64x128xf32>
    %206 = vector.shape_cast %205 : vector<1x64x128xf32> to vector<64x128xf32>
    %cst_205 = arith.constant dense<0.000000e+00> : vector<16x128xf32>
    %207 = tpu.matmul %204, %206, %cst_205 {dimension_numbers = #tpu.dot_dimension_numbers<[1], [0], [0], [1], [0, 0, 1, 1], [], []>} : vector<16x64xf32>, vector<64x128xf32>, vector<16x128xf32> -> vector<16x128xf32>
    %208 = arith.addf %202, %207 : vector<16x128xf32>
    %c1_206 = arith.constant 1 : index
    %c3_207 = arith.constant 3 : index
    %c0_208 = arith.constant 0 : index
    %209 = tpu.strided_load %arg12[%c1_206, %c3_207, %c0_208] {strides = array<i32: 2, 2, 1>} : memref<10x10x64xf32, #tpu.memory_space<vmem>>, vector<4x4x64xf32>
    %210 = vector.shape_cast %209 : vector<4x4x64xf32> to vector<16x64xf32>
    %c7_209 = arith.constant 7 : index
    %c0_210 = arith.constant 0 : index
    %c0_211 = arith.constant 0 : index
    %211 = vector.load %arg6[%c7_209, %c0_210, %c0_211] : memref<16x64x128xf32, #tpu.memory_space<vmem>>, vector<1x64x128xf32>
    %212 = vector.shape_cast %211 : vector<1x64x128xf32> to vector<64x128xf32>
    %cst_212 = arith.constant dense<0.000000e+00> : vector<16x128xf32>
    %213 = tpu.matmul %210, %212, %cst_212 {dimension_numbers = #tpu.dot_dimension_numbers<[1], [0], [0], [1], [0, 0, 1, 1], [], []>} : vector<16x64xf32>, vector<64x128xf32>, vector<16x128xf32> -> vector<16x128xf32>
    %214 = arith.addf %208, %213 : vector<16x128xf32>
    %c2_213 = arith.constant 2 : index
    %c0_214 = arith.constant 0 : index
    %c0_215 = arith.constant 0 : index
    %215 = tpu.strided_load %arg12[%c2_213, %c0_214, %c0_215] {strides = array<i32: 2, 2, 1>} : memref<10x10x64xf32, #tpu.memory_space<vmem>>, vector<4x4x64xf32>
    %216 = vector.shape_cast %215 : vector<4x4x64xf32> to vector<16x64xf32>
    %c8_216 = arith.constant 8 : index
    %c0_217 = arith.constant 0 : index
    %c0_218 = arith.constant 0 : index
    %217 = vector.load %arg6[%c8_216, %c0_217, %c0_218] : memref<16x64x128xf32, #tpu.memory_space<vmem>>, vector<1x64x128xf32>
    %218 = vector.shape_cast %217 : vector<1x64x128xf32> to vector<64x128xf32>
    %cst_219 = arith.constant dense<0.000000e+00> : vector<16x128xf32>
    %219 = tpu.matmul %216, %218, %cst_219 {dimension_numbers = #tpu.dot_dimension_numbers<[1], [0], [0], [1], [0, 0, 1, 1], [], []>} : vector<16x64xf32>, vector<64x128xf32>, vector<16x128xf32> -> vector<16x128xf32>
    %220 = arith.addf %214, %219 : vector<16x128xf32>
    %c2_220 = arith.constant 2 : index
    %c1_221 = arith.constant 1 : index
    %c0_222 = arith.constant 0 : index
    %221 = tpu.strided_load %arg12[%c2_220, %c1_221, %c0_222] {strides = array<i32: 2, 2, 1>} : memref<10x10x64xf32, #tpu.memory_space<vmem>>, vector<4x4x64xf32>
    %222 = vector.shape_cast %221 : vector<4x4x64xf32> to vector<16x64xf32>
    %c9_223 = arith.constant 9 : index
    %c0_224 = arith.constant 0 : index
    %c0_225 = arith.constant 0 : index
    %223 = vector.load %arg6[%c9_223, %c0_224, %c0_225] : memref<16x64x128xf32, #tpu.memory_space<vmem>>, vector<1x64x128xf32>
    %224 = vector.shape_cast %223 : vector<1x64x128xf32> to vector<64x128xf32>
    %cst_226 = arith.constant dense<0.000000e+00> : vector<16x128xf32>
    %225 = tpu.matmul %222, %224, %cst_226 {dimension_numbers = #tpu.dot_dimension_numbers<[1], [0], [0], [1], [0, 0, 1, 1], [], []>} : vector<16x64xf32>, vector<64x128xf32>, vector<16x128xf32> -> vector<16x128xf32>
    %226 = arith.addf %220, %225 : vector<16x128xf32>
    %c2_227 = arith.constant 2 : index
    %c2_228 = arith.constant 2 : index
    %c0_229 = arith.constant 0 : index
    %227 = tpu.strided_load %arg12[%c2_227, %c2_228, %c0_229] {strides = array<i32: 2, 2, 1>} : memref<10x10x64xf32, #tpu.memory_space<vmem>>, vector<4x4x64xf32>
    %228 = vector.shape_cast %227 : vector<4x4x64xf32> to vector<16x64xf32>
    %c10_230 = arith.constant 10 : index
    %c0_231 = arith.constant 0 : index
    %c0_232 = arith.constant 0 : index
    %229 = vector.load %arg6[%c10_230, %c0_231, %c0_232] : memref<16x64x128xf32, #tpu.memory_space<vmem>>, vector<1x64x128xf32>
    %230 = vector.shape_cast %229 : vector<1x64x128xf32> to vector<64x128xf32>
    %cst_233 = arith.constant dense<0.000000e+00> : vector<16x128xf32>
    %231 = tpu.matmul %228, %230, %cst_233 {dimension_numbers = #tpu.dot_dimension_numbers<[1], [0], [0], [1], [0, 0, 1, 1], [], []>} : vector<16x64xf32>, vector<64x128xf32>, vector<16x128xf32> -> vector<16x128xf32>
    %232 = arith.addf %226, %231 : vector<16x128xf32>
    %c2_234 = arith.constant 2 : index
    %c3_235 = arith.constant 3 : index
    %c0_236 = arith.constant 0 : index
    %233 = tpu.strided_load %arg12[%c2_234, %c3_235, %c0_236] {strides = array<i32: 2, 2, 1>} : memref<10x10x64xf32, #tpu.memory_space<vmem>>, vector<4x4x64xf32>
    %234 = vector.shape_cast %233 : vector<4x4x64xf32> to vector<16x64xf32>
    %c11_237 = arith.constant 11 : index
    %c0_238 = arith.constant 0 : index
    %c0_239 = arith.constant 0 : index
    %235 = vector.load %arg6[%c11_237, %c0_238, %c0_239] : memref<16x64x128xf32, #tpu.memory_space<vmem>>, vector<1x64x128xf32>
    %236 = vector.shape_cast %235 : vector<1x64x128xf32> to vector<64x128xf32>
    %cst_240 = arith.constant dense<0.000000e+00> : vector<16x128xf32>
    %237 = tpu.matmul %234, %236, %cst_240 {dimension_numbers = #tpu.dot_dimension_numbers<[1], [0], [0], [1], [0, 0, 1, 1], [], []>} : vector<16x64xf32>, vector<64x128xf32>, vector<16x128xf32> -> vector<16x128xf32>
    %238 = arith.addf %232, %237 : vector<16x128xf32>
    %c3_241 = arith.constant 3 : index
    %c0_242 = arith.constant 0 : index
    %c0_243 = arith.constant 0 : index
    %239 = tpu.strided_load %arg12[%c3_241, %c0_242, %c0_243] {strides = array<i32: 2, 2, 1>} : memref<10x10x64xf32, #tpu.memory_space<vmem>>, vector<4x4x64xf32>
    %240 = vector.shape_cast %239 : vector<4x4x64xf32> to vector<16x64xf32>
    %c12_244 = arith.constant 12 : index
    %c0_245 = arith.constant 0 : index
    %c0_246 = arith.constant 0 : index
    %241 = vector.load %arg6[%c12_244, %c0_245, %c0_246] : memref<16x64x128xf32, #tpu.memory_space<vmem>>, vector<1x64x128xf32>
    %242 = vector.shape_cast %241 : vector<1x64x128xf32> to vector<64x128xf32>
    %cst_247 = arith.constant dense<0.000000e+00> : vector<16x128xf32>
    %243 = tpu.matmul %240, %242, %cst_247 {dimension_numbers = #tpu.dot_dimension_numbers<[1], [0], [0], [1], [0, 0, 1, 1], [], []>} : vector<16x64xf32>, vector<64x128xf32>, vector<16x128xf32> -> vector<16x128xf32>
    %244 = arith.addf %238, %243 : vector<16x128xf32>
    %c3_248 = arith.constant 3 : index
    %c1_249 = arith.constant 1 : index
    %c0_250 = arith.constant 0 : index
    %245 = tpu.strided_load %arg12[%c3_248, %c1_249, %c0_250] {strides = array<i32: 2, 2, 1>} : memref<10x10x64xf32, #tpu.memory_space<vmem>>, vector<4x4x64xf32>
    %246 = vector.shape_cast %245 : vector<4x4x64xf32> to vector<16x64xf32>
    %c13_251 = arith.constant 13 : index
    %c0_252 = arith.constant 0 : index
    %c0_253 = arith.constant 0 : index
    %247 = vector.load %arg6[%c13_251, %c0_252, %c0_253] : memref<16x64x128xf32, #tpu.memory_space<vmem>>, vector<1x64x128xf32>
    %248 = vector.shape_cast %247 : vector<1x64x128xf32> to vector<64x128xf32>
    %cst_254 = arith.constant dense<0.000000e+00> : vector<16x128xf32>
    %249 = tpu.matmul %246, %248, %cst_254 {dimension_numbers = #tpu.dot_dimension_numbers<[1], [0], [0], [1], [0, 0, 1, 1], [], []>} : vector<16x64xf32>, vector<64x128xf32>, vector<16x128xf32> -> vector<16x128xf32>
    %250 = arith.addf %244, %249 : vector<16x128xf32>
    %c3_255 = arith.constant 3 : index
    %c2_256 = arith.constant 2 : index
    %c0_257 = arith.constant 0 : index
    %251 = tpu.strided_load %arg12[%c3_255, %c2_256, %c0_257] {strides = array<i32: 2, 2, 1>} : memref<10x10x64xf32, #tpu.memory_space<vmem>>, vector<4x4x64xf32>
    %252 = vector.shape_cast %251 : vector<4x4x64xf32> to vector<16x64xf32>
    %c14_258 = arith.constant 14 : index
    %c0_259 = arith.constant 0 : index
    %c0_260 = arith.constant 0 : index
    %253 = vector.load %arg6[%c14_258, %c0_259, %c0_260] : memref<16x64x128xf32, #tpu.memory_space<vmem>>, vector<1x64x128xf32>
    %254 = vector.shape_cast %253 : vector<1x64x128xf32> to vector<64x128xf32>
    %cst_261 = arith.constant dense<0.000000e+00> : vector<16x128xf32>
    %255 = tpu.matmul %252, %254, %cst_261 {dimension_numbers = #tpu.dot_dimension_numbers<[1], [0], [0], [1], [0, 0, 1, 1], [], []>} : vector<16x64xf32>, vector<64x128xf32>, vector<16x128xf32> -> vector<16x128xf32>
    %256 = arith.addf %250, %255 : vector<16x128xf32>
    %c3_262 = arith.constant 3 : index
    %c3_263 = arith.constant 3 : index
    %c0_264 = arith.constant 0 : index
    %257 = tpu.strided_load %arg12[%c3_262, %c3_263, %c0_264] {strides = array<i32: 2, 2, 1>} : memref<10x10x64xf32, #tpu.memory_space<vmem>>, vector<4x4x64xf32>
    %258 = vector.shape_cast %257 : vector<4x4x64xf32> to vector<16x64xf32>
    %c15_265 = arith.constant 15 : index
    %c0_266 = arith.constant 0 : index
    %c0_267 = arith.constant 0 : index
    %259 = vector.load %arg6[%c15_265, %c0_266, %c0_267] : memref<16x64x128xf32, #tpu.memory_space<vmem>>, vector<1x64x128xf32>
    %260 = vector.shape_cast %259 : vector<1x64x128xf32> to vector<64x128xf32>
    %cst_268 = arith.constant dense<0.000000e+00> : vector<16x128xf32>
    %261 = tpu.matmul %258, %260, %cst_268 {dimension_numbers = #tpu.dot_dimension_numbers<[1], [0], [0], [1], [0, 0, 1, 1], [], []>} : vector<16x64xf32>, vector<64x128xf32>, vector<16x128xf32> -> vector<16x128xf32>
    %262 = arith.addf %256, %261 : vector<16x128xf32>
    %c0_269 = arith.constant 0 : index
    %c0_270 = arith.constant 0 : index
    %263 = vector.load %arg7[%c0_269, %c0_270] : memref<1x128xf32, #tpu.memory_space<vmem>>, vector<1x128xf32>
    %264 = vector.broadcast %263 : vector<1x128xf32> to vector<16x128xf32>
    %265 = arith.addf %262, %264 : vector<16x128xf32>
    %cst_271 = arith.constant dense<0.000000e+00> : vector<128xf32>
    %266 = vector.multi_reduction <add>, %265, %cst_271 [0] : vector<16x128xf32> to vector<128xf32>
    %267 = vector.shape_cast %266 : vector<128xf32> to vector<1x128xf32>
    %cst_272 = arith.constant 1.600000e+01 : f32
    %268 = vector.broadcast %cst_272 : f32 to vector<1x128xf32>
    %269 = arith.divf %267, %268 : vector<1x128xf32>
    %270 = vector.broadcast %269 : vector<1x128xf32> to vector<16x128xf32>
    %271 = arith.subf %265, %270 : vector<16x128xf32>
    %272 = arith.mulf %271, %271 : vector<16x128xf32>
    %cst_273 = arith.constant dense<0.000000e+00> : vector<128xf32>
    %273 = vector.multi_reduction <add>, %272, %cst_273 [0] : vector<16x128xf32> to vector<128xf32>
    %274 = vector.shape_cast %273 : vector<128xf32> to vector<1x128xf32>
    %cst_274 = arith.constant 1.600000e+01 : f32
    %275 = vector.broadcast %cst_274 : f32 to vector<1x128xf32>
    %276 = arith.divf %274, %275 : vector<1x128xf32>
    %cst_275 = arith.constant 9.99999974E-6 : f32
    %277 = vector.broadcast %cst_275 : f32 to vector<1x128xf32>
    %278 = arith.addf %276, %277 : vector<1x128xf32>
    %279 = math.rsqrt %278 : vector<1x128xf32>
    %280 = vector.broadcast %279 : vector<1x128xf32> to vector<16x128xf32>
    %281 = arith.mulf %271, %280 : vector<16x128xf32>
    %cst_276 = arith.constant 0.000000e+00 : f32
    %282 = vector.broadcast %cst_276 : f32 to vector<16x128xf32>
    %283 = arith.cmpf oge, %281, %282 : vector<16x128xf32>
    %cst_277 = arith.constant 2.000000e-01 : f32
    %284 = vector.broadcast %cst_277 : f32 to vector<16x128xf32>
    %285 = arith.mulf %284, %281 : vector<16x128xf32>
    %286 = arith.select %283, %281, %285 : vector<16x128xi1>, vector<16x128xf32>
    %c0_278 = arith.constant 0 : index
    %c0_279 = arith.constant 0 : index
    %287 = vector.load %arg8[%c0_278, %c0_279] : memref<16x128xf32, #tpu.memory_space<vmem>>, vector<16x128xf32>
    %288 = arith.mulf %286, %287 : vector<16x128xf32>
    %cst_280 = arith.constant dense<0.000000e+00> : vector<16xf32>
    %289 = vector.multi_reduction <add>, %288, %cst_280 [1] : vector<16x128xf32> to vector<16xf32>
    %290 = vector.shape_cast %289 : vector<16xf32> to vector<16x1xf32>
    %cst_281 = arith.constant dense<0.000000e+00> : vector<1xf32>
    %291 = vector.multi_reduction <add>, %290, %cst_281 [0] : vector<16x1xf32> to vector<1xf32>
    %292 = vector.shape_cast %291 : vector<1xf32> to vector<1x1xf32>
    %c0_282 = arith.constant 0 : index
    %c0_283 = arith.constant 0 : index
    %293 = vector.load %arg9[%c0_282, %c0_283] : memref<1x1xf32, #tpu.memory_space<vmem>>, vector<1x1xf32>
    %294 = arith.addf %292, %293 : vector<1x1xf32>
    %c0_284 = arith.constant 0 : index
    %c0_285 = arith.constant 0 : index
    %c0_286 = arith.constant 0 : index
    %295 = vector.load %arg10[%c0_284, %c0_285, %c0_286] : memref<1x1x1xf32, #tpu.memory_space<vmem>>, vector<1x1x1xf32>
    %296 = vector.shape_cast %295 : vector<1x1x1xf32> to vector<1x1xf32>
    %297 = vector.shape_cast %294 : vector<1x1xf32> to vector<1x1x1xf32>
    tpu.vector_store %arg10[%c0_284, %c0_285, %c0_286], %297 {strides = array<i32>} : memref<1x1x1xf32, #tpu.memory_space<vmem>>, vector<1x1x1xf32>,
    return
  }
  func.func @transform_0(%arg0: i32) -> (i32, i32, i32, i32) {
    %c0_i32 = arith.constant 0 : i32
    %c0_i32_0 = arith.constant 0 : i32
    %c0_i32_1 = arith.constant 0 : i32
    %c0_i32_2 = arith.constant 0 : i32
    return %arg0, %c0_i32, %c0_i32_0, %c0_i32_1 : i32, i32, i32, i32
  }
  func.func @transform_1(%arg0: i32) -> (i32, i32, i32) {
    %c0_i32 = arith.constant 0 : i32
    %c0_i32_0 = arith.constant 0 : i32
    %c0_i32_1 = arith.constant 0 : i32
    %c0_i32_2 = arith.constant 0 : i32
    return %c0_i32, %c0_i32_0, %c0_i32_1 : i32, i32, i32
  }
  func.func @transform_2(%arg0: i32) -> (i32, i32) {
    %c0_i32 = arith.constant 0 : i32
    %c0_i32_0 = arith.constant 0 : i32
    %c0_i32_1 = arith.constant 0 : i32
    return %c0_i32, %c0_i32_0 : i32, i32
  }
  func.func @transform_3(%arg0: i32) -> (i32, i32, i32) {
    %c0_i32 = arith.constant 0 : i32
    %c0_i32_0 = arith.constant 0 : i32
    %c0_i32_1 = arith.constant 0 : i32
    %c0_i32_2 = arith.constant 0 : i32
    return %c0_i32, %c0_i32_0, %c0_i32_1 : i32, i32, i32
  }
  func.func @transform_4(%arg0: i32) -> (i32, i32) {
    %c0_i32 = arith.constant 0 : i32
    %c0_i32_0 = arith.constant 0 : i32
    %c0_i32_1 = arith.constant 0 : i32
    return %c0_i32, %c0_i32_0 : i32, i32
  }
  func.func @transform_5(%arg0: i32) -> (i32, i32, i32) {
    %c0_i32 = arith.constant 0 : i32
    %c0_i32_0 = arith.constant 0 : i32
    %c0_i32_1 = arith.constant 0 : i32
    %c0_i32_2 = arith.constant 0 : i32
    return %c0_i32, %c0_i32_0, %c0_i32_1 : i32, i32, i32
  }
  func.func @transform_6(%arg0: i32) -> (i32, i32) {
    %c0_i32 = arith.constant 0 : i32
    %c0_i32_0 = arith.constant 0 : i32
    %c0_i32_1 = arith.constant 0 : i32
    return %c0_i32, %c0_i32_0 : i32, i32
  }
  func.func @transform_7(%arg0: i32) -> (i32, i32) {
    %c0_i32 = arith.constant 0 : i32
    %c0_i32_0 = arith.constant 0 : i32
    %c0_i32_1 = arith.constant 0 : i32
    return %c0_i32, %c0_i32_0 : i32, i32
  }
  func.func @transform_8(%arg0: i32) -> (i32, i32) {
    %c0_i32 = arith.constant 0 : i32
    %c0_i32_0 = arith.constant 0 : i32
    %c0_i32_1 = arith.constant 0 : i32
    return %c0_i32, %c0_i32_0 : i32, i32
  }
  func.func @transform_9(%arg0: i32) -> (i32, i32, i32) {
    %c0_i32 = arith.constant 0 : i32
    %c0_i32_0 = arith.constant 0 : i32
    %c0_i32_1 = arith.constant 0 : i32
    return %arg0, %c0_i32, %c0_i32_0 : i32, i32, i32
  }
}

</mosaic_0001>

<bundles_post_ra>
// kernel: tpu_custom_call.1
= control target key start
LH: loop header
LB: loop body
LE: loop exit
PB: predicated region body
PF: predicated region fallthrough
CT: control target
= control target key end

     0   :  { %s10283_s0 = inlined_call_operand.vmem [shape: f32[2,17,17,12], index: 0, kind: input, shape index: {}]   ;;  %s10284_s1 = inlined_call_operand.vmem [shape: f32[4,12,32], index: 1, kind: input, shape index: {}]   ;;  %s10285_s2 = inlined_call_operand.vmem [shape: f32[1,32], index: 2, kind: input, shape index: {}]   ;;  %s10286_s3 = inlined_call_operand.hbm [shape: f32[16,32,64], index: 3, kind: input, shape index: {}]   ;;  %s10287_s4 = inlined_call_operand.vmem [shape: f32[1,64], index: 4, kind: input, shape index: {}]   ;;  %s10288_s5 = inlined_call_operand.vmem [shape: f32[16,64,128], index: 5, kind: input, shape index: {}]   ;;  %s10289_s6 = inlined_call_operand.vmem [shape: f32[1,128], index: 6, kind: input, shape index: {}]   ;;  %s10290_s7 = inlined_call_operand.vmem [shape: f32[16,128], index: 7, kind: input, shape index: {}]   ;;  %s10291_s8 = inlined_call_operand.<no memory space> [shape: f32[1,1], index: 8, kind: input, shape index: {}]   ;;  %s10292_s9 = inlined_call_operand.vmem [shape: f32[2,1,1], index: 9, kind: output, shape index: {}]  }
   0x1   :  { %v14_v0 = vstv %s10291_s8 }
   0x2   :  { %15 = vst [vmem:[#allocation4] sm:$0x1] %v14_v0 }
   0x3   :  { %16 = vsyncpa [#allocation6], 0  ;;  %s8572_s11 = smov 0  }
   0x4 LB: > { %s6635_s12 = sadd.s32 4294967295, %s8513_s11   ;;  %p6637_p0 = scmp.ge.s32.totalorder %s8513_s11, 1  ;;  %s8513_s11 = sphi %s8572_s11, %s22_s11  }
   0x5   : > { %p247_p1 = scmp.lt.s32.totalorder %s8513_s11, 3  ;;  %s8515_s13 = smov [#allocation5]  }
   0x6   : > { %s265_s14 = sshll.u32 %s8515_s13, 4  ;;  %p8459_p3 = scmp.eq.s32.totalorder %s6635_s12, 0  ;;  %s266_s14 = int_to_ptr.vmem [resolvable:$true] %s265_s14 }
   0x7   : > { %p8580_p2 = pnand %p6637_p0, %p247_p1  ;;  %s8488_s8 = scalar_lea.vmem %s266_s14, 8192 }
   0x8   : > { %p8489_p7 = scmp.ne.s32.totalorder %s266_s14, %s8488_s8  ;;  %p8496_p10 = scmp.lt.s32.totalorder %s266_s14, %s266_s14 }
   0x9   : > { %p8455_p4 = pneg %p8580_p2  ;;  %p8497_p11 = scmp.lt.s32.totalorder %s8488_s8, %s8488_s8 }
   0xb   : > { %p8456_p5 = pnand %p8459_p3, %p8455_p4  ;;  %p8498_p12 = por %p8497_p11, %p8496_p10 }
   0xd   : > { %p8479_p6 = pneg %p8456_p5 }
   0xf   : > { %p8491_p8 = pnand %p8489_p7, %p8479_p6 }
  0x11   : > { %p8492_p9 = pneg %p8491_p8 }
  0x13   : > { %p8499_p13 = pnand %p8498_p12, %p8492_p9 }
  0x15   : > { %8502 = shalt.err (!%p8499_p13)
}
  0x16   : > { %s8516_s16 = smov 128   ;;  %s8517_s17 = smov 8  }
  0x17   : > { %8458 = dma.hbm_to_vmem [thread:$0]  (!%p8456_p5), %s10286_s3, 8192, %s266_s14, [#allocation6], %s8516_s16, %s8516_s16, %s8517_s17  }
  0x18   : > { %304 = sbr.rel (%p8580_p2) target bundleno = 1311 (0x51f), region = 56 }
  0x1d   : > { %8508 = dma.done.wait (%p8459_p3), [#allocation6], 8192  }
  0x1e   : > { %8510 = vsyncadd (%p8459_p3), [#allocation6], 4294959104  ;;  %p338_p0 = scmp.lt.s32.totalorder %s6635_s12, 1  ;;  %vm590_vm0 = vcmask 1043456   ;;  %v6644_v1 = vld [vmem:[%s10284_s1 + $0x18] sm:$0xf] }
  0x1f   : > { %v457_v2 = vld [vmem:[%s10284_s1 + $0x8] sm:$0xf]  ;;  %v6643_v3 = vld [vmem:[%s10284_s1 + $0x10] sm:$0xff]  ;;  %7618 = vmatprep.subr.msk.mxu0 %vm590_vm0, %v6644_v1  ;;  %v456_v4 = vld [vmem:[%s10284_s1] sm:$0xff]  ;;  %vm493_vm1 = vcmask 97280   ;;  %vm346_vm2 = vcmask 261120  }
  0x20   : > { %s10340_s12 = smov (!%p338_p0, %s6635_s12), 1  ;;  %7670 = vmatprep.subr.msk.mxu1 %vm590_vm0, %v457_v2  ;;  %7619 = vmatpush3.msk.msra.mxu0 %vm590_vm0, %v6644_v1  ;;  %v6744_v9 = vld [vmem:[%s10284_s1 + $0x28] sm:$0xf]  ;;  %v6811_v10 = vld [vmem:[%s10284_s1 + $0x38] sm:$0xf]  ;;  %v6743_v21 = vld [vmem:[%s10284_s1 + $0x20] sm:$0xff] }
  0x21   : > { %s8450_s20 = smul.u32 408, %s10340_s12  ;;  %7671 = vmatpush3.msk.msra.mxu1 %vm590_vm0, %v457_v2  ;;  %7620 = vmatprep.subr.mxu0 %v6643_v3  ;;  %v6810_v22 = vld [vmem:[%s10284_s1 + $0x30] sm:$0xff]  ;;  %vm349_vm3 = vcmask 254976   ;;  %s345_s28 = scalar_lea.vmem %s10292_s9, %s10340_s12 }
  0x22   : > { %7672 = vmatprep.subr.mxu1 %v456_v4  ;;  %7621 = vmatpush3.msra.mxu0 %v6643_v3 }
  0x23   : > { %s8600_s23 = scalar_lea.vmem %s10283_s0, %s8450_s20  ;;  %7673 = vmatpush3.msra.mxu1 %v456_v4  ;;  %7722 = vmatprep.subr.msk.mxu0 %vm590_vm0, %v6744_v9 }
  0x24   : > { %v458_v5 = vld [vmem:[%s8600_s23 + $0x1] sm:$0xff]  ;;  %v459_v7 = vld [vmem:[%s8600_s23 + $0x9] sm:$0xff]  ;;  %v8631_v11 = vld [vmem:[%s8600_s23 + $0x19] sm:$0xff]  ;;  %7774 = vmatprep.subr.msk.mxu1 %vm590_vm0, %v6811_v10 }
  0x25   : > { %v424_v6 = vld [vmem:[%s8600_s23] sm:$0xff]  ;;  %v425_v8 = vld [vmem:[%s8600_s23 + $0x8] sm:$0xff]  ;;  %7622 = vmatprep.mubr.msk.f32.mxu0 %vm493_vm1, %v458_v5  ;;  %v8636_v12 = vld [vmem:[%s8600_s23 + $0x18] sm:$0xff] }
  0x26   : > { %7674 = vmatprep.mubr.msk.f32.mxu1 %vm493_vm1, %v424_v6  ;;  %7623 = vmatmul.mubr.msk.f32.vlgmr.msra.gmra.mxu0 %vm493_vm1, %v459_v7  ;;  %v8641_v13 = vld [vmem:[%s8600_s23 + $0x21] sm:$0xff]  ;;  %v8650_v15 = vld [vmem:[%s8600_s23 + $0x31] sm:$0xff]  ;;  %v8667_v17 = vld [vmem:[%s8600_s23 + $0x39] sm:$0xff] }
  0x27   : > { %7675 = vmatmul.mubr.msk.f32.vlgmr.msra.gmra.mxu1 %vm493_vm1, %v425_v8  ;;  %v8644_v14 = vld [vmem:[%s8600_s23 + $0x20] sm:$0xff]  ;;  %7723 = vmatpush3.msk.msra.mxu0 %vm590_vm0, %v6744_v9  ;;  %v8653_v16 = vld [vmem:[%s8600_s23 + $0x30] sm:$0xff]  ;;  %v8670_v18 = vld [vmem:[%s8600_s23 + $0x38] sm:$0xff] }
  0x28   : > { %7625 = vmatprep.mubr.msk.f32.mxu0 %vm493_vm1, %v8631_v11  ;;  %7677 = vmatprep.mubr.msk.f32.mxu1 %vm493_vm1, %v8636_v12  ;;  %v8673_v19 = vld [vmem:[%s8600_s23 + $0x49] sm:$0xff]  ;;  %v8693_v23 = vld [vmem:[%s8600_s23 + $0x51] sm:$0xff]  ;;  %v8699_v25 = vld [vmem:[%s8600_s23 + $0x61] sm:$0xff] }
  0x29   : > { %7775 = vmatpush3.msk.msra.mxu1 %vm590_vm0, %v6811_v10  ;;  %v8676_v20 = vld [vmem:[%s8600_s23 + $0x48] sm:$0xff]  ;;  %v8696_v24 = vld [vmem:[%s8600_s23 + $0x50] sm:$0xff]  ;;  %v8702_v26 = vld [vmem:[%s8600_s23 + $0x60] sm:$0xff]  ;;  %7724 = vmatprep.subr.mxu0 %v6743_v21 }
  0x2a   : > { %7626 = vmatmul.mubr.msk.f32.gmra.mxu0 %vm493_vm1, %v8641_v13  ;;  %7776 = vmatprep.subr.mxu1 %v6810_v22  ;;  %v8713_v27 = vld [vmem:[%s8600_s23 + $0x69] sm:$0xff]  ;;  %v8719_v29 = vld [vmem:[%s8600_s23 + $0x79] sm:$0xff]  ;;  %v8733_v31 = vld [vmem:[%s8600_s23 + $0x81] sm:$0xff] }
  0x2b   : > { %7678 = vmatmul.mubr.msk.f32.gmra.mxu1 %vm493_vm1, %v8644_v14  ;;  %7628 = vmatprep.mubr.msk.f32.mxu0 %vm493_vm1, %v8650_v15  ;;  %v8716_v28 = vld [vmem:[%s8600_s23 + $0x68] sm:$0xff]  ;;  %v8722_v30 = vld [vmem:[%s8600_s23 + $0x78] sm:$0xff]  ;;  %v8736_v32 = vld [vmem:[%s8600_s23 + $0x80] sm:$0xff] }
  0x2c   : > { %7680 = vmatprep.mubr.msk.f32.mxu1 %vm493_vm1, %v8653_v16  ;;  %7725 = vmatpush3.msra.mxu0 %v6743_v21  ;;  %v8739_v33 = vld [vmem:[%s8600_s23 + $0x91] sm:$0xff]  ;;  %v8753_v35 = vld [vmem:[%s8600_s23 + $0x99] sm:$0xff]  ;;  %v8759_v37 = vld [vmem:[%s8600_s23 + $0xa9] sm:$0xff] }
  0x2d   : > { %7777 = vmatpush3.msra.mxu1 %v6810_v22  ;;  %v8742_v34 = vld [vmem:[%s8600_s23 + $0x90] sm:$0xff]  ;;  %v8756_v36 = vld [vmem:[%s8600_s23 + $0x98] sm:$0xff]  ;;  %v8762_v38 = vld [vmem:[%s8600_s23 + $0xa8] sm:$0xff] }
  0x2e   : > { %7629 = vmatmul.mubr.msk.f32.gmra.mxu0 %vm493_vm1, %v8667_v17  ;;  %v8773_v39 = vld [vmem:[%s8600_s23 + $0xb1] sm:$0xff]  ;;  %v8779_v41 = vld [vmem:[%s8600_s23 + $0xc1] sm:$0xff]  ;;  %v8793_v43 = vld [vmem:[%s8600_s23 + $0xc9] sm:$0xff] }
  0x2f   : > { %7681 = vmatmul.mubr.msk.f32.gmra.mxu1 %vm493_vm1, %v8670_v18  ;;  %7631 = vmatprep.mubr.msk.f32.mxu0 %vm493_vm1, %v8673_v19  ;;  %v8776_v40 = vld [vmem:[%s8600_s23 + $0xb0] sm:$0xff]  ;;  %v8782_v42 = vld [vmem:[%s8600_s23 + $0xc0] sm:$0xff]  ;;  %v8796_v44 = vld [vmem:[%s8600_s23 + $0xc8] sm:$0xff] }
  0x30   : > { %7683 = vmatprep.mubr.msk.f32.mxu1 %vm493_vm1, %v8676_v20  ;;  %v8799_v45 = vld [vmem:[%s8600_s23 + $0xd9] sm:$0xff]  ;;  %v8813_v47 = vld [vmem:[%s8600_s23 + $0xe1] sm:$0xff]  ;;  %v8819_v49 = vld [vmem:[%s8600_s23 + $0xf1] sm:$0xff] }
  0x31   : > { %v8802_v46 = vld [vmem:[%s8600_s23 + $0xd8] sm:$0xff]  ;;  %v8816_v48 = vld [vmem:[%s8600_s23 + $0xe0] sm:$0xff]  ;;  %v8822_v50 = vld [vmem:[%s8600_s23 + $0xf0] sm:$0xff] }
  0x32   : > { %7632 = vmatmul.mubr.msk.f32.gmra.mxu0 %vm493_vm1, %v8693_v23  ;;  %v8833_v51 = vld [vmem:[%s8600_s23 + $0xf9] sm:$0xff]  ;;  %v8839_v53 = vld [vmem:[%s8600_s23 + $0x109] sm:$0xff]  ;;  %v8853_v55 = vld [vmem:[%s8600_s23 + $0x111] sm:$0xff] }
  0x33   : > { %7684 = vmatmul.mubr.msk.f32.gmra.mxu1 %vm493_vm1, %v8696_v24  ;;  %7634 = vmatprep.mubr.msk.f32.mxu0 %vm493_vm1, %v8699_v25  ;;  %v8836_v52 = vld [vmem:[%s8600_s23 + $0xf8] sm:$0xff]  ;;  %v8842_v54 = vld [vmem:[%s8600_s23 + $0x108] sm:$0xff]  ;;  %v8856_v56 = vld [vmem:[%s8600_s23 + $0x110] sm:$0xff] }
  0x34   : > { %7686 = vmatprep.mubr.msk.f32.mxu1 %vm493_vm1, %v8702_v26  ;;  %v8859_v57 = vld [vmem:[%s8600_s23 + $0x121] sm:$0xff]  ;;  %v8873_v59 = vld [vmem:[%s8600_s23 + $0x129] sm:$0xff]  ;;  %v8879_v61 = vld [vmem:[%s8600_s23 + $0x139] sm:$0xff] }
  0x35   : > { %v8862_v58 = vld [vmem:[%s8600_s23 + $0x120] sm:$0xff]  ;;  %v8876_v60 = vld [vmem:[%s8600_s23 + $0x128] sm:$0xff]  ;;  %v8882_v62 = vld [vmem:[%s8600_s23 + $0x138] sm:$0xff] }
  0x36   : > { %7635 = vmatmul.mubr.msk.f32.gmra.mxu0 %vm493_vm1, %v8713_v27  ;;  %v8893_v63 = vld [vmem:[%s8600_s23 + $0x141] sm:$0xff]  ;;  %v8899_v1 = vld [vmem:[%s8600_s23 + $0x151] sm:$0xff]  ;;  %v8913_v3 = vld [vmem:[%s8600_s23 + $0x159] sm:$0xff] }
  0x37   : > { %7687 = vmatmul.mubr.msk.f32.gmra.mxu1 %vm493_vm1, %v8716_v28  ;;  %7637 = vmatprep.mubr.msk.f32.mxu0 %vm493_vm1, %v8719_v29  ;;  %v8896_v0 = vld [vmem:[%s8600_s23 + $0x140] sm:$0xff]  ;;  %v8902_v2 = vld [vmem:[%s8600_s23 + $0x150] sm:$0xff]  ;;  %v8916_v4 = vld [vmem:[%s8600_s23 + $0x158] sm:$0xff] }
  0x38   : > { %7689 = vmatprep.mubr.msk.f32.mxu1 %vm493_vm1, %v8722_v30  ;;  %v8919_v5 = vld [vmem:[%s8600_s23 + $0x169] sm:$0xff]  ;;  %v8933_v7 = vld [vmem:[%s8600_s23 + $0x171] sm:$0xff]  ;;  %v6741_v9 = vld [vmem:[%s8600_s23 + $0x180] sm:$0xff] }
  0x39   : > { %v8922_v6 = vld [vmem:[%s8600_s23 + $0x168] sm:$0xff]  ;;  %v8936_v8 = vld [vmem:[%s8600_s23 + $0x170] sm:$0xff] }
  0x3a   : > { %7638 = vmatmul.mubr.msk.f32.gmra.mxu0 %vm493_vm1, %v8733_v31  ;;  %v6808_v10 = vld [vmem:[%s8600_s23 + $0x181] sm:$0xff]  ;;  %v2109_v21 = vld [vmem:[#allocation5] sm:$0xff] }
  0x3b   : > { %7690 = vmatmul.mubr.msk.f32.gmra.mxu1 %vm493_vm1, %v8736_v32  ;;  %7640 = vmatprep.mubr.msk.f32.mxu0 %vm493_vm1, %v8739_v33 }
  0x3c   : > { %7692 = vmatprep.mubr.msk.f32.mxu1 %vm493_vm1, %v8742_v34 }
  0x3e   : > { %7641 = vmatmul.mubr.msk.f32.gmra.mxu0 %vm493_vm1, %v8753_v35 }
  0x3f   : > { %7693 = vmatmul.mubr.msk.f32.gmra.mxu1 %vm493_vm1, %v8756_v36  ;;  %7643 = vmatprep.mubr.msk.f32.mxu0 %vm493_vm1, %v8759_v37 }
  0x40   : > { %7695 = vmatprep.mubr.msk.f32.mxu1 %vm493_vm1, %v8762_v38 }
  0x42   : > { %7644 = vmatmul.mubr.msk.f32.gmra.mxu0 %vm493_vm1, %v8773_v39 }
  0x43   : > { %7696 = vmatmul.mubr.msk.f32.gmra.mxu1 %vm493_vm1, %v8776_v40  ;;  %7646 = vmatprep.mubr.msk.f32.mxu0 %vm493_vm1, %v8779_v41 }
  0x44   : > { %7698 = vmatprep.mubr.msk.f32.mxu1 %vm493_vm1, %v8782_v42 }
  0x46   : > { %7647 = vmatmul.mubr.msk.f32.gmra.mxu0 %vm493_vm1, %v8793_v43 }
  0x47   : > { %7699 = vmatmul.mubr.msk.f32.gmra.mxu1 %vm493_vm1, %v8796_v44  ;;  %7649 = vmatprep.mubr.msk.f32.mxu0 %vm493_vm1, %v8799_v45 }
  0x48   : > { %7701 = vmatprep.mubr.msk.f32.mxu1 %vm493_vm1, %v8802_v46 }
  0x4a   : > { %7650 = vmatmul.mubr.msk.f32.gmra.mxu0 %vm493_vm1, %v8813_v47 }
  0x4b   : > { %7702 = vmatmul.mubr.msk.f32.gmra.mxu1 %vm493_vm1, %v8816_v48  ;;  %7652 = vmatprep.mubr.msk.f32.mxu0 %vm493_vm1, %v8819_v49 }
  0x4c   : > { %7704 = vmatprep.mubr.msk.f32.mxu1 %vm493_vm1, %v8822_v50 }
  0x4e   : > { %7653 = vmatmul.mubr.msk.f32.gmra.mxu0 %vm493_vm1, %v8833_v51 }
  0x4f   : > { %7705 = vmatmul.mubr.msk.f32.gmra.mxu1 %vm493_vm1, %v8836_v52  ;;  %7655 = vmatprep.mubr.msk.f32.mxu0 %vm493_vm1, %v8839_v53 }
  0x50   : > { %7707 = vmatprep.mubr.msk.f32.mxu1 %vm493_vm1, %v8842_v54 }
  0x52   : > { %7656 = vmatmul.mubr.msk.f32.gmra.mxu0 %vm493_vm1, %v8853_v55 }
  0x53   : > { %7708 = vmatmul.mubr.msk.f32.gmra.mxu1 %vm493_vm1, %v8856_v56  ;;  %7658 = vmatprep.mubr.msk.f32.mxu0 %vm493_vm1, %v8859_v57 }
  0x54   : > { %7710 = vmatprep.mubr.msk.f32.mxu1 %vm493_vm1, %v8862_v58 }
  0x56   : > { %7659 = vmatmul.mubr.msk.f32.gmra.mxu0 %vm493_vm1, %v8873_v59 }
  0x57   : > { %7711 = vmatmul.mubr.msk.f32.gmra.mxu1 %vm493_vm1, %v8876_v60  ;;  %7661 = vmatprep.mubr.msk.f32.mxu0 %vm493_vm1, %v8879_v61 }
  0x58   : > { %7713 = vmatprep.mubr.msk.f32.mxu1 %vm493_vm1, %v8882_v62 }
  0x5a   : > { %7662 = vmatmul.mubr.msk.f32.gmra.mxu0 %vm493_vm1, %v8893_v63 }
  0x5b   : > { %7714 = vmatmul.mubr.msk.f32.gmra.mxu1 %vm493_vm1, %v8896_v0  ;;  %7664 = vmatprep.mubr.msk.f32.mxu0 %vm493_vm1, %v8899_v1 }
  0x5c   : > { %7716 = vmatprep.mubr.msk.f32.mxu1 %vm493_vm1, %v8902_v2 }
  0x5e   : > { %7665 = vmatmul.mubr.msk.f32.gmra.mxu0 %vm493_vm1, %v8913_v3 }
  0x5f   : > { %7717 = vmatmul.mubr.msk.f32.gmra.mxu1 %vm493_vm1, %v8916_v4  ;;  %7667 = vmatprep.mubr.msk.f32.mxu0 %vm493_vm1, %v8919_v5 }
  0x60   : > { %7719 = vmatprep.mubr.msk.f32.mxu1 %vm493_vm1, %v8922_v6 }
  0x62   : > { %7668 = vmatmul.mubr.msk.f32.gmra.mxu0 %vm493_vm1, %v8933_v7 }
  0x63   : > { %7720 = vmatmul.mubr.msk.f32.gmra.mxu1 %vm493_vm1, %v8936_v8  ;;  %7726 = vmatprep.mubr.msk.f32.mxu0 %vm493_vm1, %v8636_v12  ;;  %v6809_v12 = vld [vmem:[%s8600_s23 + $0x189] sm:$0xff] }
  0x64   : > { %7778 = vmatprep.mubr.msk.f32.mxu1 %vm493_vm1, %v8631_v11  ;;  %v6742_v11 = vld [vmem:[%s8600_s23 + $0x188] sm:$0xff] }
  0x66   : > { %7727 = vmatmul.mubr.msk.f32.vlgmr.msra.gmra.mxu0 %vm493_vm1, %v8644_v14  ;;  %v2112_v14 = vld [vmem:[#allocation5 + $0x18] sm:$0xff] }
  0x67   : > { %7779 = vmatmul.mubr.msk.f32.vlgmr.msra.gmra.mxu1 %vm493_vm1, %v8641_v13  ;;  %7729 = vmatprep.mubr.msk.f32.mxu0 %vm493_vm1, %v8653_v16  ;;  %v2133_v13 = vld [vmem:[#allocation5 + $0x38] sm:$0xff]  ;;  %v2132_v16 = vld [vmem:[#allocation5 + $0x30] sm:$0xff] }
  0x68   : > { %7781 = vmatprep.mubr.msk.f32.mxu1 %vm493_vm1, %v8650_v15  ;;  %7826 = vmatprep.subr.mxu0 %v2133_v13  ;;  %v10293_v15 = vmov 0.0  }
  0x69   : > { %7827 = vmatpush3.msra.mxu0 %v2133_v13  ;;  %7846 = vmatprep.subr.mxu1 %v2112_v14  ;;  %352 = vst.msk [vmem:[#allocation2 + $0x20] sm:$0xff] %vm346_vm2, %v10293_v15  ;;  %347 = vst.msk [vmem:[#allocation2] sm:$0xff] %vm346_vm2, %v10293_v15 }
  0x6a   : > { %7730 = vmatmul.mubr.msk.f32.gmra.mxu0 %vm493_vm1, %v8670_v18  ;;  %7847 = vmatpush3.msra.mxu1 %v2112_v14  ;;  %353 = vst.msk [vmem:[#allocation2 + $0x28] sm:$0x3] %vm349_vm3, %v10293_v15  ;;  %350 = vst.msk [vmem:[#allocation2 + $0x10] sm:$0x3] %vm349_vm3, %v10293_v15  ;;  %v2131_v18 = vld [vmem:[#allocation5 + $0x28] sm:$0xff] }
  0x6b   : > { %7782 = vmatmul.mubr.msk.f32.gmra.mxu1 %vm493_vm1, %v8667_v17  ;;  %7732 = vmatprep.mubr.msk.f32.mxu0 %vm493_vm1, %v8676_v20  ;;  %348 = vst.msk [vmem:[#allocation2 + $0x8] sm:$0xff] %vm346_vm2, %v10293_v15  ;;  %351 = vst.msk [vmem:[#allocation2 + $0x18] sm:$0xff] %vm346_vm2, %v10293_v15  ;;  %v2111_v17 = vld [vmem:[#allocation5 + $0x10] sm:$0xff]  ;;  %v2130_v20 = vld [vmem:[#allocation5 + $0x20] sm:$0xff] }
  0x6c   : > { %7784 = vmatprep.mubr.msk.f32.mxu1 %vm493_vm1, %v8673_v19  ;;  %354 = vst.msk [vmem:[#allocation2 + $0x30] sm:$0xff] %vm346_vm2, %v10293_v15  ;;  %355 = vst.msk [vmem:[#allocation2 + $0x38] sm:$0xff] %vm346_vm2, %v10293_v15  ;;  %7828 = vmatprep.subr.mxu0 %v2132_v16  ;;  %v2110_v19 = vld [vmem:[#allocation5 + $0x8] sm:$0xff] }
  0x6d   : > { %356 = vst.msk [vmem:[#allocation2 + $0x40] sm:$0x3] %vm349_vm3, %v10293_v15  ;;  %359 = vst.msk [vmem:[#allocation2 + $0x58] sm:$0x3] %vm349_vm3, %v10293_v15  ;;  %7848 = vmatprep.subr.mxu1 %v2111_v17  ;;  %7829 = vmatpush3.msra.mxu0 %v2132_v16 }
  0x6e   : > { %7733 = vmatmul.mubr.msk.f32.gmra.mxu0 %vm493_vm1, %v8696_v24  ;;  %357 = vst.msk [vmem:[#allocation2 + $0x48] sm:$0xff] %vm346_vm2, %v10293_v15  ;;  %358 = vst.msk [vmem:[#allocation2 + $0x50] sm:$0xff] %vm346_vm2, %v10293_v15  ;;  %7849 = vmatpush3.msra.mxu1 %v2111_v17 }
  0x6f   : > { %7785 = vmatmul.mubr.msk.f32.gmra.mxu1 %vm493_vm1, %v8693_v23  ;;  %7735 = vmatprep.mubr.msk.f32.mxu0 %vm493_vm1, %v8702_v26  ;;  %360 = vst.msk [vmem:[#allocation2 + $0x60] sm:$0xff] %vm346_vm2, %v10293_v15  ;;  %361 = vst.msk [vmem:[#allocation2 + $0x68] sm:$0xff] %vm346_vm2, %v10293_v15 }
  0x70   : > { %7787 = vmatprep.mubr.msk.f32.mxu1 %vm493_vm1, %v8699_v25  ;;  %362 = vst.msk [vmem:[#allocation2 + $0x70] sm:$0x3] %vm349_vm3, %v10293_v15  ;;  %365 = vst.msk [vmem:[#allocation2 + $0x88] sm:$0x3] %vm349_vm3, %v10293_v15  ;;  %7830 = vmatprep.subr.mxu0 %v2131_v18 }
  0x71   : > { %363 = vst.msk [vmem:[#allocation2 + $0x78] sm:$0xff] %vm346_vm2, %v10293_v15  ;;  %364 = vst.msk [vmem:[#allocation2 + $0x80] sm:$0xff] %vm346_vm2, %v10293_v15  ;;  %7850 = vmatprep.subr.mxu1 %v2110_v19  ;;  %7831 = vmatpush3.msra.mxu0 %v2131_v18 }
  0x72   : > { %7736 = vmatmul.mubr.msk.f32.gmra.mxu0 %vm493_vm1, %v8716_v28  ;;  %366 = vst.msk [vmem:[#allocation2 + $0x90] sm:$0xff] %vm346_vm2, %v10293_v15  ;;  %367 = vst.msk [vmem:[#allocation2 + $0x98] sm:$0xff] %vm346_vm2, %v10293_v15  ;;  %7851 = vmatpush3.msra.mxu1 %v2110_v19  ;;  %v2114_v22 = vld [vmem:[#allocation2 + $0x1] ss:$2 sm:$0xff]  ;;  %v2094_v23 = vld [vmem:[#allocation2] ss:$2 sm:$0xff] }
  0x73   : > { %7788 = vmatmul.mubr.msk.f32.gmra.mxu1 %vm493_vm1, %v8713_v27  ;;  %7738 = vmatprep.mubr.msk.f32.mxu0 %vm493_vm1, %v8722_v30  ;;  %368 = vst.msk [vmem:[#allocation2 + $0xa0] sm:$0x3] %vm349_vm3, %v10293_v15  ;;  %371 = vst.msk [vmem:[#allocation2 + $0xb8] sm:$0x3] %vm349_vm3, %v10293_v15  ;;  %v9192_v30 = vld [vmem:[#allocation5 + $0x58] sm:$0xff] }
  0x74   : > { %7790 = vmatprep.mubr.msk.f32.mxu1 %vm493_vm1, %v8719_v29  ;;  %369 = vst.msk [vmem:[#allocation2 + $0xa8] sm:$0xff] %vm346_vm2, %v10293_v15  ;;  %370 = vst.msk [vmem:[#allocation2 + $0xb0] sm:$0xff] %vm346_vm2, %v10293_v15  ;;  %7832 = vmatprep.subr.mxu0 %v2130_v20 }
  0x75   : > { %372 = vst.msk [vmem:[#allocation2 + $0xc0] sm:$0xff] %vm346_vm2, %v10293_v15  ;;  %373 = vst.msk [vmem:[#allocation2 + $0xc8] sm:$0xff] %vm346_vm2, %v10293_v15  ;;  %7852 = vmatprep.subr.mxu1 %v2109_v21  ;;  %7833 = vmatpush3.msra.mxu0 %v2130_v20 }
  0x76   : > { %7739 = vmatmul.mubr.msk.f32.gmra.mxu0 %vm493_vm1, %v8736_v32  ;;  %374 = vst.msk [vmem:[#allocation2 + $0xd0] sm:$0x3] %vm349_vm3, %v10293_v15  ;;  %377 = vst.msk [vmem:[#allocation2 + $0xe8] sm:$0x3] %vm349_vm3, %v10293_v15  ;;  %7853 = vmatpush3.msra.mxu1 %v2109_v21 }
  0x77   : > { %7791 = vmatmul.mubr.msk.f32.gmra.mxu1 %vm493_vm1, %v8733_v31  ;;  %7741 = vmatprep.mubr.msk.f32.mxu0 %vm493_vm1, %v8742_v34  ;;  %375 = vst.msk [vmem:[#allocation2 + $0xd8] sm:$0xff] %vm346_vm2, %v10293_v15  ;;  %376 = vst.msk [vmem:[#allocation2 + $0xe0] sm:$0xff] %vm346_vm2, %v10293_v15  ;;  %v9194_v31 = vld [vmem:[#allocation5 + $0x78] sm:$0xff] }
  0x78   : > { %7793 = vmatprep.mubr.msk.f32.mxu1 %vm493_vm1, %v8739_v33  ;;  %378 = vst.msk [vmem:[#allocation2 + $0xf0] sm:$0xff] %vm346_vm2, %v10293_v15  ;;  %379 = vst.msk [vmem:[#allocation2 + $0xf8] sm:$0xff] %vm346_vm2, %v10293_v15  ;;  %7866 = vmatprep.subr.mxu0 %v9192_v30 }
  0x79   : > { %380 = vst.msk [vmem:[#allocation2 + $0x100] sm:$0x3] %vm349_vm3, %v10293_v15  ;;  %383 = vst.msk [vmem:[#allocation2 + $0x118] sm:$0x3] %vm349_vm3, %v10293_v15  ;;  %7886 = vmatprep.subr.mxu1 %v9194_v31 }
  0x7a   : > { %7742 = vmatmul.mubr.msk.f32.gmra.mxu0 %vm493_vm1, %v8756_v36  ;;  %381 = vst.msk [vmem:[#allocation2 + $0x108] sm:$0xff] %vm346_vm2, %v10293_v15  ;;  %382 = vst.msk [vmem:[#allocation2 + $0x110] sm:$0xff] %vm346_vm2, %v10293_v15 }
  0x7b   : > { %7794 = vmatmul.mubr.msk.f32.gmra.mxu1 %vm493_vm1, %v8753_v35  ;;  %7744 = vmatprep.mubr.msk.f32.mxu0 %vm493_vm1, %v8762_v38  ;;  %384 = vst.msk [vmem:[#allocation2 + $0x120] sm:$0xff] %vm346_vm2, %v10293_v15  ;;  %385 = vst.msk [vmem:[#allocation2 + $0x128] sm:$0xff] %vm346_vm2, %v10293_v15 }
  0x7c   : > { %7796 = vmatprep.mubr.msk.f32.mxu1 %vm493_vm1, %v8759_v37  ;;  %386 = vst.msk [vmem:[#allocation2 + $0x130] sm:$0x3] %vm349_vm3, %v10293_v15  ;;  %389 = vst.msk [vmem:[#allocation2 + $0x148] sm:$0x3] %vm349_vm3, %v10293_v15 }
  0x7d   : > { %387 = vst.msk [vmem:[#allocation2 + $0x138] sm:$0xff] %vm346_vm2, %v10293_v15  ;;  %388 = vst.msk [vmem:[#allocation2 + $0x140] sm:$0xff] %vm346_vm2, %v10293_v15 }
  0x7e   : > { %7745 = vmatmul.mubr.msk.f32.gmra.mxu0 %vm493_vm1, %v8776_v40  ;;  %390 = vst.msk [vmem:[#allocation2 + $0x150] sm:$0xff] %vm346_vm2, %v10293_v15  ;;  %391 = vst.msk [vmem:[#allocation2 + $0x158] sm:$0xff] %vm346_vm2, %v10293_v15 }
  0x7f   : > { %7797 = vmatmul.mubr.msk.f32.gmra.mxu1 %vm493_vm1, %v8773_v39  ;;  %7747 = vmatprep.mubr.msk.f32.mxu0 %vm493_vm1, %v8782_v42  ;;  %392 = vst.msk [vmem:[#allocation2 + $0x160] sm:$0x3] %vm349_vm3, %v10293_v15  ;;  %395 = vst.msk [vmem:[#allocation2 + $0x178] sm:$0x3] %vm349_vm3, %v10293_v15 }
  0x80   : > { %7799 = vmatprep.mubr.msk.f32.mxu1 %vm493_vm1, %v8779_v41  ;;  %393 = vst.msk [vmem:[#allocation2 + $0x168] sm:$0xff] %vm346_vm2, %v10293_v15  ;;  %394 = vst.msk [vmem:[#allocation2 + $0x170] sm:$0xff] %vm346_vm2, %v10293_v15 }
  0x81   : > { %396 = vst.msk [vmem:[#allocation2 + $0x180] sm:$0xff] %vm346_vm2, %v10293_v15  ;;  %397 = vst.msk [vmem:[#allocation2 + $0x188] sm:$0xff] %vm346_vm2, %v10293_v15 }
  0x82   : > { %7748 = vmatmul.mubr.msk.f32.gmra.mxu0 %vm493_vm1, %v8796_v44  ;;  %398 = vst.msk [vmem:[#allocation2 + $0x190] sm:$0x3] %vm349_vm3, %v10293_v15  ;;  %401 = vst.msk [vmem:[#allocation2 + $0x1a8] sm:$0x3] %vm349_vm3, %v10293_v15 }
  0x83   : > { %7800 = vmatmul.mubr.msk.f32.gmra.mxu1 %vm493_vm1, %v8793_v43  ;;  %7750 = vmatprep.mubr.msk.f32.mxu0 %vm493_vm1, %v8802_v46  ;;  %399 = vst.msk [vmem:[#allocation2 + $0x198] sm:$0xff] %vm346_vm2, %v10293_v15  ;;  %400 = vst.msk [vmem:[#allocation2 + $0x1a0] sm:$0xff] %vm346_vm2, %v10293_v15 }
  0x84   : > { %7802 = vmatprep.mubr.msk.f32.mxu1 %vm493_vm1, %v8799_v45 }
  0x86   : > { %7751 = vmatmul.mubr.msk.f32.gmra.mxu0 %vm493_vm1, %v8816_v48 }
  0x87   : > { %7803 = vmatmul.mubr.msk.f32.gmra.mxu1 %vm493_vm1, %v8813_v47  ;;  %7753 = vmatprep.mubr.msk.f32.mxu0 %vm493_vm1, %v8822_v50 }
  0x88   : > { %7805 = vmatprep.mubr.msk.f32.mxu1 %vm493_vm1, %v8819_v49 }
  0x8a   : > { %7754 = vmatmul.mubr.msk.f32.gmra.mxu0 %vm493_vm1, %v8836_v52 }
  0x8b   : > { %7806 = vmatmul.mubr.msk.f32.gmra.mxu1 %vm493_vm1, %v8833_v51  ;;  %7756 = vmatprep.mubr.msk.f32.mxu0 %vm493_vm1, %v8842_v54 }
  0x8c   : > { %7808 = vmatprep.mubr.msk.f32.mxu1 %vm493_vm1, %v8839_v53 }
  0x8e   : > { %7757 = vmatmul.mubr.msk.f32.gmra.mxu0 %vm493_vm1, %v8856_v56 }
  0x8f   : > { %7809 = vmatmul.mubr.msk.f32.gmra.mxu1 %vm493_vm1, %v8853_v55  ;;  %7759 = vmatprep.mubr.msk.f32.mxu0 %vm493_vm1, %v8862_v58 }
  0x90   : > { %7811 = vmatprep.mubr.msk.f32.mxu1 %vm493_vm1, %v8859_v57 }
  0x92   : > { %7760 = vmatmul.mubr.msk.f32.gmra.mxu0 %vm493_vm1, %v8876_v60 }
  0x93   : > { %7812 = vmatmul.mubr.msk.f32.gmra.mxu1 %vm493_vm1, %v8873_v59  ;;  %7762 = vmatprep.mubr.msk.f32.mxu0 %vm493_vm1, %v8882_v62 }
  0x94   : > { %7814 = vmatprep.mubr.msk.f32.mxu1 %vm493_vm1, %v8879_v61 }
  0x96   : > { %7763 = vmatmul.mubr.msk.f32.gmra.mxu0 %vm493_vm1, %v8896_v0 }
  0x97   : > { %7815 = vmatmul.mubr.msk.f32.gmra.mxu1 %vm493_vm1, %v8893_v63  ;;  %7765 = vmatprep.mubr.msk.f32.mxu0 %vm493_vm1, %v8902_v2 }
  0x98   : > { %7817 = vmatprep.mubr.msk.f32.mxu1 %vm493_vm1, %v8899_v1 }
  0x9a   : > { %7766 = vmatmul.mubr.msk.f32.gmra.mxu0 %vm493_vm1, %v8916_v4 }
  0x9b   : > { %7818 = vmatmul.mubr.msk.f32.gmra.mxu1 %vm493_vm1, %v8913_v3  ;;  %7768 = vmatprep.mubr.msk.f32.mxu0 %vm493_vm1, %v8922_v6 }
  0x9c   : > { %7820 = vmatprep.mubr.msk.f32.mxu1 %vm493_vm1, %v8919_v5 }
  0x9e   : > { %7769 = vmatmul.mubr.msk.f32.gmra.mxu0 %vm493_vm1, %v8936_v8 }
  0x9f   : > { %7821 = vmatmul.mubr.msk.f32.gmra.mxu1 %vm493_vm1, %v8933_v7  ;;  %7771 = vmatprep.mubr.msk.f32.mxu0 %vm493_vm1, %v6741_v9 }
  0xa0   : > { %7823 = vmatprep.mubr.msk.f32.mxu1 %vm493_vm1, %v6808_v10 }
  0xa2   : > { %7772 = vmatmul.mubr.msk.f32.gmra.mxu0 %vm493_vm1, %v6742_v11 }
  0xa3   : > { %7824 = vmatmul.mubr.msk.f32.gmra.mxu1 %vm493_vm1, %v6809_v12  ;;  %7834 = vmatprep.mubr.msk.f32.mxu0 %vm346_vm2, %v2114_v22 }
  0xa4   : > { %7854 = vmatprep.mubr.msk.f32.mxu1 %vm346_vm2, %v2094_v23 }
  0xe6   : > { %v9180_v24 = vpop.f32.mrf.mxu0 }
  0xe7   : > { %v9182_v25 = vpop.f32.mrf.mxu1 }
  0xe8   : > { %v9184_v26 = vpop.f32.mrf.mxu0 }
  0xe9   : > { %v9186_v27 = vpop.f32.mrf.mxu1 }
  0xea   : > { %v9188_v28 = vpop.f32.mrf.mxu0 }
  0xeb   : > { %v9190_v29 = vpop.f32.mrf.mxu1 }
  0xec   : > { %v9196_v32 = vpop.f32.mrf.mxu0 }
  0xed   : > { %v9198_v33 = vpop.f32.mrf.mxu1 }
  0xee   : > { %v9202_v34 = vpop.f32.mrf.mxu0 }
  0xef   : > { %v9204_v35 = vpop.f32.mrf.mxu1 }
  0xf0   : > { %v9206_v36 = vpop.f32.mrf.mxu0 }
  0xf1   : > { %v9208_v37 = vpop.f32.mrf.mxu1 }
  0xf2   : > { %v9210_v38 = vpop.f32.mrf.mxu0 }
  0xf3   : > { %v9212_v39 = vpop.f32.mrf.mxu1 }
  0xf4   : > { %v9214_v40 = vpop.f32.mrf.mxu0 }
  0xf5   : > { %v9216_v41 = vpop.f32.mrf.mxu1 }
  0xf6   : > { %v9218_v42 = vpop.f32.mrf.mxu0 }
  0xf7   : > { %v9220_v43 = vpop.f32.mrf.mxu1 }
  0xf8   : > { %v9222_v44 = vpop.f32.mrf.mxu0 }
  0xf9   : > { %v9224_v45 = vpop.f32.mrf.mxu1 }
  0xfa   : > { %v9226_v46 = vpop.f32.mrf.mxu0 }
  0xfb   : > { %v9228_v47 = vpop.f32.mrf.mxu1 }
  0xfc   : > { %v9230_v48 = vpop.f32.mrf.mxu0 }
  0xfd   : > { %v9232_v49 = vpop.f32.mrf.mxu1 }
  0xfe   : > { %v9234_v50 = vpop.f32.mrf.mxu0 }
  0xff   : > { %v9236_v51 = vpop.f32.mrf.mxu1 }
 0x100   : > { %v9238_v52 = vpop.f32.mrf.mxu0 }
 0x101   : > { %v9240_v53 = vpop.f32.mrf.mxu1 }
 0x102   : > { %v9242_v54 = vpop.f32.mrf.mxu0 }
 0x103   : > { %v9244_v55 = vpop.f32.mrf.mxu1 }
 0x104   : > { %v9246_v56 = vpop.f32.mrf.mxu0 }
 0x105   : > { %v9248_v57 = vpop.f32.mrf.mxu1 }
 0x106   : > { %v9250_v58 = vpop.f32.mrf.mxu0 }
 0x107   : > { %v9252_v59 = vpop.f32.mrf.mxu1 }
 0x108   : > { %v9254_v60 = vpop.f32.mrf.mxu0 }
 0x109   : > { %v9256_v61 = vpop.f32.mrf.mxu1 }
 0x10a   : > { %v9258_v62 = vpop.f32.mrf.mxu0 }
 0x10b   : > { %v9260_v63 = vpop.f32.mrf.mxu1 }
 0x10c   : > { %v9262_v0 = vpop.f32.mrf.mxu0 }
 0x10d   : > { %v9264_v1 = vpop.f32.mrf.mxu1 }
 0x10e   : > { %v9266_v2 = vpop.f32.mrf.mxu0 }
 0x10f   : > { %v9268_v3 = vpop.f32.mrf.mxu1 }
 0x110   : > { %v9270_v4 = vpop.f32.mrf.mxu0 }
 0x111   : > { %v9272_v5 = vpop.f32.mrf.mxu1 }
 0x112   : > { %v9274_v6 = vpop.f32.mrf.mxu0 }
 0x113   : > { %v9276_v7 = vpop.f32.mrf.mxu1 }
 0x114   : > { %v9278_v8 = vpop.f32.mrf.mxu0 }
 0x115   : > { %10296 = vst [vmem:[#allocation8_spill] sm:$0xff] %v9278_v8  ;;  %v9280_v9 = vpop.f32.mrf.mxu1 }
 0x116   : > { %10297 = vst [vmem:[#allocation9_spill] sm:$0xff] %v9280_v9  ;;  %v9282_v10 = vpop.f32.mrf.mxu0 }
 0x117   : > { %10298 = vst [vmem:[#allocation10_spill] sm:$0xff] %v9282_v10  ;;  %v9284_v11 = vpop.f32.mrf.mxu1 }
 0x118   : > { %10299 = vst [vmem:[#allocation11_spill] sm:$0xff] %v9284_v11  ;;  %v9286_v12 = vpop.f32.mrf.mxu0 }
 0x119   : > { %10300 = vst [vmem:[#allocation12_spill] sm:$0xff] %v9286_v12  ;;  %v9288_v13 = vpop.f32.mrf.mxu1 }
 0x11a   : > { %10301 = vst [vmem:[#allocation13_spill] sm:$0xff] %v9288_v13  ;;  %v9290_v14 = vpop.f32.mrf.mxu0 }
 0x11b   : > { %10302 = vst [vmem:[#allocation14_spill] sm:$0xff] %v9290_v14  ;;  %v9292_v16 = vpop.f32.mrf.mxu1 }
 0x11c   : > { %10303 = vst [vmem:[#allocation15_spill] sm:$0xff] %v9292_v16  ;;  %v9294_v17 = vpop.f32.mrf.mxu0 }
 0x11d   : > { %10304 = vst [vmem:[#allocation16_spill] sm:$0xff] %v9294_v17  ;;  %v9296_v18 = vpop.f32.mrf.mxu1  ;;  %v990_v17 = vadd.f32 %v9182_v25, %v9180_v24 }
 0x11e   : > { %10305 = vst [vmem:[#allocation17_spill] sm:$0xff] %v9296_v18  ;;  %v9298_v19 = vpop.f32.mrf.mxu0 }
 0x11f   : > { %10306 = vst [vmem:[#allocation18_spill] sm:$0xff] %v9298_v19  ;;  %v9300_v20 = vpop.f32.mrf.mxu1 }
 0x120   : > { %10307 = vst [vmem:[#allocation19_spill] sm:$0xff] %v9300_v20  ;;  %v9302_v21 = vpop.f32.mrf.mxu0  ;;  %v985_v20 = vadd.f32 %v9186_v27, %v9184_v26  ;;  %v995_v26 = vadd.f32 %v9198_v33, %v9196_v32  ;;  %v1020_v33 = vadd.f32 %v9212_v39, %v9210_v38  ;;  %v1015_v38 = vadd.f32 %v9216_v41, %v9214_v40 }
 0x121   : > { %10308 = vst [vmem:[#allocation20_spill] sm:$0xff] %v9302_v21  ;;  %v9304_v22 = vpop.f32.mrf.mxu1 }
 0x122   : > { %10309 = vst [vmem:[#allocation21_spill] sm:$0xff] %v9304_v22  ;;  %v9306_v23 = vpop.f32.mrf.mxu0  ;;  %v9321_v22 = vld [vmem:[%s10285_s2] ss:$0 sm:$0xff] }
 0x123   : > { %10310 = vst [vmem:[#allocation22_spill] sm:$0xff] %v9306_v23  ;;  %v9308_v15 = vpop.f32.mrf.mxu1 }
 0x124   : > { %10311 = vst [vmem:[#allocation23_spill] sm:$0xff] %v9308_v15  ;;  %v9310_v13 = vpop.f32.mrf.mxu0 }
 0x125   : > { %10312 = vst [vmem:[#allocation24_spill] sm:$0xff] %v9310_v13  ;;  %v9312_v14 = vpop.f32.mrf.mxu1  ;;  %v1000_v13 = vadd.f32 %v9190_v29, %v9188_v28  ;;  %v1010_v28 = vadd.f32 %v9204_v35, %v9202_v34  ;;  %v1005_v29 = vadd.f32 %v9208_v37, %v9206_v36 }
 0x126   : > { %10313 = vst [vmem:[#allocation25_spill] sm:$0xff] %v9312_v14  ;;  %v7728_v18 = vpop.f32.mrf.mxu0 }
 0x127   : > { %v7780_v16 = vpop.f32.mrf.mxu1  ;;  %v1504_v19 = vadd.f32 %v7728_v18, %v990_v17 }
 0x128   : > { %v1344_v23 = vpop.f32.mrf.mxu0 }
 0x129   : > { %v1735_v15 = vpop.f32.mrf.mxu1  ;;  %v1895_v14 = vadd.f32 %v7780_v16, %v1504_v19  ;;  %v1503_v21 = vadd.f32 %v1344_v23, %v985_v20 }
 0x12a   : > { %v7731_v12 = vpop.f32.mrf.mxu0 }
 0x12b   : > { %v7783_v24 = vpop.f32.mrf.mxu1  ;;  %v1934_v25 = vadd.f32 %v9321_v22, %v1895_v14  ;;  %v1894_v11 = vadd.f32 %v1735_v15, %v1503_v21  ;;  %v1506_v10 = vadd.f32 %v7731_v12, %v1000_v13 }
 0x12c   : > { %v1354_v27 = vpop.f32.mrf.mxu0 }
 0x12d   : > { %v1745_v17 = vpop.f32.mrf.mxu1  ;;  %vm1966_vm4 = vcmp.ge.f32.partialorder %v1934_v25, 0.0  ;;  %v1998_v18 = vmul.f32 0.2, %v1934_v25  ;;  %v1933_v9 = vadd.f32 %v9321_v22, %v1894_v11  ;;  %v1897_v8 = vadd.f32 %v7783_v24, %v1506_v10 }
 0x12e   : > { %v1505_v16 = vadd.f32 %v1354_v27, %v995_v26  ;;  %v7734_v14 = vpop.f32.mrf.mxu0 }
 0x12f   : > { %v7786_v15 = vpop.f32.mrf.mxu1  ;;  %v2030_v12 = vsel %vm1966_vm4, %v1934_v25, %v1998_v18  ;;  %vm1965_vm5 = vcmp.ge.f32.partialorder %v1933_v9, 0.0  ;;  %v1997_v13 = vmul.f32 0.2, %v1933_v9  ;;  %v1936_v32 = vadd.f32 %v9321_v22, %v1897_v8 }
 0x130   : > { %2063 = vst.msk [vmem:[#allocation2 + $0x21] sm:$0xff] %vm346_vm2, %v2030_v12  ;;  %v1896_v10 = vadd.f32 %v1745_v17, %v1505_v16  ;;  %v1508_v11 = vadd.f32 %v7734_v14, %v1010_v28  ;;  %v1364_v19 = vpop.f32.mrf.mxu0  ;;  %v1030_v16 = vadd.f32 %v9220_v43, %v9218_v42 }
 0x131   : > { %v1755_v34 = vpop.f32.mrf.mxu1  ;;  %v2029_v35 = vsel %vm1965_vm5, %v1933_v9, %v1997_v13  ;;  %vm1968_vm6 = vcmp.ge.f32.partialorder %v1936_v32, 0.0  ;;  %v2000_v36 = vmul.f32 0.2, %v1936_v32  ;;  %v1507_v37 = vadd.f32 %v1364_v19, %v1005_v29 }
 0x132   : > { %2062 = vst.msk [vmem:[#allocation2 + $0x19] sm:$0xff] %vm346_vm2, %v2029_v35  ;;  %v1935_v20 = vadd.f32 %v9321_v22, %v1896_v10  ;;  %v1899_v21 = vadd.f32 %v7786_v15, %v1508_v11  ;;  %v7737_v23 = vpop.f32.mrf.mxu0  ;;  %v1040_v10 = vadd.f32 %v9228_v47, %v9226_v46 }
 0x133   : > { %v7789_v8 = vpop.f32.mrf.mxu1  ;;  %v2032_v39 = vsel %vm1968_vm6, %v1936_v32, %v2000_v36  ;;  %v1898_v24 = vadd.f32 %v1755_v34, %v1507_v37  ;;  %v1510_v25 = vadd.f32 %v7737_v23, %v1020_v33  ;;  %v1025_v33 = vadd.f32 %v9224_v45, %v9222_v44 }
 0x134   : > { %2065 = vst.msk [vmem:[#allocation2 + $0x39] sm:$0xff] %vm346_vm2, %v2032_v39  ;;  %vm1967_vm7 = vcmp.ge.f32.partialorder %v1935_v20, 0.0  ;;  %v1999_v9 = vmul.f32 0.2, %v1935_v20  ;;  %v1938_v26 = vadd.f32 %v9321_v22, %v1899_v21  ;;  %v1374_v27 = vpop.f32.mrf.mxu0  ;;  %v1035_v37 = vadd.f32 %v9232_v49, %v9230_v48 }
 0x135   : > { %v1765_v17 = vpop.f32.mrf.mxu1  ;;  %v1937_v18 = vadd.f32 %v9321_v22, %v1898_v24  ;;  %v1901_v28 = vadd.f32 %v7789_v8, %v1510_v25  ;;  %v1509_v29 = vadd.f32 %v1374_v27, %v1015_v38  ;;  %v1050_v48 = vadd.f32 %v9236_v51, %v9234_v50 }
 0x136   : > { %v2031_v14 = vsel %vm1967_vm7, %v1935_v20, %v1999_v9  ;;  %vm1970_vm8 = vcmp.ge.f32.partialorder %v1938_v26, 0.0  ;;  %v2002_v40 = vmul.f32 0.2, %v1938_v26  ;;  %v7740_v41 = vpop.f32.mrf.mxu0 }
 0x137   : > { %v7792_v15 = vpop.f32.mrf.mxu1  ;;  %2064 = vst.msk [vmem:[#allocation2 + $0x31] sm:$0xff] %vm346_vm2, %v2031_v14  ;;  %vm1969_vm9 = vcmp.ge.f32.partialorder %v1937_v18, 0.0  ;;  %v2001_v12 = vmul.f32 0.2, %v1937_v18  ;;  %v1940_v13 = vadd.f32 %v9321_v22, %v1901_v28  ;;  %v1900_v32 = vadd.f32 %v1765_v17, %v1509_v29  ;;  %v2411_v29 = vld [vmem:[#allocation5 + $0x50] sm:$0xff] }
 0x138   : > { %v2034_v11 = vsel %vm1970_vm8, %v1938_v26, %v2002_v40  ;;  %v1512_v42 = vadd.f32 %v7740_v41, %v1030_v16  ;;  %v1384_v43 = vpop.f32.mrf.mxu0  ;;  %v1045_v16 = vadd.f32 %v9240_v53, %v9238_v52  ;;  %v2569_v41 = vld [vmem:[#allocation5 + $0x70] sm:$0xff]  ;;  %v2410_v52 = vld [vmem:[#allocation5 + $0x48] sm:$0xff] }
 0x139   : > { %v1775_v19 = vpop.f32.mrf.mxu1  ;;  %2067 = vst.msk [vmem:[#allocation2 + $0x51] sm:$0xff] %vm346_vm2, %v2034_v11  ;;  %v2033_v34 = vsel %vm1969_vm9, %v1937_v18, %v2001_v12  ;;  %vm1972_vm10 = vcmp.ge.f32.partialorder %v1940_v13, 0.0  ;;  %v2004_v35 = vmul.f32 0.2, %v1940_v13  ;;  %v1939_v36 = vadd.f32 %v9321_v22, %v1900_v32 }
 0x13a   : > { %2066 = vst.msk [vmem:[#allocation2 + $0x49] sm:$0xff] %vm346_vm2, %v2033_v34  ;;  %v1903_v44 = vadd.f32 %v7792_v15, %v1512_v42  ;;  %v1511_v45 = vadd.f32 %v1384_v43, %v1025_v33  ;;  %v7743_v20 = vpop.f32.mrf.mxu0  ;;  %v1060_v15 = vadd.f32 %v9244_v55, %v9242_v54  ;;  %v2568_v54 = vld [vmem:[#allocation5 + $0x68] sm:$0xff]  ;;  %v1055_v55 = vadd.f32 %v9248_v57, %v9246_v56  ;;  %v2409_v34 = vld [vmem:[#allocation5 + $0x40] sm:$0xff] }
 0x13b   : > { %v7795_v46 = vpop.f32.mrf.mxu1  ;;  %v2036_v47 = vsel %vm1972_vm10, %v1940_v13, %v2004_v35  ;;  %vm1971_vm11 = vcmp.ge.f32.partialorder %v1939_v36, 0.0  ;;  %v2003_v21 = vmul.f32 0.2, %v1939_v36  ;;  %v1514_v23 = vadd.f32 %v7743_v20, %v1040_v10  ;;  %v2567_v20 = vld [vmem:[#allocation5 + $0x60] sm:$0xff] }
 0x13c   : > { %2069 = vst.msk [vmem:[#allocation2 + $0x69] sm:$0xff] %vm346_vm2, %v2036_v47  ;;  %v1942_v8 = vadd.f32 %v9321_v22, %v1903_v44  ;;  %v1902_v38 = vadd.f32 %v1775_v19, %v1511_v45  ;;  %v1394_v39 = vpop.f32.mrf.mxu0  ;;  %v1070_v56 = vadd.f32 %v9252_v59, %v9250_v58  ;;  %v1065_v58 = vadd.f32 %v9256_v61, %v9254_v60 }
 0x13d   : > { %v1785_v24 = vpop.f32.mrf.mxu1  ;;  %v2035_v49 = vsel %vm1971_vm11, %v1939_v36, %v2003_v21  ;;  %v1905_v25 = vadd.f32 %v7795_v46, %v1514_v23  ;;  %v1513_v9 = vadd.f32 %v1394_v39, %v1035_v37 }
 0x13e   : > { %2068 = vst.msk [vmem:[#allocation2 + $0x61] sm:$0xff] %vm346_vm2, %v2035_v49  ;;  %vm1974_vm12 = vcmp.ge.f32.partialorder %v1942_v8, 0.0  ;;  %v2006_v26 = vmul.f32 0.2, %v1942_v8  ;;  %v1941_v27 = vadd.f32 %v9321_v22, %v1902_v38  ;;  %v7746_v17 = vpop.f32.mrf.mxu0  ;;  %v2116_v18 = vld [vmem:[#allocation2 + $0x31] ss:$2 sm:$0xff] }
 0x13f   : > { %v7798_v28 = vpop.f32.mrf.mxu1  ;;  %v1944_v14 = vadd.f32 %v9321_v22, %v1905_v25  ;;  %v1904_v40 = vadd.f32 %v1785_v24, %v1513_v9  ;;  %v1516_v50 = vadd.f32 %v7746_v17, %v1050_v48  ;;  %7835 = vmatmul.mubr.msk.f32.vlgmr.msra.gmra.mxu0 %vm346_vm2, %v2116_v18  ;;  %v2096_v51 = vld [vmem:[#allocation2 + $0x30] ss:$2 sm:$0xff] }
 0x140   : > { %v2038_v12 = vsel %vm1974_vm12, %v1942_v8, %v2006_v26  ;;  %vm1973_vm13 = vcmp.ge.f32.partialorder %v1941_v27, 0.0  ;;  %v2005_v13 = vmul.f32 0.2, %v1941_v27  ;;  %7855 = vmatmul.mubr.msk.f32.vlgmr.msra.gmra.mxu1 %vm346_vm2, %v2096_v51  ;;  %v1404_v32 = vpop.f32.mrf.mxu0  ;;  %7867 = vmatpush3.msra.mxu0 %v9192_v30  ;;  %v9383_v8 = vld [vmem:[#allocation5 + $0x98] sm:$0xff] }
 0x141   : > { %v1795_v33 = vpop.f32.mrf.mxu1  ;;  %2071 = vst.msk [vmem:[#allocation2 + $0x81] sm:$0xff] %vm346_vm2, %v2038_v12  ;;  %vm1976_vm14 = vcmp.ge.f32.partialorder %v1944_v14, 0.0  ;;  %v2008_v53 = vmul.f32 0.2, %v1944_v14  ;;  %v1943_v10 = vadd.f32 %v9321_v22, %v1904_v40  ;;  %v1907_v11 = vadd.f32 %v7798_v28, %v1516_v50  ;;  %7887 = vmatpush3.msra.mxu1 %v9194_v31  ;;  %7868 = vmatprep.subr.mxu0 %v2411_v29  ;;  %v9390_v49 = vld [vmem:[#allocation5 + $0xb8] sm:$0xff] }
 0x142   : > { %v2037_v42 = vsel %vm1973_vm13, %v1941_v27, %v2005_v13  ;;  %v1515_v43 = vadd.f32 %v1404_v32, %v1045_v16  ;;  %v7749_v19 = vpop.f32.mrf.mxu0  ;;  %7869 = vmatpush3.msra.mxu0 %v2411_v29  ;;  %7888 = vmatprep.subr.mxu1 %v2569_v41  ;;  %v1080_v16 = vadd.f32 %v9260_v63, %v9258_v62 }
 0x143   : > { %v7801_v30 = vpop.f32.mrf.mxu1  ;;  %2070 = vst.msk [vmem:[#allocation2 + $0x79] sm:$0xff] %vm346_vm2, %v2037_v42  ;;  %v2040_v35 = vsel %vm1976_vm14, %v1944_v14, %v2008_v53  ;;  %vm1975_vm15 = vcmp.ge.f32.partialorder %v1943_v10, 0.0  ;;  %v2007_v36 = vmul.f32 0.2, %v1943_v10  ;;  %v1946_v31 = vadd.f32 %v9321_v22, %v1907_v11  ;;  %7889 = vmatpush3.msra.mxu1 %v2569_v41  ;;  %7870 = vmatprep.subr.mxu0 %v2410_v52 }
 0x144   : > { %2073 = vst.msk [vmem:[#allocation2 + $0x99] sm:$0xff] %vm346_vm2, %v2040_v35  ;;  %v1906_v57 = vadd.f32 %v1795_v33, %v1515_v43  ;;  %v1518_v37 = vadd.f32 %v7749_v19, %v1060_v15  ;;  %v1414_v44 = vpop.f32.mrf.mxu0  ;;  %7871 = vmatpush3.msra.mxu0 %v2410_v52  ;;  %7890 = vmatprep.subr.mxu1 %v2568_v54 }
 0x145   : > { %v1805_v45 = vpop.f32.mrf.mxu1  ;;  %v2039_v46 = vsel %vm1975_vm15, %v1943_v10, %v2007_v36  ;;  %vm1978_vm0 = vcmp.ge.f32.partialorder %v1946_v31, 0.0  ;;  %v2010_v47 = vmul.f32 0.2, %v1946_v31  ;;  %v1517_v21 = vadd.f32 %v1414_v44, %v1055_v55  ;;  %v2118_v23 = vld [vmem:[#allocation2 + $0x61] ss:$2 sm:$0xff]  ;;  %7891 = vmatpush3.msra.mxu1 %v2568_v54  ;;  %7872 = vmatprep.subr.mxu0 %v2409_v34 }
 0x146   : > { %2072 = vst.msk [vmem:[#allocation2 + $0x91] sm:$0xff] %vm346_vm2, %v2039_v46  ;;  %v1945_v59 = vadd.f32 %v9321_v22, %v1906_v57  ;;  %v1909_v38 = vadd.f32 %v7801_v30, %v1518_v37  ;;  %v7752_v39 = vpop.f32.mrf.mxu0  ;;  %7837 = vmatprep.mubr.msk.f32.mxu0 %vm346_vm2, %v2118_v23  ;;  %v2098_v24 = vld [vmem:[#allocation2 + $0x60] ss:$2 sm:$0xff]  ;;  %7873 = vmatpush3.msra.mxu0 %v2409_v34  ;;  %v10314_v23 = vld [vmem:[#allocation8_spill] sm:$0xff] }
 0x147   : > { %v7804_v48 = vpop.f32.mrf.mxu1  ;;  %v2042_v25 = vsel %vm1978_vm0, %v1946_v31, %v2010_v47  ;;  %v1908_v9 = vadd.f32 %v1805_v45, %v1517_v21  ;;  %v1520_v26 = vadd.f32 %v7752_v39, %v1070_v56  ;;  %7857 = vmatprep.mubr.msk.f32.mxu1 %vm346_vm2, %v2098_v24  ;;  %7892 = vmatprep.subr.mxu1 %v2567_v20 }
 0x148   : > { %2075 = vst.msk [vmem:[#allocation2 + $0xb1] sm:$0xff] %vm346_vm2, %v2042_v25  ;;  %vm1977_vm1 = vcmp.ge.f32.partialorder %v1945_v59, 0.0  ;;  %v2009_v60 = vmul.f32 0.2, %v1945_v59  ;;  %v1948_v61 = vadd.f32 %v9321_v22, %v1909_v38  ;;  %v1424_v27 = vpop.f32.mrf.mxu0  ;;  %7893 = vmatpush3.msra.mxu1 %v2567_v20  ;;  %7906 = vmatprep.subr.mxu0 %v9383_v8  ;;  %v1075_v13 = vadd.f32 %v9264_v1, %v9262_v0 }
 0x149   : > { %v1815_v17 = vpop.f32.mrf.mxu1  ;;  %v1947_v18 = vadd.f32 %v9321_v22, %v1908_v9  ;;  %v1911_v28 = vadd.f32 %v7804_v48, %v1520_v26  ;;  %v1519_v29 = vadd.f32 %v1424_v27, %v1065_v58  ;;  %7926 = vmatprep.subr.mxu1 %v9390_v49  ;;  %v1090_v32 = vadd.f32 %v9268_v3, %v9266_v2  ;;  %v10315_v58 = vld [vmem:[#allocation9_spill] sm:$0xff]  ;;  %v10316_v26 = vld [vmem:[#allocation10_spill] sm:$0xff]  ;;  %v10318_v27 = vld [vmem:[#allocation12_spill] sm:$0xff] }
 0x14a   : > { %v2041_v14 = vsel %vm1977_vm1, %v1945_v59, %v2009_v60  ;;  %vm1980_vm3 = vcmp.ge.f32.partialorder %v1948_v61, 0.0  ;;  %v2012_v40 = vmul.f32 0.2, %v1948_v61  ;;  %v7755_v50 = vpop.f32.mrf.mxu0  ;;  %v1085_v55 = vadd.f32 %v9272_v5, %v9270_v4  ;;  %v10317_v60 = vld [vmem:[#allocation11_spill] sm:$0xff] }
 0x14b   : > { %v7807_v51 = vpop.f32.mrf.mxu1  ;;  %2074 = vst.msk [vmem:[#allocation2 + $0xa9] sm:$0xff] %vm346_vm2, %v2041_v14  ;;  %vm1979_vm4 = vcmp.ge.f32.partialorder %v1947_v18, 0.0  ;;  %v2011_v41 = vmul.f32 0.2, %v1947_v18  ;;  %v1950_v15 = vadd.f32 %v9321_v22, %v1911_v28  ;;  %v1910_v12 = vadd.f32 %v1815_v17, %v1519_v29  ;;  %v10319_v17 = vld [vmem:[#allocation13_spill] sm:$0xff] }
 0x14c   : > { %v2044_v33 = vsel %vm1980_vm3, %v1948_v61, %v2012_v40  ;;  %v1522_v62 = vadd.f32 %v7755_v50, %v1080_v16  ;;  %v1434_v63 = vpop.f32.mrf.mxu0  ;;  %v1100_v36 = vadd.f32 %v9276_v7, %v9274_v6  ;;  %v1095_v59 = vadd.f32 %v10315_v58, %v10314_v23 }
 0x14d   : > { %v1825_v52 = vpop.f32.mrf.mxu1  ;;  %2077 = vst.msk [vmem:[#allocation2 + $0xc9] sm:$0xff] %vm346_vm2, %v2044_v33  ;;  %v2043_v53 = vsel %vm1979_vm4, %v1947_v18, %v2011_v41  ;;  %vm1982_vm5 = vcmp.ge.f32.partialorder %v1950_v15, 0.0  ;;  %v2014_v10 = vmul.f32 0.2, %v1950_v15  ;;  %v1949_v11 = vadd.f32 %v9321_v22, %v1910_v12  ;;  %v2120_v54 = vld [vmem:[#allocation2 + $0x91] ss:$2 sm:$0xff] }
 0x14e   : > { %2076 = vst.msk [vmem:[#allocation2 + $0xc1] sm:$0xff] %vm346_vm2, %v2043_v53  ;;  %v1913_v0 = vadd.f32 %v7807_v51, %v1522_v62  ;;  %v1521_v1 = vadd.f32 %v1434_v63, %v1075_v13  ;;  %v7758_v2 = vpop.f32.mrf.mxu0  ;;  %7838 = vmatmul.mubr.msk.f32.gmra.mxu0 %vm346_vm2, %v2120_v54  ;;  %v2100_v3 = vld [vmem:[#allocation2 + $0x90] ss:$2 sm:$0xff]  ;;  %v1110_v61 = vadd.f32 %v10317_v60, %v10316_v26 }
 0x14f   : > { %v7810_v42 = vpop.f32.mrf.mxu1  ;;  %v2046_v43 = vsel %vm1982_vm5, %v1950_v15, %v2014_v10  ;;  %vm1981_vm6 = vcmp.ge.f32.partialorder %v1949_v11, 0.0  ;;  %v2013_v19 = vmul.f32 0.2, %v1949_v11  ;;  %v1524_v30 = vadd.f32 %v7758_v2, %v1090_v32  ;;  %7858 = vmatmul.mubr.msk.f32.gmra.mxu1 %vm346_vm2, %v2100_v3  ;;  %v10320_v15 = vld [vmem:[#allocation14_spill] sm:$0xff]  ;;  %v10321_v12 = vld [vmem:[#allocation15_spill] sm:$0xff]  ;;  %v10323_v2 = vld [vmem:[#allocation17_spill] sm:$0xff] }
 0x150   : > { %2079 = vst.msk [vmem:[#allocation2 + $0xe1] sm:$0xff] %vm346_vm2, %v2046_v43  ;;  %v1952_v34 = vadd.f32 %v9321_v22, %v1913_v0  ;;  %v1912_v4 = vadd.f32 %v1825_v52, %v1521_v1  ;;  %v1444_v5 = vpop.f32.mrf.mxu0  ;;  %v1105_v18 = vadd.f32 %v10319_v17, %v10318_v27  ;;  %v1120_v13 = vadd.f32 %v10321_v12, %v10320_v15  ;;  %v10322_v1 = vld [vmem:[#allocation16_spill] sm:$0xff] }
 0x151   : > { %v1835_v35 = vpop.f32.mrf.mxu1  ;;  %v2045_v31 = vsel %vm1981_vm6, %v1949_v11, %v2013_v19  ;;  %v1915_v56 = vadd.f32 %v7810_v42, %v1524_v30  ;;  %v1523_v57 = vadd.f32 %v1444_v5, %v1085_v55  ;;  %v1115_v3 = vadd.f32 %v10323_v2, %v10322_v1 }
 0x152   : > { %2078 = vst.msk [vmem:[#allocation2 + $0xd9] sm:$0xff] %vm346_vm2, %v2045_v31  ;;  %vm1984_vm7 = vcmp.ge.f32.partialorder %v1952_v34, 0.0  ;;  %v2016_v37 = vmul.f32 0.2, %v1952_v34  ;;  %v1951_v44 = vadd.f32 %v9321_v22, %v1912_v4  ;;  %v7761_v45 = vpop.f32.mrf.mxu0  ;;  %vm402_vm6 = vcmask 523264  }
 0x153   : > { %v7813_v20 = vpop.f32.mrf.mxu1  ;;  %v1954_v46 = vadd.f32 %v9321_v22, %v1915_v56  ;;  %v1914_v47 = vadd.f32 %v1835_v35, %v1523_v57  ;;  %v1526_v21 = vadd.f32 %v7761_v45, %v1100_v36  ;;  %v10324_v56 = vld [vmem:[#allocation18_spill] sm:$0xff]  ;;  %v10325_v57 = vld [vmem:[#allocation19_spill] sm:$0xff] }
 0x154   : > { %v2048_v38 = vsel %vm1984_vm7, %v1952_v34, %v2016_v37  ;;  %vm1983_vm8 = vcmp.ge.f32.partialorder %v1951_v44, 0.0  ;;  %v2015_v6 = vmul.f32 0.2, %v1951_v44  ;;  %v1454_v7 = vpop.f32.mrf.mxu0  ;;  %v1130_v37 = vadd.f32 %v10325_v57, %v10324_v56  ;;  %v2726_v56 = vld [vmem:[#allocation5 + $0x90] sm:$0xff] }
 0x155   : > { %v1845_v39 = vpop.f32.mrf.mxu1  ;;  %2081 = vst.msk [vmem:[#allocation2 + $0xf9] sm:$0xff] %vm346_vm2, %v2048_v38  ;;  %vm1986_vm9 = vcmp.ge.f32.partialorder %v1954_v46, 0.0  ;;  %v2018_v24 = vmul.f32 0.2, %v1954_v46  ;;  %v1953_v48 = vadd.f32 %v9321_v22, %v1914_v47  ;;  %v1917_v25 = vadd.f32 %v7813_v20, %v1526_v21  ;;  %v2122_v9 = vld [vmem:[#allocation2 + $0xc1] ss:$2 sm:$0xff] }
 0x156   : > { %v2047_v28 = vsel %vm1983_vm8, %v1951_v44, %v2015_v6  ;;  %v1525_v29 = vadd.f32 %v1454_v7, %v1095_v59  ;;  %v7764_v16 = vpop.f32.mrf.mxu0  ;;  %7840 = vmatprep.mubr.msk.f32.mxu0 %vm346_vm2, %v2122_v9  ;;  %v2102_v14 = vld [vmem:[#allocation2 + $0xc0] ss:$2 sm:$0xff]  ;;  %v10326_v38 = vld [vmem:[#allocation20_spill] sm:$0xff] }
 0x157   : > { %v7816_v40 = vpop.f32.mrf.mxu1  ;;  %2080 = vst.msk [vmem:[#allocation2 + $0xf1] sm:$0xff] %vm346_vm2, %v2047_v28  ;;  %v2050_v50 = vsel %vm1986_vm9, %v1954_v46, %v2018_v24  ;;  %vm1985_vm10 = vcmp.ge.f32.partialorder %v1953_v48, 0.0  ;;  %v2017_v51 = vmul.f32 0.2, %v1953_v48  ;;  %v1956_v41 = vadd.f32 %v9321_v22, %v1917_v25  ;;  %7860 = vmatprep.mubr.msk.f32.mxu1 %vm346_vm2, %v2102_v14  ;;  %v10327_v6 = vld [vmem:[#allocation21_spill] sm:$0xff]  ;;  %v10329_v24 = vld [vmem:[#allocation23_spill] sm:$0xff] }
 0x158   : > { %2083 = vst.msk [vmem:[#allocation2 + $0x111] sm:$0xff] %vm346_vm2, %v2050_v50  ;;  %v1916_v32 = vadd.f32 %v1845_v39, %v1525_v29  ;;  %v1528_v33 = vadd.f32 %v7764_v16, %v1110_v61  ;;  %v1464_v62 = vpop.f32.mrf.mxu0  ;;  %v1125_v7 = vadd.f32 %v10327_v6, %v10326_v38  ;;  %v10328_v39 = vld [vmem:[#allocation22_spill] sm:$0xff]  ;;  %v10331_v28 = vld [vmem:[#allocation25_spill] sm:$0xff]  ;;  %v2882_v6 = vld [vmem:[#allocation5 + $0xa0] sm:$0xff] }
 0x159   : > { %v1855_v63 = vpop.f32.mrf.mxu1  ;;  %v2049_v52 = vsel %vm1985_vm10, %v1953_v48, %v2017_v51  ;;  %vm1988_vm11 = vcmp.ge.f32.partialorder %v1956_v41, 0.0  ;;  %v2020_v53 = vmul.f32 0.2, %v1956_v41  ;;  %v1527_v10 = vadd.f32 %v1464_v62, %v1105_v18  ;;  %v10330_v18 = vld [vmem:[#allocation24_spill] sm:$0xff]  ;;  %v2397_v57 = vld [vmem:[#allocation2 + $0x62] ss:$2 sm:$0xff] }
 0x15a   : > { %2082 = vst.msk [vmem:[#allocation2 + $0x109] sm:$0xff] %vm346_vm2, %v2049_v52  ;;  %v1955_v11 = vadd.f32 %v9321_v22, %v1916_v32  ;;  %v1919_v54 = vadd.f32 %v7816_v40, %v1528_v33  ;;  %v7767_v55 = vpop.f32.mrf.mxu0  ;;  %v1140_v48 = vadd.f32 %v10329_v24, %v10328_v39  ;;  %v1135_v29 = vadd.f32 %v10331_v28, %v10330_v18  ;;  %v2708_v24 = vld [vmem:[#allocation2 + $0x18] ss:$2 sm:$0xff]  ;;  %v2714_v28 = vld [vmem:[#allocation2 + $0xa8] ss:$2 sm:$0xff] }
 0x15b   : > { %v7819_v0 = vpop.f32.mrf.mxu1  ;;  %v2052_v42 = vsel %vm1988_vm11, %v1956_v41, %v2020_v53  ;;  %v1918_v43 = vadd.f32 %v1855_v63, %v1527_v10  ;;  %v1530_v19 = vadd.f32 %v7767_v55, %v1120_v13  ;;  %v3200_v18 = vld [vmem:[#allocation5 + $0xf0] sm:$0xff] }
 0x15c   : > { %2085 = vst.msk [vmem:[#allocation2 + $0x129] sm:$0xff] %vm346_vm2, %v2052_v42  ;;  %vm1987_vm12 = vcmp.ge.f32.partialorder %v1955_v11, 0.0  ;;  %v2019_v30 = vmul.f32 0.2, %v1955_v11  ;;  %v1958_v34 = vadd.f32 %v9321_v22, %v1919_v54  ;;  %v1474_v4 = vpop.f32.mrf.mxu0 }
 0x15d   : > { %v1865_v5 = vpop.f32.mrf.mxu1  ;;  %v1957_v35 = vadd.f32 %v9321_v22, %v1918_v43  ;;  %v1921_v36 = vadd.f32 %v7819_v0, %v1530_v19  ;;  %v1529_v31 = vadd.f32 %v1474_v4, %v1115_v3  ;;  %v2551_v4 = vld [vmem:[#allocation2 + $0x3] ss:$2 sm:$0xff] }
 0x15e   : > { %v2051_v44 = vsel %vm1987_vm12, %v1955_v11, %v2019_v30  ;;  %vm1990_vm13 = vcmp.ge.f32.partialorder %v1958_v34, 0.0  ;;  %v2022_v45 = vmul.f32 0.2, %v1958_v34  ;;  %v7770_v20 = vpop.f32.mrf.mxu0  ;;  %v2124_v46 = vld [vmem:[#allocation2 + $0xf1] ss:$2 sm:$0xff] }
 0x15f   : > { %v7822_v47 = vpop.f32.mrf.mxu1  ;;  %2084 = vst.msk [vmem:[#allocation2 + $0x121] sm:$0xff] %vm346_vm2, %v2051_v44  ;;  %vm1989_vm14 = vcmp.ge.f32.partialorder %v1957_v35, 0.0  ;;  %v2021_v21 = vmul.f32 0.2, %v1957_v35  ;;  %v1960_v23 = vadd.f32 %v9321_v22, %v1921_v36  ;;  %v1920_v58 = vadd.f32 %v1865_v5, %v1529_v31  ;;  %7841 = vmatmul.mubr.msk.f32.gmra.mxu0 %vm346_vm2, %v2124_v46  ;;  %v2104_v59 = vld [vmem:[#allocation2 + $0xf0] ss:$2 sm:$0xff] }
 0x160   : > { %v2054_v25 = vsel %vm1990_vm13, %v1958_v34, %v2022_v45  ;;  %v1532_v9 = vadd.f32 %v7770_v20, %v1130_v37  ;;  %7861 = vmatmul.mubr.msk.f32.gmra.mxu1 %vm346_vm2, %v2104_v59  ;;  %v1484_v26 = vpop.f32.mrf.mxu0  ;;  %v2393_v34 = vld [vmem:[#allocation2 + $0x2] ss:$2 sm:$0xff]  ;;  %v2553_v31 = vld [vmem:[#allocation2 + $0x33] ss:$2 sm:$0xff]  ;;  %v2555_v37 = vld [vmem:[#allocation2 + $0x63] ss:$2 sm:$0xff] }
 0x161   : > { %v1875_v60 = vpop.f32.mrf.mxu1  ;;  %2087 = vst.msk [vmem:[#allocation2 + $0x141] sm:$0xff] %vm346_vm2, %v2054_v25  ;;  %v2053_v61 = vsel %vm1989_vm14, %v1957_v35, %v2021_v21  ;;  %vm1992_vm15 = vcmp.ge.f32.partialorder %v1960_v23, 0.0  ;;  %v2024_v27 = vmul.f32 0.2, %v1960_v23  ;;  %v1959_v17 = vadd.f32 %v9321_v22, %v1920_v58  ;;  %v2884_v44 = vld [vmem:[#allocation5 + $0xb0] sm:$0xff]  ;;  %v2725_v46 = vld [vmem:[#allocation5 + $0x88] sm:$0xff] }
 0x162   : > { %2086 = vst.msk [vmem:[#allocation2 + $0x139] sm:$0xff] %vm346_vm2, %v2053_v61  ;;  %v1531_v16 = vadd.f32 %v1484_v26, %v1125_v7  ;;  %v1923_v14 = vadd.f32 %v7822_v47, %v1532_v9  ;;  %v7773_v40 = vpop.f32.mrf.mxu0  ;;  %v2399_v45 = vld [vmem:[#allocation2 + $0x92] ss:$2 sm:$0xff]  ;;  %v2557_v20 = vld [vmem:[#allocation2 + $0x93] ss:$2 sm:$0xff]  ;;  %v3201_v25 = vld [vmem:[#allocation5 + $0xf8] sm:$0xff] }
 0x163   : > { %v7825_v50 = vpop.f32.mrf.mxu1  ;;  %v2056_v51 = vsel %vm1992_vm15, %v1960_v23, %v2024_v27  ;;  %vm1991_vm0 = vcmp.ge.f32.partialorder %v1959_v17, 0.0  ;;  %v2023_v41 = vmul.f32 0.2, %v1959_v17  ;;  %v1534_v15 = vadd.f32 %v7773_v40, %v1140_v48  ;;  %v2401_v47 = vld [vmem:[#allocation2 + $0xc2] ss:$2 sm:$0xff]  ;;  %v2883_v23 = vld [vmem:[#allocation5 + $0xa8] sm:$0xff] }
 0x164   : > { %2089 = vst.msk [vmem:[#allocation2 + $0x159] sm:$0xff] %vm346_vm2, %v2056_v51  ;;  %v1962_v12 = vadd.f32 %v9321_v22, %v1923_v14  ;;  %v1922_v13 = vadd.f32 %v1875_v60, %v1531_v16  ;;  %v1494_v32 = vpop.f32.mrf.mxu0  ;;  %v2559_v21 = vld [vmem:[#allocation2 + $0xc3] ss:$2 sm:$0xff]  ;;  %v2710_v26 = vld [vmem:[#allocation2 + $0x48] ss:$2 sm:$0xff]  ;;  %v3041_v16 = vld [vmem:[#allocation5 + $0xc8] sm:$0xff] }
 0x165   : > { %v1885_v33 = vpop.f32.mrf.mxu1  ;;  %v2055_v62 = vsel %vm1991_vm0, %v1959_v17, %v2023_v41  ;;  %v1533_v63 = vadd.f32 %v1494_v32, %v1135_v29  ;;  %v1925_v52 = vadd.f32 %v7825_v50, %v1534_v15  ;;  %v2724_v58 = vld [vmem:[#allocation5 + $0x80] sm:$0xff]  ;;  %v3043_v48 = vld [vmem:[#allocation5 + $0xd8] sm:$0xff]  ;;  %v2866_v9 = vld [vmem:[#allocation2 + $0x19] ss:$2 sm:$0xff] }
 0x166   : > { %2088 = vst.msk [vmem:[#allocation2 + $0x151] sm:$0xff] %vm346_vm2, %v2055_v62  ;;  %vm1994_vm1 = vcmp.ge.f32.partialorder %v1962_v12, 0.0  ;;  %v2026_v53 = vmul.f32 0.2, %v1962_v12  ;;  %v1961_v10 = vadd.f32 %v9321_v22, %v1922_v13  ;;  %v2126_v11 = vld [vmem:[#allocation2 + $0x121] ss:$2 sm:$0xff] }
 0x167   : > { %v1964_v54 = vadd.f32 %v9321_v22, %v1925_v52  ;;  %v1924_v55 = vadd.f32 %v1885_v33, %v1533_v63  ;;  %7843 = vmatprep.mubr.msk.f32.mxu0 %vm346_vm2, %v2126_v11  ;;  %v2106_v0 = vld [vmem:[#allocation2 + $0x120] ss:$2 sm:$0xff]  ;;  %v2563_v38 = vld [vmem:[#allocation2 + $0x123] ss:$2 sm:$0xff] }
 0x168   : > { %v2058_v1 = vsel %vm1994_vm1, %v1962_v12, %v2026_v53  ;;  %vm1993_vm3 = vcmp.ge.f32.partialorder %v1961_v10, 0.0  ;;  %v2025_v2 = vmul.f32 0.2, %v1961_v10  ;;  %7863 = vmatprep.mubr.msk.f32.mxu1 %vm346_vm2, %v2106_v0  ;;  %v2405_v59 = vld [vmem:[#allocation2 + $0x122] ss:$2 sm:$0xff]  ;;  %v3199_v50 = vld [vmem:[#allocation5 + $0xe8] sm:$0xff] }
 0x169   : > { %2091 = vst.msk [vmem:[#allocation2 + $0x171] sm:$0xff] %vm346_vm2, %v2058_v1  ;;  %vm1996_vm4 = vcmp.ge.f32.partialorder %v1964_v54, 0.0  ;;  %v2028_v3 = vmul.f32 0.2, %v1964_v54  ;;  %v1963_v42 = vadd.f32 %v9321_v22, %v1924_v55  ;;  %v2395_v22 = vld [vmem:[#allocation2 + $0x32] ss:$2 sm:$0xff] }
 0x16a   : > { %v2057_v43 = vsel %vm1993_vm3, %v1961_v10, %v2025_v2  ;;  %v2868_v60 = vld [vmem:[#allocation2 + $0x49] ss:$2 sm:$0xff]  ;;  %v3042_v61 = vld [vmem:[#allocation5 + $0xd0] sm:$0xff]  ;;  %v3026_v11 = vld [vmem:[#allocation2 + $0x4a] ss:$2 sm:$0xff]  ;;  %vm6436_vm1 = vcmask 0  }
 0x16b   : > { %2090 = vst.msk [vmem:[#allocation2 + $0x169] sm:$0xff] %vm346_vm2, %v2057_v43  ;;  %v2060_v19 = vsel %vm1996_vm4, %v1964_v54, %v2028_v3  ;;  %vm1995_vm5 = vcmp.ge.f32.partialorder %v1963_v42, 0.0  ;;  %v2027_v30 = vmul.f32 0.2, %v1963_v42  ;;  %v2712_v27 = vld [vmem:[#allocation2 + $0x78] ss:$2 sm:$0xff] }
 0x16c   : > { %2093 = vst.msk [vmem:[#allocation2 + $0x189] sm:$0xff] %vm346_vm2, %v2060_v19  ;;  %v2870_v17 = vld [vmem:[#allocation2 + $0x79] ss:$2 sm:$0xff]  ;;  %v2872_v29 = vld [vmem:[#allocation2 + $0xa9] ss:$2 sm:$0xff] }
 0x16d   : > { %v2059_v5 = vsel %vm1995_vm5, %v1963_v42, %v2027_v30  ;;  %v2128_v35 = vld [vmem:[#allocation2 + $0x151] ss:$2 sm:$0xff]  ;;  %v2108_v36 = vld [vmem:[#allocation2 + $0x150] ss:$2 sm:$0xff]  ;;  %v3358_v55 = vld [vmem:[#allocation5 + $0x110] sm:$0xff] }
 0x16e   : > { %2092 = vst.msk [vmem:[#allocation2 + $0x181] sm:$0xff] %vm346_vm2, %v2059_v5  ;;  %7844 = vmatmul.mubr.msk.f32.gmra.mxu0 %vm346_vm2, %v2128_v35  ;;  %7864 = vmatmul.mubr.msk.f32.gmra.mxu1 %vm346_vm2, %v2108_v36  ;;  %v2407_v7 = vld [vmem:[#allocation2 + $0x152] ss:$2 sm:$0xff]  ;;  %v2565_v39 = vld [vmem:[#allocation2 + $0x153] ss:$2 sm:$0xff]  ;;  %v3359_v52 = vld [vmem:[#allocation5 + $0x118] sm:$0xff] }
 0x16f   : > { %7874 = vmatprep.mubr.msk.f32.mxu0 %vm346_vm2, %v2393_v34  ;;  %7894 = vmatprep.mubr.msk.f32.mxu1 %vm346_vm2, %v2551_v4  ;;  %v2716_v14 = vld [vmem:[#allocation2 + $0xd8] ss:$2 sm:$0xff]  ;;  %v2874_v40 = vld [vmem:[#allocation2 + $0xd9] ss:$2 sm:$0xff]  ;;  %v2718_v51 = vld [vmem:[#allocation2 + $0x108] ss:$2 sm:$0xff] }
 0x170   : > { %v2876_v41 = vld [vmem:[#allocation2 + $0x109] ss:$2 sm:$0xff]  ;;  %v2720_v12 = vld [vmem:[#allocation2 + $0x138] ss:$2 sm:$0xff]  ;;  %v2878_v13 = vld [vmem:[#allocation2 + $0x139] ss:$2 sm:$0xff] }
 0x171   : > { %v3040_v15 = vld [vmem:[#allocation5 + $0xc0] sm:$0xff]  ;;  %v3024_v63 = vld [vmem:[#allocation2 + $0x1a] ss:$2 sm:$0xff]  ;;  %v3517_v53 = vld [vmem:[#allocation5 + $0x138] sm:$0xff] }
 0x172   : > { %7875 = vmatmul.mubr.msk.f32.vlgmr.msra.gmra.mxu0 %vm346_vm2, %v2395_v22  ;;  %7895 = vmatmul.mubr.msk.f32.vlgmr.msra.gmra.mxu1 %vm346_vm2, %v2553_v31  ;;  %v3198_v32 = vld [vmem:[#allocation5 + $0xe0] sm:$0xff]  ;;  %v3182_v10 = vld [vmem:[#allocation2 + $0x1b] ss:$2 sm:$0xff]  ;;  %v3028_v0 = vld [vmem:[#allocation2 + $0x7a] ss:$2 sm:$0xff] }
 0x173   : > { %7877 = vmatprep.mubr.msk.f32.mxu0 %vm346_vm2, %v2397_v57  ;;  %7897 = vmatprep.mubr.msk.f32.mxu1 %vm346_vm2, %v2555_v37  ;;  %v2722_v33 = vld [vmem:[#allocation2 + $0x168] ss:$2 sm:$0xff]  ;;  %v2880_v62 = vld [vmem:[#allocation2 + $0x169] ss:$2 sm:$0xff]  ;;  %v3357_v43 = vld [vmem:[#allocation5 + $0x108] sm:$0xff] }
 0x174   : > { %7907 = vmatpush3.msra.mxu0 %v9383_v8  ;;  %7927 = vmatpush3.msra.mxu1 %v9390_v49  ;;  %v2403_v8 = vld [vmem:[#allocation2 + $0xf2] ss:$2 sm:$0xff]  ;;  %v2561_v49 = vld [vmem:[#allocation2 + $0xf3] ss:$2 sm:$0xff] }
 0x175   : > { %7908 = vmatprep.subr.mxu0 %v2726_v56  ;;  %7928 = vmatprep.subr.mxu1 %v2884_v44  ;;  %v3184_v54 = vld [vmem:[#allocation2 + $0x4b] ss:$2 sm:$0xff]  ;;  %v3186_v1 = vld [vmem:[#allocation2 + $0x7b] ss:$2 sm:$0xff]  ;;  %v3030_v3 = vld [vmem:[#allocation2 + $0xaa] ss:$2 sm:$0xff] }
 0x176   : > { %7878 = vmatmul.mubr.msk.f32.gmra.mxu0 %vm346_vm2, %v2399_v45  ;;  %7898 = vmatmul.mubr.msk.f32.gmra.mxu1 %vm346_vm2, %v2557_v20  ;;  %v3516_v2 = vld [vmem:[#allocation5 + $0x130] sm:$0xff]  ;;  %v3188_v42 = vld [vmem:[#allocation2 + $0xab] ss:$2 sm:$0xff]  ;;  %v3034_v4 = vld [vmem:[#allocation2 + $0x10a] ss:$2 sm:$0xff] }
 0x177   : > { %7880 = vmatprep.mubr.msk.f32.mxu0 %vm346_vm2, %v2401_v47  ;;  %7900 = vmatprep.mubr.msk.f32.mxu1 %vm346_vm2, %v2559_v21  ;;  %v3032_v19 = vld [vmem:[#allocation2 + $0xda] ss:$2 sm:$0xff]  ;;  %v3190_v30 = vld [vmem:[#allocation2 + $0xdb] ss:$2 sm:$0xff]  ;;  %v3192_v5 = vld [vmem:[#allocation2 + $0x10b] ss:$2 sm:$0xff] }
 0x178   : > { %7909 = vmatpush3.msra.mxu0 %v2726_v56  ;;  %7929 = vmatpush3.msra.mxu1 %v2884_v44  ;;  %v3515_v34 = vld [vmem:[#allocation5 + $0x128] sm:$0xff]  ;;  %v3356_v35 = vld [vmem:[#allocation5 + $0x100] sm:$0xff]  ;;  %v3675_v44 = vld [vmem:[#allocation5 + $0x158] sm:$0xff] }
 0x179   : > { %7910 = vmatprep.subr.mxu0 %v2725_v46  ;;  %7930 = vmatprep.subr.mxu1 %v2883_v23  ;;  %v3036_v36 = vld [vmem:[#allocation2 + $0x13a] ss:$2 sm:$0xff]  ;;  %v3194_v22 = vld [vmem:[#allocation2 + $0x13b] ss:$2 sm:$0xff]  ;;  %v3514_v31 = vld [vmem:[#allocation5 + $0x120] sm:$0xff] }
 0x17a   : > { %7881 = vmatmul.mubr.msk.f32.gmra.mxu0 %vm346_vm2, %v2403_v8  ;;  %7901 = vmatmul.mubr.msk.f32.gmra.mxu1 %vm346_vm2, %v2561_v49  ;;  %v3038_v56 = vld [vmem:[#allocation2 + $0x16a] ss:$2 sm:$0xff]  ;;  %v3196_v57 = vld [vmem:[#allocation2 + $0x16b] ss:$2 sm:$0xff]  ;;  %v3674_v21 = vld [vmem:[#allocation5 + $0x150] sm:$0xff] }
 0x17b   : > { %7883 = vmatprep.mubr.msk.f32.mxu0 %vm346_vm2, %v2405_v59  ;;  %7903 = vmatprep.mubr.msk.f32.mxu1 %vm346_vm2, %v2563_v38  ;;  %v3340_v37 = vld [vmem:[#allocation2 + $0x30] ss:$2 sm:$0xff]  ;;  %v3498_v20 = vld [vmem:[#allocation2 + $0x31] ss:$2 sm:$0xff]  ;;  %v3500_v47 = vld [vmem:[#allocation2 + $0x61] ss:$2 sm:$0xff] }
 0x17c   : > { %7911 = vmatpush3.msra.mxu0 %v2725_v46  ;;  %7931 = vmatpush3.msra.mxu1 %v2883_v23  ;;  %v3833_v45 = vld [vmem:[#allocation5 + $0x178] sm:$0xff]  ;;  %v3502_v8 = vld [vmem:[#allocation2 + $0x91] ss:$2 sm:$0xff]  ;;  %v3832_v49 = vld [vmem:[#allocation5 + $0x170] sm:$0xff] }
 0x17d   : > { %7912 = vmatprep.subr.mxu0 %v2724_v58  ;;  %7932 = vmatprep.subr.mxu1 %v2882_v6  ;;  %v3342_v46 = vld [vmem:[#allocation2 + $0x60] ss:$2 sm:$0xff]  ;;  %v3344_v23 = vld [vmem:[#allocation2 + $0x90] ss:$2 sm:$0xff]  ;;  %v3504_v59 = vld [vmem:[#allocation2 + $0xc1] ss:$2 sm:$0xff] }
 0x17e   : > { %7884 = vmatmul.mubr.msk.f32.gmra.mxu0 %vm346_vm2, %v2407_v7  ;;  %7904 = vmatmul.mubr.msk.f32.gmra.mxu1 %vm346_vm2, %v2565_v39  ;;  %v3673_v38 = vld [vmem:[#allocation5 + $0x148] sm:$0xff] }
 0x17f   : > { %7913 = vmatpush3.msra.mxu0 %v2724_v58  ;;  %7914 = vmatprep.mubr.msk.f32.mxu0 %vm346_vm2, %v2708_v24  ;;  %v3346_v58 = vld [vmem:[#allocation2 + $0xc0] ss:$2 sm:$0xff]  ;;  %v3506_v7 = vld [vmem:[#allocation2 + $0xf1] ss:$2 sm:$0xff] }
 0x180   : > { %7934 = vmatprep.mubr.msk.f32.mxu1 %vm346_vm2, %v2866_v9  ;;  %7933 = vmatpush3.msra.mxu1 %v2882_v6  ;;  %v3348_v6 = vld [vmem:[#allocation2 + $0xf0] ss:$2 sm:$0xff]  ;;  %v3350_v24 = vld [vmem:[#allocation2 + $0x120] ss:$2 sm:$0xff] }
 0x181   : > { %7946 = vmatprep.subr.mxu0 %v3043_v48  ;;  %7966 = vmatprep.subr.mxu1 %v3201_v25  ;;  %v3831_v39 = vld [vmem:[#allocation5 + $0x168] sm:$0xff] }
 0x182   : > { %7915 = vmatmul.mubr.msk.f32.vlgmr.msra.gmra.mxu0 %vm346_vm2, %v2710_v26  ;;  %7935 = vmatmul.mubr.msk.f32.vlgmr.msra.gmra.mxu1 %vm346_vm2, %v2868_v60  ;;  %v3352_v9 = vld [vmem:[#allocation2 + $0x150] ss:$2 sm:$0xff]  ;;  %v3510_v26 = vld [vmem:[#allocation2 + $0x151] ss:$2 sm:$0xff] }
 0x183   : > { %7917 = vmatprep.mubr.msk.f32.mxu0 %vm346_vm2, %v2712_v27  ;;  %7937 = vmatprep.mubr.msk.f32.mxu1 %vm346_vm2, %v2870_v17  ;;  %v3830_v60 = vld [vmem:[#allocation5 + $0x160] sm:$0xff]  ;;  %v3512_v27 = vld [vmem:[#allocation2 + $0x181] ss:$2 sm:$0xff] }
 0x184   : > { %7947 = vmatpush3.msra.mxu0 %v3043_v48  ;;  %7967 = vmatpush3.msra.mxu1 %v3201_v25  ;;  %v3508_v48 = vld [vmem:[#allocation2 + $0x121] ss:$2 sm:$0xff]  ;;  %v3672_v25 = vld [vmem:[#allocation5 + $0x140] sm:$0xff] }
 0x185   : > { %7948 = vmatprep.subr.mxu0 %v3042_v61  ;;  %7968 = vmatprep.subr.mxu1 %v3200_v18  ;;  %v3656_v17 = vld [vmem:[#allocation2 + $0x32] ss:$2 sm:$0xff] }
 0x186   : > { %7918 = vmatmul.mubr.msk.f32.gmra.mxu0 %vm346_vm2, %v2714_v28  ;;  %7938 = vmatmul.mubr.msk.f32.gmra.mxu1 %vm346_vm2, %v2872_v29  ;;  %v4149_v28 = vld [vmem:[#allocation5 + $0x1b8] sm:$0xff]  ;;  %v3814_v29 = vld [vmem:[#allocation2 + $0x33] ss:$2 sm:$0xff] }
 0x187   : > { %7920 = vmatprep.mubr.msk.f32.mxu0 %vm346_vm2, %v2716_v14  ;;  %7940 = vmatprep.mubr.msk.f32.mxu1 %vm346_vm2, %v2874_v40  ;;  %v3816_v14 = vld [vmem:[#allocation2 + $0x63] ss:$2 sm:$0xff] }
 0x188   : > { %7949 = vmatpush3.msra.mxu0 %v3042_v61  ;;  %7969 = vmatpush3.msra.mxu1 %v3200_v18  ;;  %v3354_v61 = vld [vmem:[#allocation2 + $0x180] ss:$2 sm:$0xff] }
 0x189   : > { %7950 = vmatprep.subr.mxu0 %v3041_v16  ;;  %7970 = vmatprep.subr.mxu1 %v3199_v50  ;;  %v3991_v18 = vld [vmem:[#allocation5 + $0x198] sm:$0xff]  ;;  %v3990_v40 = vld [vmem:[#allocation5 + $0x190] sm:$0xff] }
 0x18a   : > { %7921 = vmatmul.mubr.msk.f32.gmra.mxu0 %vm346_vm2, %v2718_v51  ;;  %7941 = vmatmul.mubr.msk.f32.gmra.mxu1 %vm346_vm2, %v2876_v41  ;;  %v3818_v51 = vld [vmem:[#allocation2 + $0x93] ss:$2 sm:$0xff] }
 0x18b   : > { %7923 = vmatprep.mubr.msk.f32.mxu0 %vm346_vm2, %v2720_v12  ;;  %7943 = vmatprep.mubr.msk.f32.mxu1 %vm346_vm2, %v2878_v13  ;;  %v4148_v41 = vld [vmem:[#allocation5 + $0x1b0] sm:$0xff]  ;;  %v3989_v13 = vld [vmem:[#allocation5 + $0x188] sm:$0xff] }
 0x18c   : > { %7951 = vmatpush3.msra.mxu0 %v3041_v16  ;;  %7971 = vmatpush3.msra.mxu1 %v3199_v50  ;;  %v3658_v16 = vld [vmem:[#allocation2 + $0x62] ss:$2 sm:$0xff]  ;;  %v3660_v50 = vld [vmem:[#allocation2 + $0x92] ss:$2 sm:$0xff]  ;;  %v3820_v12 = vld [vmem:[#allocation2 + $0xc3] ss:$2 sm:$0xff] }
 0x18d   : > { %7952 = vmatprep.subr.mxu0 %v3040_v15  ;;  %7972 = vmatprep.subr.mxu1 %v3198_v32 }
 0x18e   : > { %7924 = vmatmul.mubr.msk.f32.gmra.mxu0 %vm346_vm2, %v2722_v33  ;;  %7944 = vmatmul.mubr.msk.f32.gmra.mxu1 %vm346_vm2, %v2880_v62  ;;  %v3822_v33 = vld [vmem:[#allocation2 + $0xf3] ss:$2 sm:$0xff] }
 0x18f   : > { %7953 = vmatpush3.msra.mxu0 %v3040_v15  ;;  %7954 = vmatprep.mubr.msk.f32.mxu0 %vm346_vm2, %v3024_v63  ;;  %v3662_v15 = vld [vmem:[#allocation2 + $0xc2] ss:$2 sm:$0xff]  ;;  %v4147_v62 = vld [vmem:[#allocation5 + $0x1a8] sm:$0xff] }
 0x190   : > { %7974 = vmatprep.mubr.msk.f32.mxu1 %vm346_vm2, %v3182_v10  ;;  %7973 = vmatpush3.msra.mxu1 %v3198_v32  ;;  %v3664_v32 = vld [vmem:[#allocation2 + $0xf2] ss:$2 sm:$0xff]  ;;  %v3666_v63 = vld [vmem:[#allocation2 + $0x122] ss:$2 sm:$0xff] }
 0x191   : > { %7986 = vmatprep.subr.mxu0 %v3359_v52  ;;  %8006 = vmatprep.subr.mxu1 %v3517_v53  ;;  %v3668_v10 = vld [vmem:[#allocation2 + $0x152] ss:$2 sm:$0xff] }
 0x192   : > { %7955 = vmatmul.mubr.msk.f32.vlgmr.msra.gmra.mxu0 %vm346_vm2, %v3026_v11  ;;  %7975 = vmatmul.mubr.msk.f32.vlgmr.msra.gmra.mxu1 %vm346_vm2, %v3184_v54  ;;  %v3826_v11 = vld [vmem:[#allocation2 + $0x153] ss:$2 sm:$0xff] }
 0x193   : > { %7957 = vmatprep.mubr.msk.f32.mxu0 %vm346_vm2, %v3028_v0  ;;  %7977 = vmatprep.mubr.msk.f32.mxu1 %vm346_vm2, %v3186_v1  ;;  %v4146_v54 = vld [vmem:[#allocation5 + $0x1a0] sm:$0xff] }
 0x194   : > { %7987 = vmatpush3.msra.mxu0 %v3359_v52  ;;  %8007 = vmatpush3.msra.mxu1 %v3517_v53  ;;  %v3824_v52 = vld [vmem:[#allocation2 + $0x123] ss:$2 sm:$0xff]  ;;  %v3972_v1 = vld [vmem:[#allocation2 + $0x48] ss:$2 sm:$0xff] }
 0x195   : > { %7988 = vmatprep.subr.mxu0 %v3358_v55  ;;  %8008 = vmatprep.subr.mxu1 %v3516_v2  ;;  %v3988_v53 = vld [vmem:[#allocation5 + $0x180] sm:$0xff] }
 0x196   : > { %7958 = vmatmul.mubr.msk.f32.gmra.mxu0 %vm346_vm2, %v3030_v3  ;;  %7978 = vmatmul.mubr.msk.f32.gmra.mxu1 %vm346_vm2, %v3188_v42  ;;  %v3828_v0 = vld [vmem:[#allocation2 + $0x183] ss:$2 sm:$0xff] }
 0x197   : > { %7960 = vmatprep.mubr.msk.f32.mxu0 %vm346_vm2, %v3032_v19  ;;  %7980 = vmatprep.mubr.msk.f32.mxu1 %vm346_vm2, %v3190_v30  ;;  %v4465_v3 = vld [vmem:[#allocation5 + $0x1f8] sm:$0xff]  ;;  %v4132_v19 = vld [vmem:[#allocation2 + $0x79] ss:$2 sm:$0xff] }
 0x198   : > { %7989 = vmatpush3.msra.mxu0 %v3358_v55  ;;  %8009 = vmatpush3.msra.mxu1 %v3516_v2  ;;  %v3670_v55 = vld [vmem:[#allocation2 + $0x182] ss:$2 sm:$0xff]  ;;  %v4130_v42 = vld [vmem:[#allocation2 + $0x49] ss:$2 sm:$0xff] }
 0x199   : > { %7990 = vmatprep.subr.mxu0 %v3357_v43  ;;  %8010 = vmatprep.subr.mxu1 %v3515_v34  ;;  %v4307_v2 = vld [vmem:[#allocation5 + $0x1d8] sm:$0xff]  ;;  %v4306_v30 = vld [vmem:[#allocation5 + $0x1d0] sm:$0xff] }
 0x19a   : > { %7961 = vmatmul.mubr.msk.f32.gmra.mxu0 %vm346_vm2, %v3034_v4  ;;  %7981 = vmatmul.mubr.msk.f32.gmra.mxu1 %vm346_vm2, %v3192_v5  ;;  %v4134_v4 = vld [vmem:[#allocation2 + $0xa9] ss:$2 sm:$0xff]  ;;  %v4464_v5 = vld [vmem:[#allocation5 + $0x1f0] sm:$0xff] }
 0x19b   : > { %7963 = vmatprep.mubr.msk.f32.mxu0 %vm346_vm2, %v3036_v36  ;;  %7983 = vmatprep.mubr.msk.f32.mxu1 %vm346_vm2, %v3194_v22  ;;  %v4136_v36 = vld [vmem:[#allocation2 + $0xd9] ss:$2 sm:$0xff] }
 0x19c   : > { %7991 = vmatpush3.msra.mxu0 %v3357_v43  ;;  %8011 = vmatpush3.msra.mxu1 %v3515_v34  ;;  %v3974_v43 = vld [vmem:[#allocation2 + $0x78] ss:$2 sm:$0xff]  ;;  %v3976_v34 = vld [vmem:[#allocation2 + $0xa8] ss:$2 sm:$0xff] }
 0x19d   : > { %7992 = vmatprep.subr.mxu0 %v3356_v35  ;;  %8012 = vmatprep.subr.mxu1 %v3514_v31  ;;  %v4305_v22 = vld [vmem:[#allocation5 + $0x1c8] sm:$0xff] }
 0x19e   : > { %7964 = vmatmul.mubr.msk.f32.gmra.mxu0 %vm346_vm2, %v3038_v56  ;;  %7984 = vmatmul.mubr.msk.f32.gmra.mxu1 %vm346_vm2, %v3196_v57  ;;  %v4138_v56 = vld [vmem:[#allocation2 + $0x109] ss:$2 sm:$0xff]  ;;  %v4463_v57 = vld [vmem:[#allocation5 + $0x1e8] sm:$0xff] }
 0x19f   : > { %7993 = vmatpush3.msra.mxu0 %v3356_v35  ;;  %7994 = vmatprep.mubr.msk.f32.mxu0 %vm346_vm2, %v3340_v37  ;;  %v3978_v35 = vld [vmem:[#allocation2 + $0xd8] ss:$2 sm:$0xff] }
 0x1a0   : > { %8014 = vmatprep.mubr.msk.f32.mxu1 %vm346_vm2, %v3498_v20  ;;  %8013 = vmatpush3.msra.mxu1 %v3514_v31  ;;  %v3980_v31 = vld [vmem:[#allocation2 + $0x108] ss:$2 sm:$0xff]  ;;  %v3982_v37 = vld [vmem:[#allocation2 + $0x138] ss:$2 sm:$0xff] }
 0x1a1   : > { %8026 = vmatprep.subr.mxu0 %v3675_v44  ;;  %8046 = vmatprep.subr.mxu1 %v3833_v45  ;;  %v3984_v20 = vld [vmem:[#allocation2 + $0x168] ss:$2 sm:$0xff] }
 0x1a2   : > { %7995 = vmatmul.mubr.msk.f32.vlgmr.msra.gmra.mxu0 %vm346_vm2, %v3342_v46  ;;  %8015 = vmatmul.mubr.msk.f32.vlgmr.msra.gmra.mxu1 %vm346_vm2, %v3500_v47  ;;  %v4142_v46 = vld [vmem:[#allocation2 + $0x169] ss:$2 sm:$0xff] }
 0x1a3   : > { %7997 = vmatprep.mubr.msk.f32.mxu0 %vm346_vm2, %v3344_v23  ;;  %8017 = vmatprep.mubr.msk.f32.mxu1 %vm346_vm2, %v3502_v8  ;;  %v4462_v47 = vld [vmem:[#allocation5 + $0x1e0] sm:$0xff]  ;;  %v4144_v23 = vld [vmem:[#allocation2 + $0x199] ss:$2 sm:$0xff] }
 0x1a4   : > { %8027 = vmatpush3.msra.mxu0 %v3675_v44  ;;  %8047 = vmatpush3.msra.mxu1 %v3833_v45  ;;  %v4140_v44 = vld [vmem:[#allocation2 + $0x139] ss:$2 sm:$0xff]  ;;  %v4304_v45 = vld [vmem:[#allocation5 + $0x1c0] sm:$0xff] }
 0x1a5   : > { %8028 = vmatprep.subr.mxu0 %v3674_v21  ;;  %8048 = vmatprep.subr.mxu1 %v3832_v49  ;;  %v4288_v8 = vld [vmem:[#allocation2 + $0x4a] ss:$2 sm:$0xff] }
 0x1a6   : > { %7998 = vmatmul.mubr.msk.f32.gmra.mxu0 %vm346_vm2, %v3346_v58  ;;  %8018 = vmatmul.mubr.msk.f32.gmra.mxu1 %vm346_vm2, %v3504_v59  ;;  %v4290_v58 = vld [vmem:[#allocation2 + $0x7a] ss:$2 sm:$0xff]  ;;  %v4448_v59 = vld [vmem:[#allocation2 + $0x7b] ss:$2 sm:$0xff] }
 0x1a7   : > { %8000 = vmatprep.mubr.msk.f32.mxu0 %vm346_vm2, %v3348_v6  ;;  %8020 = vmatprep.mubr.msk.f32.mxu1 %vm346_vm2, %v3506_v7  ;;  %v4450_v6 = vld [vmem:[#allocation2 + $0xab] ss:$2 sm:$0xff]  ;;  %v4294_v7 = vld [vmem:[#allocation2 + $0xda] ss:$2 sm:$0xff] }
 0x1a8   : > { %8029 = vmatpush3.msra.mxu0 %v3674_v21  ;;  %8049 = vmatpush3.msra.mxu1 %v3832_v49  ;;  %v3986_v21 = vld [vmem:[#allocation2 + $0x198] ss:$2 sm:$0xff]  ;;  %v4446_v49 = vld [vmem:[#allocation2 + $0x4b] ss:$2 sm:$0xff] }
 0x1a9   : > { %8030 = vmatprep.subr.mxu0 %v3673_v38  ;;  %8050 = vmatprep.subr.mxu1 %v3831_v39 }
 0x1aa   : > { %8001 = vmatmul.mubr.msk.f32.gmra.mxu0 %vm346_vm2, %v3350_v24  ;;  %8021 = vmatmul.mubr.msk.f32.gmra.mxu1 %vm346_vm2, %v3508_v48  ;;  %v4296_v24 = vld [vmem:[#allocation2 + $0x10a] ss:$2 sm:$0xff]  ;;  %v4454_v48 = vld [vmem:[#allocation2 + $0x10b] ss:$2 sm:$0xff] }
 0x1ab   : > { %8003 = vmatprep.mubr.msk.f32.mxu0 %vm346_vm2, %v3352_v9  ;;  %8023 = vmatprep.mubr.msk.f32.mxu1 %vm346_vm2, %v3510_v26  ;;  %v4456_v9 = vld [vmem:[#allocation2 + $0x13b] ss:$2 sm:$0xff]  ;;  %v4300_v26 = vld [vmem:[#allocation2 + $0x16a] ss:$2 sm:$0xff] }
 0x1ac   : > { %8031 = vmatpush3.msra.mxu0 %v3673_v38  ;;  %8051 = vmatpush3.msra.mxu1 %v3831_v39  ;;  %v4292_v38 = vld [vmem:[#allocation2 + $0xaa] ss:$2 sm:$0xff]  ;;  %v4452_v39 = vld [vmem:[#allocation2 + $0xdb] ss:$2 sm:$0xff] }
 0x1ad   : > { %8032 = vmatprep.subr.mxu0 %v3672_v25  ;;  %8052 = vmatprep.subr.mxu1 %v3830_v60 }
 0x1ae   : > { %8004 = vmatmul.mubr.msk.f32.gmra.mxu0 %vm346_vm2, %v3354_v61  ;;  %8024 = vmatmul.mubr.msk.f32.gmra.mxu1 %vm346_vm2, %v3512_v27  ;;  %v4302_v61 = vld [vmem:[#allocation2 + $0x19a] ss:$2 sm:$0xff]  ;;  %v4460_v27 = vld [vmem:[#allocation2 + $0x19b] ss:$2 sm:$0xff] }
 0x1af   : > { %8033 = vmatpush3.msra.mxu0 %v3672_v25  ;;  %8034 = vmatprep.mubr.msk.f32.mxu0 %vm346_vm2, %v3656_v17  ;;  %v4298_v25 = vld [vmem:[#allocation2 + $0x13a] ss:$2 sm:$0xff] }
 0x1b0   : > { %8054 = vmatprep.mubr.msk.f32.mxu1 %vm346_vm2, %v3814_v29  ;;  %8053 = vmatpush3.msra.mxu1 %v3830_v60  ;;  %v4458_v60 = vld [vmem:[#allocation2 + $0x16b] ss:$2 sm:$0xff] }
 0x1b1   : > { %8066 = vmatprep.subr.mxu0 %v3991_v18  ;;  %8086 = vmatprep.subr.mxu1 %v4149_v28 }
 0x1b2   : > { %8035 = vmatmul.mubr.msk.f32.vlgmr.msra.gmra.mxu0 %vm346_vm2, %v3658_v16  ;;  %8055 = vmatmul.mubr.msk.f32.vlgmr.msra.gmra.mxu1 %vm346_vm2, %v3816_v14 }
 0x1b3   : > { %8037 = vmatprep.mubr.msk.f32.mxu0 %vm346_vm2, %v3660_v50  ;;  %8057 = vmatprep.mubr.msk.f32.mxu1 %vm346_vm2, %v3818_v51 }
 0x1b4   : > { %8067 = vmatpush3.msra.mxu0 %v3991_v18  ;;  %8087 = vmatpush3.msra.mxu1 %v4149_v28 }
 0x1b5   : > { %8068 = vmatprep.subr.mxu0 %v3990_v40  ;;  %8088 = vmatprep.subr.mxu1 %v4148_v41 }
 0x1b6   : > { %8038 = vmatmul.mubr.msk.f32.gmra.mxu0 %vm346_vm2, %v3662_v15  ;;  %8058 = vmatmul.mubr.msk.f32.gmra.mxu1 %vm346_vm2, %v3820_v12 }
 0x1b7   : > { %8040 = vmatprep.mubr.msk.f32.mxu0 %vm346_vm2, %v3664_v32  ;;  %8060 = vmatprep.mubr.msk.f32.mxu1 %vm346_vm2, %v3822_v33 }
 0x1b8   : > { %8069 = vmatpush3.msra.mxu0 %v3990_v40  ;;  %8089 = vmatpush3.msra.mxu1 %v4148_v41 }
 0x1b9   : > { %8070 = vmatprep.subr.mxu0 %v3989_v13  ;;  %8090 = vmatprep.subr.mxu1 %v4147_v62 }
 0x1ba   : > { %8041 = vmatmul.mubr.msk.f32.gmra.mxu0 %vm346_vm2, %v3666_v63  ;;  %8061 = vmatmul.mubr.msk.f32.gmra.mxu1 %vm346_vm2, %v3824_v52 }
 0x1bb   : > { %8043 = vmatprep.mubr.msk.f32.mxu0 %vm346_vm2, %v3668_v10  ;;  %8063 = vmatprep.mubr.msk.f32.mxu1 %vm346_vm2, %v3826_v11 }
 0x1bc   : > { %8071 = vmatpush3.msra.mxu0 %v3989_v13  ;;  %8091 = vmatpush3.msra.mxu1 %v4147_v62  ;;  %v10332_v13 = vmov 0.0  }
 0x1bd   : > { %8072 = vmatprep.subr.mxu0 %v3988_v53  ;;  %8092 = vmatprep.subr.mxu1 %v4146_v54  ;;  %403 = vst.msk [vmem:[#allocation3] sm:$0xff] %vm402_vm6, %v10332_v13  ;;  %406 = vst.msk [vmem:[#allocation3 + $0x10] sm:$0xff] %vm402_vm6, %v10332_v13 }
 0x1be   : > { %8044 = vmatmul.mubr.msk.f32.gmra.mxu0 %vm346_vm2, %v3670_v55  ;;  %8064 = vmatmul.mubr.msk.f32.gmra.mxu1 %vm346_vm2, %v3828_v0  ;;  %408 = vst.msk [vmem:[#allocation3 + $0x20] sm:$0xff] %vm402_vm6, %v10332_v13  ;;  %410 = vst.msk [vmem:[#allocation3 + $0x30] sm:$0xff] %vm402_vm6, %v10332_v13 }
 0x1bf   : > { %8073 = vmatpush3.msra.mxu0 %v3988_v53  ;;  %8074 = vmatprep.mubr.msk.f32.mxu0 %vm346_vm2, %v3972_v1  ;;  %412 = vst.msk [vmem:[#allocation3 + $0x40] sm:$0xff] %vm402_vm6, %v10332_v13  ;;  %414 = vst.msk [vmem:[#allocation3 + $0x50] sm:$0xff] %vm402_vm6, %v10332_v13 }
 0x1c0   : > { %8094 = vmatprep.mubr.msk.f32.mxu1 %vm346_vm2, %v4130_v42  ;;  %8093 = vmatpush3.msra.mxu1 %v4146_v54  ;;  %416 = vst.msk [vmem:[#allocation3 + $0x60] sm:$0xff] %vm402_vm6, %v10332_v13  ;;  %418 = vst.msk [vmem:[#allocation3 + $0x70] sm:$0xff] %vm402_vm6, %v10332_v13 }
 0x1c1   : > { %8106 = vmatprep.subr.mxu0 %v4307_v2  ;;  %8126 = vmatprep.subr.mxu1 %v4465_v3  ;;  %420 = vst.msk [vmem:[#allocation3 + $0x80] sm:$0xff] %vm402_vm6, %v10332_v13  ;;  %422 = vst.msk [vmem:[#allocation3 + $0x90] sm:$0xff] %vm402_vm6, %v10332_v13 }
 0x1c2   : > { %8075 = vmatmul.mubr.msk.f32.vlgmr.msra.gmra.mxu0 %vm346_vm2, %v3974_v43  ;;  %8095 = vmatmul.mubr.msk.f32.vlgmr.msra.gmra.mxu1 %vm346_vm2, %v4132_v19 }
 0x1c3   : > { %8077 = vmatprep.mubr.msk.f32.mxu0 %vm346_vm2, %v3976_v34  ;;  %8097 = vmatprep.mubr.msk.f32.mxu1 %vm346_vm2, %v4134_v4 }
 0x1c4   : > { %8107 = vmatpush3.msra.mxu0 %v4307_v2  ;;  %8127 = vmatpush3.msra.mxu1 %v4465_v3 }
 0x1c5   : > { %8108 = vmatprep.subr.mxu0 %v4306_v30  ;;  %8128 = vmatprep.subr.mxu1 %v4464_v5 }
 0x1c6   : > { %8078 = vmatmul.mubr.msk.f32.gmra.mxu0 %vm346_vm2, %v3978_v35  ;;  %8098 = vmatmul.mubr.msk.f32.gmra.mxu1 %vm346_vm2, %v4136_v36 }
 0x1c7   : > { %8080 = vmatprep.mubr.msk.f32.mxu0 %vm346_vm2, %v3980_v31  ;;  %8100 = vmatprep.mubr.msk.f32.mxu1 %vm346_vm2, %v4138_v56 }
 0x1c8   : > { %8109 = vmatpush3.msra.mxu0 %v4306_v30  ;;  %8129 = vmatpush3.msra.mxu1 %v4464_v5 }
 0x1c9   : > { %8110 = vmatprep.subr.mxu0 %v4305_v22  ;;  %8130 = vmatprep.subr.mxu1 %v4463_v57 }
 0x1ca   : > { %8081 = vmatmul.mubr.msk.f32.gmra.mxu0 %vm346_vm2, %v3982_v37  ;;  %8101 = vmatmul.mubr.msk.f32.gmra.mxu1 %vm346_vm2, %v4140_v44 }
 0x1cb   : > { %8083 = vmatprep.mubr.msk.f32.mxu0 %vm346_vm2, %v3984_v20  ;;  %8103 = vmatprep.mubr.msk.f32.mxu1 %vm346_vm2, %v4142_v46 }
 0x1cc   : > { %8111 = vmatpush3.msra.mxu0 %v4305_v22  ;;  %8131 = vmatpush3.msra.mxu1 %v4463_v57 }
 0x1cd   : > { %8112 = vmatprep.subr.mxu0 %v4304_v45  ;;  %8132 = vmatprep.subr.mxu1 %v4462_v47 }
 0x1ce   : > { %8084 = vmatmul.mubr.msk.f32.gmra.mxu0 %vm346_vm2, %v3986_v21  ;;  %8104 = vmatmul.mubr.msk.f32.gmra.mxu1 %vm346_vm2, %v4144_v23 }
 0x1cf   : > { %8113 = vmatpush3.msra.mxu0 %v4304_v45  ;;  %8114 = vmatprep.mubr.msk.f32.mxu0 %vm346_vm2, %v4288_v8 }
 0x1d0   : > { %8134 = vmatprep.mubr.msk.f32.mxu1 %vm346_vm2, %v4446_v49  ;;  %8133 = vmatpush3.msra.mxu1 %v4462_v47 }
 0x1d2   : > { %8115 = vmatmul.mubr.msk.f32.vlgmr.msra.gmra.mxu0 %vm346_vm2, %v4290_v58  ;;  %8135 = vmatmul.mubr.msk.f32.vlgmr.msra.gmra.mxu1 %vm346_vm2, %v4448_v59 }
 0x1d3   : > { %8117 = vmatprep.mubr.msk.f32.mxu0 %vm346_vm2, %v4292_v38  ;;  %8137 = vmatprep.mubr.msk.f32.mxu1 %vm346_vm2, %v4450_v6 }
 0x1d6   : > { %8118 = vmatmul.mubr.msk.f32.gmra.mxu0 %vm346_vm2, %v4294_v7  ;;  %8138 = vmatmul.mubr.msk.f32.gmra.mxu1 %vm346_vm2, %v4452_v39 }
 0x1d7   : > { %8120 = vmatprep.mubr.msk.f32.mxu0 %vm346_vm2, %v4296_v24  ;;  %8140 = vmatprep.mubr.msk.f32.mxu1 %vm346_vm2, %v4454_v48 }
 0x1da   : > { %8121 = vmatmul.mubr.msk.f32.gmra.mxu0 %vm346_vm2, %v4298_v25  ;;  %8141 = vmatmul.mubr.msk.f32.gmra.mxu1 %vm346_vm2, %v4456_v9 }
 0x1db   : > { %8123 = vmatprep.mubr.msk.f32.mxu0 %vm346_vm2, %v4300_v26  ;;  %8143 = vmatprep.mubr.msk.f32.mxu1 %vm346_vm2, %v4458_v60 }
 0x1de   : > { %8124 = vmatmul.mubr.msk.f32.gmra.mxu0 %vm346_vm2, %v4302_v61  ;;  %8144 = vmatmul.mubr.msk.f32.gmra.mxu1 %vm346_vm2, %v4460_v27  ;;  %vm404_vm2 = vcmask 517120  }
 0x1df   : > { %407 = vst.msk [vmem:[#allocation3 + $0x18] sm:$0x3] %vm404_vm2, %v10332_v13  ;;  %409 = vst.msk [vmem:[#allocation3 + $0x28] sm:$0x3] %vm404_vm2, %v10332_v13 }
 0x1e0   : > { %411 = vst.msk [vmem:[#allocation3 + $0x38] sm:$0x3] %vm404_vm2, %v10332_v13  ;;  %413 = vst.msk [vmem:[#allocation3 + $0x48] sm:$0x3] %vm404_vm2, %v10332_v13 }
 0x1e1   : > { %415 = vst.msk [vmem:[#allocation3 + $0x58] sm:$0x3] %vm404_vm2, %v10332_v13  ;;  %417 = vst.msk [vmem:[#allocation3 + $0x68] sm:$0x3] %vm404_vm2, %v10332_v13 }
 0x1e2   : > { %419 = vst.msk [vmem:[#allocation3 + $0x78] sm:$0x3] %vm404_vm2, %v10332_v13  ;;  %421 = vst.msk [vmem:[#allocation3 + $0x88] sm:$0x3] %vm404_vm2, %v10332_v13 }
 0x1e3   : > { %405 = vst.msk [vmem:[#allocation3 + $0x8] sm:$0x3] %vm404_vm2, %v10332_v13  ;;  %423 = vst.msk [vmem:[#allocation3 + $0x98] sm:$0x3] %vm404_vm2, %v10332_v13 }
 0x1ff   : > { %v7836_v17 = vpop.f32.mrf.mxu0 }
 0x200   : > { %v7856_v18 = vpop.f32.mrf.mxu1 }
 0x201   : > { %v2359_v28 = vadd.f32 %v7856_v18, %v7836_v17  ;;  %v2224_v29 = vpop.f32.mrf.mxu0 }
 0x202   : > { %v2353_v16 = vpop.f32.mrf.mxu1 }
 0x203   : > { %v2354_v14 = vadd.f32 %v2353_v16, %v2224_v29 }
 0x20e   : > { %v7839_v40 = vpop.f32.mrf.mxu0 }
 0x20f   : > { %v7859_v50 = vpop.f32.mrf.mxu1 }
 0x210   : > { %v2369_v51 = vadd.f32 %v7859_v50, %v7839_v40  ;;  %v2234_v41 = vpop.f32.mrf.mxu0 }
 0x211   : > { %v2363_v15 = vpop.f32.mrf.mxu1 }
 0x212   : > { %v2364_v12 = vadd.f32 %v2363_v15, %v2234_v41 }
 0x21f   : > { %v7842_v32 = vpop.f32.mrf.mxu0 }
 0x220   : > { %v7862_v33 = vpop.f32.mrf.mxu1 }
 0x221   : > { %v2379_v62 = vadd.f32 %v7862_v33, %v7842_v32  ;;  %v2244_v63 = vpop.f32.mrf.mxu0 }
 0x222   : > { %v2373_v52 = vpop.f32.mrf.mxu1 }
 0x223   : > { %v2374_v53 = vadd.f32 %v2373_v52, %v2244_v63 }
 0x22e   : > { %v7845_v10 = vpop.f32.mrf.mxu0  ;;  %v7865_v11 = vpop.f32.mrf.mxu1 }
 0x22f   : > { %v2389_v54 = vadd.f32 %v7865_v11, %v7845_v10 }
 0x230   : > { %v2254_v55 = vpop.f32.mrf.mxu0  ;;  %v2383_v0 = vpop.f32.mrf.mxu1 }
 0x231   : > { %v2384_v1 = vadd.f32 %v2383_v0, %v2254_v55 }
 0x232   : > { %v7876_v2 = vpop.f32.mrf.mxu0  ;;  %v7896_v3 = vpop.f32.mrf.mxu1 }
 0x233   : > { %v2543_v42 = vadd.f32 %v7876_v2, %v2359_v28 }
 0x234   : > { %v2503_v43 = vpop.f32.mrf.mxu0  ;;  %v2661_v19 = vpop.f32.mrf.mxu1 }
 0x235   : > { %v2701_v30 = vadd.f32 %v7896_v3, %v2543_v42  ;;  %v2542_v34 = vadd.f32 %v2503_v43, %v2354_v14 }
 0x236   : > { %v7879_v4 = vpop.f32.mrf.mxu0  ;;  %v7899_v5 = vpop.f32.mrf.mxu1 }
 0x237   : > { %v9616_v35 = vadd.f32 %v2661_v19, %v2542_v34  ;;  %v2545_v36 = vadd.f32 %v7879_v4, %v2369_v51 }
 0x238   : > { %v2513_v22 = vpop.f32.mrf.mxu0  ;;  %v2671_v31 = vpop.f32.mrf.mxu1 }
 0x239   : > { %v2703_v56 = vadd.f32 %v7899_v5, %v2545_v36  ;;  %v2544_v57 = vadd.f32 %v2513_v22, %v2364_v12 }
 0x23a   : > { %v7882_v37 = vpop.f32.mrf.mxu0  ;;  %v7902_v44 = vpop.f32.mrf.mxu1 }
 0x23b   : > { %v9618_v45 = vadd.f32 %v2671_v31, %v2544_v57  ;;  %v2547_v20 = vadd.f32 %v7882_v37, %v2379_v62 }
 0x23c   : > { %v2523_v46 = vpop.f32.mrf.mxu0  ;;  %v2681_v47 = vpop.f32.mrf.mxu1 }
 0x23d   : > { %v2705_v21 = vadd.f32 %v7902_v44, %v2547_v20  ;;  %v2546_v23 = vadd.f32 %v2523_v46, %v2374_v53 }
 0x23e   : > { %v7885_v8 = vpop.f32.mrf.mxu0  ;;  %v7905_v49 = vpop.f32.mrf.mxu1 }
 0x23f   : > { %v9620_v58 = vadd.f32 %v2681_v47, %v2546_v23  ;;  %v2549_v59 = vadd.f32 %v7885_v8, %v2389_v54 }
 0x240   : > { %v2533_v38 = vpop.f32.mrf.mxu0  ;;  %v2691_v6 = vpop.f32.mrf.mxu1 }
 0x241   : > { %v2707_v7 = vadd.f32 %v7905_v49, %v2549_v59  ;;  %v2548_v39 = vadd.f32 %v2533_v38, %v2384_v1 }
 0x242   : > { %v7916_v24 = vpop.f32.mrf.mxu0  ;;  %v7936_v48 = vpop.f32.mrf.mxu1 }
 0x243   : > { %v9622_v25 = vadd.f32 %v2691_v6, %v2548_v39  ;;  %v2858_v9 = vadd.f32 %v7916_v24, %v2701_v30  ;;  %v6982_v24 = vld [vmem:[%s10288_s5 + $0x78] sm:$0xff] }
 0x244   : > { %v9624_v26 = vpop.f32.mrf.mxu0  ;;  %v9626_v60 = vpop.f32.mrf.mxu1  ;;  %8146 = vmatprep.subr.mxu0 %v6982_v24 }
 0x245   : > { %v9628_v61 = vadd.f32 %v7936_v48, %v2858_v9  ;;  %v4736_v48 = vld [vmem:[%s10288_s5 + $0x38] sm:$0xff]  ;;  %v6981_v9 = vld [vmem:[%s10288_s5 + $0x70] sm:$0xff]  ;;  %8147 = vmatpush3.msra.mxu0 %v6982_v24  ;;  %v4733_v24 = vld [vmem:[%s10288_s5 + $0x20] sm:$0xff] }
 0x246   : > { %v7919_v27 = vpop.f32.mrf.mxu0  ;;  %v7939_v17 = vpop.f32.mrf.mxu1  ;;  %8165 = vmatprep.subr.mxu1 %v4736_v48  ;;  %8148 = vmatprep.subr.mxu0 %v6981_v9 }
 0x247   : > { %v2860_v18 = vadd.f32 %v7919_v27, %v2703_v56  ;;  %v4735_v27 = vld [vmem:[%s10288_s5 + $0x30] sm:$0xff]  ;;  %8166 = vmatpush3.msra.mxu1 %v4736_v48  ;;  %8149 = vmatpush3.msra.mxu0 %v6981_v9  ;;  %v4732_v9 = vld [vmem:[%s10288_s5 + $0x18] sm:$0xff] }
 0x248   : > { %v9630_v28 = vpop.f32.mrf.mxu0  ;;  %v9632_v29 = vpop.f32.mrf.mxu1  ;;  %8167 = vmatprep.subr.mxu1 %v4735_v27 }
 0x249   : > { %v9634_v16 = vadd.f32 %v7939_v17, %v2860_v18  ;;  %8168 = vmatpush3.msra.mxu1 %v4735_v27 }
 0x24a   : > { %v7922_v14 = vpop.f32.mrf.mxu0  ;;  %v7942_v40 = vpop.f32.mrf.mxu1 }
 0x24b   : > { %v2862_v50 = vadd.f32 %v7922_v14, %v2705_v21  ;;  %v6980_v14 = vld [vmem:[%s10288_s5 + $0x68] sm:$0xff] }
 0x24c   : > { %v9636_v51 = vpop.f32.mrf.mxu0  ;;  %v9638_v41 = vpop.f32.mrf.mxu1  ;;  %8150 = vmatprep.subr.mxu0 %v6980_v14 }
 0x24d   : > { %v9640_v15 = vadd.f32 %v7942_v40, %v2862_v50  ;;  %v4734_v40 = vld [vmem:[%s10288_s5 + $0x28] sm:$0xff]  ;;  %v2857_v50 = vadd.f32 %v9624_v26, %v9616_v35  ;;  %8151 = vmatpush3.msra.mxu0 %v6980_v14  ;;  %v6978_v26 = vld [vmem:[%s10288_s5 + $0x58] sm:$0xff] }
 0x24e   : > { %v7925_v12 = vpop.f32.mrf.mxu0  ;;  %v7945_v13 = vpop.f32.mrf.mxu1  ;;  %8169 = vmatprep.subr.mxu1 %v4734_v40 }
 0x24f   : > { %v2864_v32 = vadd.f32 %v7925_v12, %v2707_v7  ;;  %8170 = vmatpush3.msra.mxu1 %v4734_v40  ;;  %v3015_v27 = vadd.f32 %v9626_v60, %v2857_v50  ;;  %v4731_v60 = vld [vmem:[%s10288_s5 + $0x10] sm:$0xff]  ;;  %v6976_v50 = vld [vmem:[%s10288_s5 + $0x48] sm:$0xff] }
 0x250   : > { %v9642_v33 = vpop.f32.mrf.mxu0  ;;  %v9644_v62 = vpop.f32.mrf.mxu1  ;;  %8171 = vmatprep.subr.mxu1 %v4733_v24 }
 0x251   : > { %v9646_v63 = vadd.f32 %v7945_v13, %v2864_v32  ;;  %v6979_v32 = vld [vmem:[%s10288_s5 + $0x60] sm:$0xff]  ;;  %8172 = vmatpush3.msra.mxu1 %v4733_v24 }
 0x252   : > { %v9648_v52 = vpop.f32.mrf.mxu0  ;;  %v9650_v53 = vpop.f32.mrf.mxu1  ;;  %8152 = vmatprep.subr.mxu0 %v6979_v32  ;;  %8173 = vmatprep.subr.mxu1 %v4732_v9 }
 0x253   : > { %8153 = vmatpush3.msra.mxu0 %v6979_v32  ;;  %8174 = vmatpush3.msra.mxu1 %v4732_v9  ;;  %v4730_v32 = vld [vmem:[%s10288_s5 + $0x8] sm:$0xff]  ;;  %v6975_v9 = vld [vmem:[%s10288_s5 + $0x40] sm:$0xff] }
 0x254   : > { %v9652_v10 = vpop.f32.mrf.mxu0  ;;  %v9654_v11 = vpop.f32.mrf.mxu1  ;;  %8154 = vmatprep.subr.mxu0 %v6978_v26  ;;  %8175 = vmatprep.subr.mxu1 %v4731_v60 }
 0x255   : > { %8155 = vmatpush3.msra.mxu0 %v6978_v26  ;;  %8176 = vmatpush3.msra.mxu1 %v4731_v60 }
 0x256   : > { %v9656_v54 = vpop.f32.mrf.mxu0  ;;  %v9658_v55 = vpop.f32.mrf.mxu1  ;;  %8177 = vmatprep.subr.mxu1 %v4730_v32 }
 0x257   : > { %8178 = vmatpush3.msra.mxu1 %v4730_v32 }
 0x258   : > { %v9660_v0 = vpop.f32.mrf.mxu0  ;;  %v9662_v1 = vpop.f32.mrf.mxu1 }
 0x25a   : > { %v9664_v2 = vpop.f32.mrf.mxu0  ;;  %v9666_v3 = vpop.f32.mrf.mxu1 }
 0x25c   : > { %v9668_v42 = vpop.f32.mrf.mxu0  ;;  %v9670_v43 = vpop.f32.mrf.mxu1 }
 0x25e   : > { %v9672_v19 = vpop.f32.mrf.mxu0  ;;  %v9674_v30 = vpop.f32.mrf.mxu1 }
 0x260   : > { %v9676_v34 = vpop.f32.mrf.mxu0  ;;  %v9678_v4 = vpop.f32.mrf.mxu1 }
 0x262   : > { %v9680_v5 = vpop.f32.mrf.mxu0  ;;  %v9682_v36 = vpop.f32.mrf.mxu1 }
 0x264   : > { %v9684_v22 = vpop.f32.mrf.mxu0  ;;  %v9686_v31 = vpop.f32.mrf.mxu1 }
 0x266   : > { %v9688_v56 = vpop.f32.mrf.mxu0  ;;  %v9690_v57 = vpop.f32.mrf.mxu1 }
 0x268   : > { %v9692_v37 = vpop.f32.mrf.mxu0  ;;  %v9694_v44 = vpop.f32.mrf.mxu1 }
 0x26a   : > { %v9696_v20 = vpop.f32.mrf.mxu0  ;;  %v9698_v46 = vpop.f32.mrf.mxu1 }
 0x26c   : > { %v9700_v47 = vpop.f32.mrf.mxu0  ;;  %v9702_v21 = vpop.f32.mrf.mxu1 }
 0x26e   : > { %v9704_v23 = vpop.f32.mrf.mxu0  ;;  %v9706_v8 = vpop.f32.mrf.mxu1 }
 0x270   : > { %v9708_v49 = vpop.f32.mrf.mxu0  ;;  %v9710_v59 = vpop.f32.mrf.mxu1 }
 0x271   : > { %10333 = vst [vmem:[#allocation8_spill] sm:$0xff] %v9710_v59  ;;  %v2859_v59 = vadd.f32 %v9630_v28, %v9618_v45  ;;  %v3173_v45 = vadd.f32 %v9652_v10, %v3015_v27 }
 0x272   : > { %v9712_v38 = vpop.f32.mrf.mxu0  ;;  %v9714_v6 = vpop.f32.mrf.mxu1 }
 0x273   : > { %v3017_v10 = vadd.f32 %v9632_v29, %v2859_v59  ;;  %v4729_v29 = vld [vmem:[%s10288_s5] sm:$0xff] }
 0x274   : > { %v9716_v7 = vpop.f32.mrf.mxu0  ;;  %v9718_v39 = vpop.f32.mrf.mxu1  ;;  %8179 = vmatprep.subr.mxu1 %v4729_v29 }
 0x275   : > { %8180 = vmatpush3.msra.mxu1 %v4729_v29 }
 0x276   : > { %v9732_v17 = vpop.f32.mrf.mxu0  ;;  %v9734_v18 = vpop.f32.mrf.mxu1 }
 0x278   : > { %v9744_v12 = vpop.f32.mrf.mxu0  ;;  %v9746_v13 = vpop.f32.mrf.mxu1 }
 0x279   : > { %10334 = vst [vmem:[#allocation9_spill] sm:$0xff] %v9746_v13  ;;  %v3174_v13 = vadd.f32 %v9648_v52, %v9628_v61  ;;  %v2861_v61 = vadd.f32 %v9636_v51, %v9620_v58  ;;  %v3176_v58 = vadd.f32 %v9656_v54, %v9634_v16  ;;  %v3175_v16 = vadd.f32 %v9660_v0, %v3017_v10  ;;  %v9822_v0 = vld [vmem:[%s10288_s5 + $0xf8] sm:$0xff] }
 0x27a   : > { %v9754_v48 = vpop.f32.mrf.mxu0  ;;  %v9756_v35 = vpop.f32.mrf.mxu1  ;;  %8203 = vmatprep.subr.mxu1 %v9822_v0 }
 0x27b   : > { %10335 = vst [vmem:[#allocation10_spill] sm:$0xff] %v9756_v35  ;;  %v6977_v35 = vld [vmem:[%s10288_s5 + $0x50] sm:$0xff]  ;;  %v3332_v24 = vadd.f32 %v9650_v53, %v3174_v13  ;;  %v3331_v53 = vadd.f32 %v9654_v11, %v3173_v45  ;;  %v3019_v59 = vadd.f32 %v9638_v41, %v2861_v61  ;;  %v2863_v13 = vadd.f32 %v9642_v33, %v9622_v25  ;;  %v9817_v11 = vld [vmem:[%s10288_s5 + $0xb8] sm:$0xff] }
 0x27c   : > { %v9769_v14 = vpop.f32.mrf.mxu0  ;;  %v9771_v40 = vpop.f32.mrf.mxu1  ;;  %8156 = vmatprep.subr.mxu0 %v6977_v35  ;;  %v3334_v41 = vadd.f32 %v9658_v55, %v3176_v58 }
 0x27d   : > { %8157 = vmatpush3.msra.mxu0 %v6977_v35  ;;  %v3490_v54 = vadd.f32 %v9680_v5, %v3332_v24  ;;  %v3178_v35 = vadd.f32 %v9664_v2, %v9640_v15  ;;  %v3489_v25 = vadd.f32 %v9684_v22, %v3331_v53  ;;  %v3177_v15 = vadd.f32 %v9668_v42, %v3019_v59 }
 0x27e   : > { %v9782_v28 = vpop.f32.mrf.mxu0  ;;  %v9784_v52 = vpop.f32.mrf.mxu1  ;;  %8158 = vmatprep.subr.mxu0 %v6976_v50  ;;  %v3333_v5 = vadd.f32 %v9662_v1, %v3175_v16  ;;  %v3492_v61 = vadd.f32 %v9688_v56, %v3334_v41  ;;  %v3021_v55 = vadd.f32 %v9644_v62, %v2863_v13  ;;  %v3180_v42 = vadd.f32 %v9672_v19, %v9646_v63 }
 0x27f   : > { %8159 = vmatpush3.msra.mxu0 %v6976_v50  ;;  %v3648_v45 = vadd.f32 %v9682_v36, %v3490_v54  ;;  %v3336_v22 = vadd.f32 %v9666_v3, %v3178_v35  ;;  %v3647_v10 = vadd.f32 %v9686_v31, %v3489_v25  ;;  %v3335_v56 = vadd.f32 %v9670_v43, %v3177_v15 }
 0x280   : > { %v9796_v51 = vpop.f32.mrf.mxu0  ;;  %v9798_v26 = vpop.f32.mrf.mxu1  ;;  %8160 = vmatprep.subr.mxu0 %v6975_v9  ;;  %v3491_v1 = vadd.f32 %v9692_v37, %v3333_v5  ;;  %v3179_v24 = vadd.f32 %v9676_v34, %v3021_v55  ;;  %v3650_v3 = vadd.f32 %v9690_v57, %v3492_v61  ;;  %v3338_v19 = vadd.f32 %v9674_v30, %v3180_v42  ;;  %v10336_v25 = vld [vmem:[#allocation9_spill] sm:$0xff] }
 0x281   : > { %8161 = vmatpush3.msra.mxu0 %v6975_v9  ;;  %v3806_v36 = vadd.f32 %v9712_v38, %v3648_v45  ;;  %v3494_v58 = vadd.f32 %v9696_v20, %v3336_v22  ;;  %v3805_v63 = vadd.f32 %v9716_v7, %v3647_v10  ;;  %v3493_v31 = vadd.f32 %v9700_v47, %v3335_v56 }
 0x282   : > { %v8076_v27 = vpop.f32.mrf.mxu0  ;;  %v8096_v60 = vpop.f32.mrf.mxu1  ;;  %8184 = vmatprep.subr.mxu0 %v9817_v11  ;;  %v3649_v38 = vadd.f32 %v9694_v44, %v3491_v1  ;;  %v3808_v34 = vadd.f32 %v9732_v17, %v3650_v3  ;;  %v3337_v20 = vadd.f32 %v9678_v4, %v3179_v24  ;;  %v3496_v57 = vadd.f32 %v9704_v23, %v3338_v19 }
 0x283   : > { %v3964_v43 = vadd.f32 %v9714_v6, %v3806_v36  ;;  %v3652_v53 = vadd.f32 %v9698_v46, %v3494_v58  ;;  %v3963_v30 = vadd.f32 %v9718_v39, %v3805_v63  ;;  %v3651_v59 = vadd.f32 %v9702_v21, %v3493_v31  ;;  %v10337_v21 = vld [vmem:[#allocation8_spill] sm:$0xff] }
 0x284   : > { %v4082_v33 = vpop.f32.mrf.mxu0  ;;  %v4240_v2 = vpop.f32.mrf.mxu1  ;;  %v3807_v47 = vadd.f32 %v9744_v12, %v3649_v38  ;;  %v3495_v44 = vadd.f32 %v9708_v49, %v3337_v20  ;;  %v3966_v4 = vadd.f32 %v9734_v18, %v3808_v34  ;;  %v3654_v23 = vadd.f32 %v9706_v8, %v3496_v57  ;;  %v10338_v49 = vld [vmem:[#allocation10_spill] sm:$0xff] }
 0x285   : > { %v4122_v54 = vadd.f32 %v8076_v27, %v3964_v43  ;;  %v3810_v6 = vadd.f32 %v9754_v48, %v3652_v53  ;;  %v4121_v46 = vadd.f32 %v4082_v33, %v3963_v30  ;;  %v3809_v35 = vadd.f32 %v9769_v14, %v3651_v59 }
 0x286   : > { %v8079_v50 = vpop.f32.mrf.mxu0  ;;  %v8099_v32 = vpop.f32.mrf.mxu1  ;;  %v3965_v12 = vadd.f32 %v10336_v25, %v3807_v47  ;;  %v3653_v5 = vadd.f32 %v10337_v21, %v3495_v44  ;;  %v3812_v48 = vadd.f32 %v9782_v28, %v3654_v23 }
 0x287   : > { %v4280_v27 = vadd.f32 %v8096_v60, %v4122_v54  ;;  %v4124_v15 = vadd.f32 %v8079_v50, %v3966_v4  ;;  %v3968_v45 = vadd.f32 %v10338_v49, %v3810_v6  ;;  %v4279_v18 = vadd.f32 %v4240_v2, %v4121_v46  ;;  %v6974_v60 = vld [vmem:[%s10287_s4] ss:$0 sm:$0xff] }
 0x288   : > { %v4092_v62 = vpop.f32.mrf.mxu0  ;;  %v4250_v9 = vpop.f32.mrf.mxu1  ;;  %v3967_v8 = vadd.f32 %v9771_v40, %v3809_v35  ;;  %v3811_v14 = vadd.f32 %v9796_v51, %v3653_v5  ;;  %v3970_v28 = vadd.f32 %v9784_v52, %v3812_v48 }
 0x289   : > { %v4123_v33 = vadd.f32 %v4092_v62, %v3965_v12  ;;  %v4282_v1 = vadd.f32 %v8099_v32, %v4124_v15 }
 0x28a   : > { %v8082_v29 = vpop.f32.mrf.mxu0  ;;  %v8102_v37 = vpop.f32.mrf.mxu1  ;;  %v3969_v51 = vadd.f32 %v9798_v26, %v3811_v14 }
 0x28b   : > { %v4126_v42 = vadd.f32 %v8082_v29, %v3968_v45  ;;  %v4281_v62 = vadd.f32 %v4250_v9, %v4123_v33 }
 0x28c   : > { %v4102_v16 = vpop.f32.mrf.mxu0  ;;  %v4260_v7 = vpop.f32.mrf.mxu1 }
 0x28d   : > { %v4125_v24 = vadd.f32 %v4102_v16, %v3967_v8  ;;  %v4284_v19 = vadd.f32 %v8102_v37, %v4126_v42 }
 0x28e   : > { %v8085_v17 = vpop.f32.mrf.mxu0  ;;  %v8105_v13 = vpop.f32.mrf.mxu1 }
 0x28f   : > { %v4128_v38 = vadd.f32 %v8085_v17, %v3970_v28  ;;  %v4283_v20 = vadd.f32 %v4260_v7, %v4125_v24 }
 0x290   : > { %v4112_v41 = vpop.f32.mrf.mxu0  ;;  %v4270_v39 = vpop.f32.mrf.mxu1 }
 0x291   : > { %v4127_v53 = vadd.f32 %v4112_v41, %v3969_v51  ;;  %v4286_v44 = vadd.f32 %v8105_v13, %v4128_v38 }
 0x292   : > { %v8116_v61 = vpop.f32.mrf.mxu0  ;;  %v8136_v55 = vpop.f32.mrf.mxu1 }
 0x293   : > { %v4438_v22 = vadd.f32 %v8116_v61, %v4280_v27  ;;  %v4285_v7 = vadd.f32 %v4270_v39, %v4127_v53 }
 0x294   : > { %v4398_v50 = vpop.f32.mrf.mxu0  ;;  %v4556_v10 = vpop.f32.mrf.mxu1 }
 0x295   : > { %v4596_v36 = vadd.f32 %v8136_v55, %v4438_v22  ;;  %v4437_v56 = vadd.f32 %v4398_v50, %v4279_v18 }
 0x296   : > { %v8119_v2 = vpop.f32.mrf.mxu0  ;;  %v8139_v58 = vpop.f32.mrf.mxu1 }
 0x297   : > { %v4611_v3 = vadd.f32 %v6974_v60, %v4596_v36  ;;  %v4595_v40 = vadd.f32 %v4556_v10, %v4437_v56  ;;  %v4440_v63 = vadd.f32 %v8119_v2, %v4282_v1 }
 0x298   : > { %v4408_v31 = vpop.f32.mrf.mxu0  ;;  %v4566_v29 = vpop.f32.mrf.mxu1 }
 0x299   : > { %v4610_v43 = vadd.f32 %v6974_v60, %v4595_v40  ;;  %v4598_v34 = vadd.f32 %v8139_v58, %v4440_v63  ;;  %v4439_v32 = vadd.f32 %v4408_v31, %v4281_v62  ;;  %v4619_v16 = vsel %vm402_vm6, %v4611_v3, 0.0 }
 0x29a   : > { %v8122_v57 = vpop.f32.mrf.mxu0  ;;  %v8142_v52 = vpop.f32.mrf.mxu1 }
 0x29b   : > { %v4618_v9 = vsel %vm402_vm6, %v4610_v43, 0.0  ;;  %v4597_v30 = vadd.f32 %v4566_v29, %v4439_v32  ;;  %v4442_v47 = vadd.f32 %v8122_v57, %v4284_v19  ;;  %v4613_v59 = vadd.f32 %v6974_v60, %v4598_v34 }
 0x29c   : > { %v4620_v54 = vadd.f32 %v4619_v16, %v4618_v9  ;;  %v4418_v26 = vpop.f32.mrf.mxu0  ;;  %v4576_v37 = vpop.f32.mrf.mxu1 }
 0x29d   : > { %v4612_v6 = vadd.f32 %v6974_v60, %v4597_v30  ;;  %v4600_v17 = vadd.f32 %v8142_v52, %v4442_v47  ;;  %v4441_v4 = vadd.f32 %v4418_v26, %v4283_v20  ;;  %v4623_v12 = vsel %vm402_vm6, %v4613_v59, 0.0 }
 0x29e   : > { %v8125_v46 = vpop.f32.mrf.mxu0  ;;  %v8145_v23 = vpop.f32.mrf.mxu1 }
 0x29f   : > { %v4621_v35 = vsel %vm402_vm6, %v4612_v6, 0.0  ;;  %v4599_v41 = vadd.f32 %v4576_v37, %v4441_v4  ;;  %v4444_v25 = vadd.f32 %v8125_v46, %v4286_v44  ;;  %v4615_v21 = vadd.f32 %v6974_v60, %v4600_v17 }
 0x2a0   : > { %v4622_v27 = vadd.f32 %v4621_v35, %v4620_v54  ;;  %v4428_v15 = vpop.f32.mrf.mxu0  ;;  %v4586_v13 = vpop.f32.mrf.mxu1 }
 0x2a1   : > { %v4614_v5 = vadd.f32 %v6974_v60, %v4599_v41  ;;  %v4602_v49 = vadd.f32 %v8145_v23, %v4444_v25  ;;  %v4443_v45 = vadd.f32 %v4428_v15, %v4285_v7  ;;  %v4627_v39 = vsel %vm402_vm6, %v4615_v21, 0.0 }
 0x2a2   : > { %v4624_v48 = vadd.f32 %v4623_v12, %v4622_v27 }
 0x2a3   : > { %v4625_v61 = vsel %vm402_vm6, %v4614_v5, 0.0  ;;  %v4601_v55 = vadd.f32 %v4586_v13, %v4443_v45  ;;  %v4617_v33 = vadd.f32 %v6974_v60, %v4602_v49 }
 0x2a4   : > { %v4626_v18 = vadd.f32 %v4625_v61, %v4624_v48 }
 0x2a5   : > { %v4616_v22 = vadd.f32 %v6974_v60, %v4601_v55  ;;  %v4631_v50 = vsel %vm402_vm6, %v4617_v33, 0.0 }
 0x2a6   : > { %v4628_v8 = vadd.f32 %v4627_v39, %v4626_v18 }
 0x2a7   : > { %v4629_v14 = vsel %vm402_vm6, %v4616_v22, 0.0 }
 0x2a8   : > { %v4630_v42 = vadd.f32 %v4629_v14, %v4628_v8 }
 0x2aa   : > { %v4632_v10 = vadd.f32 %v4631_v50, %v4630_v42 }
 0x2ac   : > { %v4633_v1 = vrot.slane %v4632_v10, 4 }
 0x2ae   : > { %v4634_v36 = vadd.f32 %v4633_v1, %v4632_v10 }
 0x2b0   : > { %v4635_v56 = vrot.slane %v4634_v36, 2 }
 0x2b2   : > { %v4636_v28 = vadd.f32 %v4635_v56, %v4634_v36 }
 0x2b4   : > { %v4637_v24 = vrot.slane %v4636_v28, 1 }
 0x2b6   : > { %v4638_v2 = vadd.f32 %v4637_v24, %v4636_v28 }
 0x2b8   : > { %v4640_v58 = vmul.f32 0.015625, %v4638_v2 }
 0x2ba   : > { %v4641_v62 = vsub.f32 %v4610_v43, %v4640_v58  ;;  %v4642_v40 = vsub.f32 %v4611_v3, %v4640_v58  ;;  %v4643_v63 = vsub.f32 %v4612_v6, %v4640_v58  ;;  %v4644_v51 = vsub.f32 %v4613_v59, %v4640_v58 }
 0x2bb   : > { %v4645_v19 = vsub.f32 %v4614_v5, %v4640_v58  ;;  %v4646_v60 = vsub.f32 %v4615_v21, %v4640_v58  ;;  %v4647_v31 = vsub.f32 %v4616_v22, %v4640_v58  ;;  %v4648_v29 = vsub.f32 %v4617_v33, %v4640_v58 }
 0x2bc   : > { %v4649_v38 = vmul.f32 %v4641_v62, %v4641_v62  ;;  %v4650_v34 = vmul.f32 %v4642_v40, %v4642_v40  ;;  %v4651_v32 = vmul.f32 %v4643_v63, %v4643_v63  ;;  %v4652_v20 = vmul.f32 %v4644_v51, %v4644_v51 }
 0x2bd   : > { %v4653_v16 = vmul.f32 %v4645_v19, %v4645_v19  ;;  %v4654_v3 = vmul.f32 %v4646_v60, %v4646_v60  ;;  %v4655_v54 = vmul.f32 %v4647_v31, %v4647_v31  ;;  %v4656_v37 = vmul.f32 %v4648_v29, %v4648_v29 }
 0x2be   : > { %v4657_v53 = vsel %vm402_vm6, %v4649_v38, 0.0  ;;  %v4658_v57 = vsel %vm402_vm6, %v4650_v34, 0.0  ;;  %v4660_v9 = vsel %vm402_vm6, %v4651_v32, 0.0  ;;  %v4662_v30 = vsel %vm402_vm6, %v4652_v20, 0.0  ;;  %v6993_v20 = vld [vmem:[%s10288_s5 + $0xb0] sm:$0xff] }
 0x2bf   : > { %v4659_v52 = vadd.f32 %v4658_v57, %v4657_v53  ;;  %v4664_v59 = vsel %vm402_vm6, %v4653_v16, 0.0  ;;  %v4666_v44 = vsel %vm402_vm6, %v4654_v3, 0.0  ;;  %v4668_v17 = vsel %vm402_vm6, %v4655_v54, 0.0  ;;  %v5029_v53 = vld [vmem:[#allocation3 + $0x3] ss:$2 sm:$0xf] }
 0x2c0   : > { %v4670_v46 = vsel %vm402_vm6, %v4656_v37, 0.0  ;;  %v6990_v37 = vld [vmem:[%s10288_s5 + $0x98] sm:$0xff] }
 0x2c1   : > { %v4661_v43 = vadd.f32 %v4660_v9, %v4659_v52 }
 0x2c3   : > { %v4663_v47 = vadd.f32 %v4662_v30, %v4661_v43  ;;  %v7003_v30 = vld [vmem:[%s10288_s5 + $0xf0] sm:$0xff] }
 0x2c5   : > { %v4665_v26 = vadd.f32 %v4664_v59, %v4663_v47  ;;  %v6992_v59 = vld [vmem:[%s10288_s5 + $0xa8] sm:$0xff] }
 0x2c7   : > { %v4667_v6 = vadd.f32 %v4666_v44, %v4665_v26  ;;  %v7002_v26 = vld [vmem:[%s10288_s5 + $0xe8] sm:$0xff]  ;;  %v7000_v44 = vld [vmem:[%s10288_s5 + $0xd8] sm:$0xff] }
 0x2c9   : > { %v4669_v4 = vadd.f32 %v4668_v17, %v4667_v6  ;;  %v6989_v6 = vld [vmem:[%s10288_s5 + $0x90] sm:$0xff] }
 0x2ca   : > { %v6999_v17 = vld [vmem:[%s10288_s5 + $0xd0] sm:$0xff] }
 0x2cb   : > { %v4671_v23 = vadd.f32 %v4670_v46, %v4669_v4  ;;  %v6988_v4 = vld [vmem:[%s10288_s5 + $0x88] sm:$0xff] }
 0x2cc   : > { %v6998_v46 = vld [vmem:[%s10288_s5 + $0xc8] sm:$0xff] }
 0x2cd   : > { %v4672_v7 = vrot.slane %v4671_v23, 4 }
 0x2cf   : > { %v4673_v35 = vadd.f32 %v4672_v7, %v4671_v23  ;;  %v6987_v23 = vld [vmem:[%s10288_s5 + $0x80] sm:$0xff] }
 0x2d0   : > { %v6997_v7 = vld [vmem:[%s10288_s5 + $0xc0] sm:$0xff] }
 0x2d1   : > { %v4674_v41 = vrot.slane %v4673_v35, 2 }
 0x2d3   : > { %v4675_v25 = vadd.f32 %v4674_v41, %v4673_v35 }
 0x2d5   : > { %v4676_v12 = vrot.slane %v4675_v25, 1 }
 0x2d7   : > { %v4677_v27 = vadd.f32 %v4676_v12, %v4675_v25 }
 0x2d9   : > { %v4678_v15 = vmul.f32 0.015625, %v4677_v27  ;;  %v7014_v27 = vld [vmem:[%s10288_s5 + $0x138] sm:$0xff] }
 0x2db   : > { %v4679_v21 = vadd.f32 1e-05, %v4678_v15  ;;  %v7024_v15 = vld [vmem:[%s10288_s5 + $0x178] sm:$0xff] }
 0x2dd   : > { %8473 = vrsqrt.f32 %v4679_v21 }
 0x2ea   : > { %v8474_v5 = vpop.eup %8473 }
 0x2eb   : > { %v4681_v49 = vmul.f32 %v8474_v5, %v4641_v62  ;;  %v4682_v45 = vmul.f32 %v8474_v5, %v4642_v40  ;;  %v4683_v48 = vmul.f32 %v8474_v5, %v4643_v63  ;;  %v4684_v13 = vmul.f32 %v8474_v5, %v4644_v51  ;;  %v4738_v63 = vld [vmem:[#allocation3 + $0x1] ss:$2 sm:$0xf]  ;;  %v4722_v51 = vld [vmem:[#allocation3] ss:$2 sm:$0xf] }
 0x2ec   : > { %v4685_v61 = vmul.f32 %v8474_v5, %v4645_v19  ;;  %v4686_v55 = vmul.f32 %v8474_v5, %v4646_v60  ;;  %v4687_v18 = vmul.f32 %v8474_v5, %v4647_v31  ;;  %v4688_v39 = vmul.f32 %v8474_v5, %v4648_v29  ;;  %v4925_v31 = vld [vmem:[#allocation3 + $0x2] ss:$2 sm:$0xf] }
 0x2ed   : > { %vm4689_vm7 = vcmp.ge.f32.partialorder %v4681_v49, 0.0  ;;  %vm4690_vm8 = vcmp.ge.f32.partialorder %v4682_v45, 0.0  ;;  %vm4691_vm9 = vcmp.ge.f32.partialorder %v4683_v48, 0.0  ;;  %vm4692_vm10 = vcmp.ge.f32.partialorder %v4684_v13, 0.0 }
 0x2ee   : > { %vm4693_vm11 = vcmp.ge.f32.partialorder %v4685_v61, 0.0  ;;  %vm4694_vm12 = vcmp.ge.f32.partialorder %v4686_v55, 0.0  ;;  %vm4695_vm13 = vcmp.ge.f32.partialorder %v4687_v18, 0.0  ;;  %vm4696_vm14 = vcmp.ge.f32.partialorder %v4688_v39, 0.0 }
 0x2ef   : > { %v4697_v33 = vmul.f32 0.2, %v4681_v49  ;;  %v4698_v22 = vmul.f32 0.2, %v4682_v45  ;;  %v4699_v8 = vmul.f32 0.2, %v4683_v48 }
 0x2f0   : > { %v4700_v14 = vmul.f32 0.2, %v4684_v13  ;;  %v4701_v42 = vmul.f32 0.2, %v4685_v61  ;;  %v4702_v50 = vmul.f32 0.2, %v4686_v55 }
 0x2f1   : > { %v4703_v10 = vmul.f32 0.2, %v4687_v18  ;;  %v4704_v1 = vmul.f32 0.2, %v4688_v39  ;;  %v4705_v36 = vsel %vm4689_vm7, %v4681_v49, %v4697_v33  ;;  %v4706_v56 = vsel %vm4690_vm8, %v4682_v45, %v4698_v22  ;;  %v7012_v33 = vld [vmem:[%s10288_s5 + $0x128] sm:$0xff] }
 0x2f2   : > { %v4707_v28 = vsel %vm4691_vm9, %v4683_v48, %v4699_v8  ;;  %v4708_v24 = vsel %vm4692_vm10, %v4684_v13, %v4700_v14  ;;  %v4709_v2 = vsel %vm4693_vm11, %v4685_v61, %v4701_v42  ;;  %v4710_v58 = vsel %vm4694_vm12, %v4686_v55, %v4702_v50  ;;  %4714 = vst.msk [vmem:[#allocation3 + $0x11] sm:$0xff] %vm402_vm6, %v4705_v36  ;;  %v7013_v55 = vld [vmem:[%s10288_s5 + $0x130] sm:$0xff]  ;;  %v7022_v22 = vld [vmem:[%s10288_s5 + $0x168] sm:$0xff]  ;;  %v7011_v8 = vld [vmem:[%s10288_s5 + $0x120] sm:$0xff] }
 0x2f3   : > { %4715 = vst.msk [vmem:[#allocation3 + $0x21] sm:$0xff] %vm402_vm6, %v4706_v56  ;;  %v4711_v62 = vsel %vm4695_vm13, %v4687_v18, %v4703_v10  ;;  %v4712_v40 = vsel %vm4696_vm14, %v4688_v39, %v4704_v1  ;;  %4716 = vst.msk [vmem:[#allocation3 + $0x31] sm:$0xff] %vm402_vm6, %v4707_v28  ;;  %v7023_v39 = vld [vmem:[%s10288_s5 + $0x170] sm:$0xff]  ;;  %v7021_v14 = vld [vmem:[%s10288_s5 + $0x160] sm:$0xff] }
 0x2f4   : > { %4717 = vst.msk [vmem:[#allocation3 + $0x41] sm:$0xff] %vm402_vm6, %v4708_v24  ;;  %4718 = vst.msk [vmem:[#allocation3 + $0x51] sm:$0xff] %vm402_vm6, %v4709_v2  ;;  %v7010_v42 = vld [vmem:[%s10288_s5 + $0x118] sm:$0xff]  ;;  %v7009_v10 = vld [vmem:[%s10288_s5 + $0x110] sm:$0xff] }
 0x2f5   : > { %4719 = vst.msk [vmem:[#allocation3 + $0x61] sm:$0xff] %vm402_vm6, %v4710_v58  ;;  %4720 = vst.msk [vmem:[#allocation3 + $0x71] sm:$0xff] %vm402_vm6, %v4711_v62  ;;  %v7020_v50 = vld [vmem:[%s10288_s5 + $0x158] sm:$0xff]  ;;  %v7019_v1 = vld [vmem:[%s10288_s5 + $0x150] sm:$0xff] }
 0x2f6   : > { %4721 = vst.msk [vmem:[#allocation3 + $0x81] sm:$0xff] %vm402_vm6, %v4712_v40  ;;  %v7008_v36 = vld [vmem:[%s10288_s5 + $0x108] sm:$0xff]  ;;  %v7007_v28 = vld [vmem:[%s10288_s5 + $0x100] sm:$0xff] }
 0x2f7   : > { %v7018_v56 = vld [vmem:[%s10288_s5 + $0x148] sm:$0xff]  ;;  %v7017_v24 = vld [vmem:[%s10288_s5 + $0x140] sm:$0xff] }
 0x2f9   : > { %v5132_v5 = vld [vmem:[#allocation3 + $0x10] ss:$2 sm:$0xf]  ;;  %v5236_v48 = vld [vmem:[#allocation3 + $0x11] ss:$2 sm:$0xf] }
 0x2fa   : > { %v4740_v19 = vld [vmem:[#allocation3 + $0x21] ss:$2 sm:$0xf]  ;;  %v4724_v60 = vld [vmem:[#allocation3 + $0x20] ss:$2 sm:$0xf] }
 0x2fb   : > { %v4758_v29 = vcombine.low %v4738_v63, %v4740_v19  ;;  %v4843_v38 = vcombine.low %v4722_v51, %v4724_v60  ;;  %v4742_v34 = vld [vmem:[#allocation3 + $0x41] ss:$2 sm:$0xf]  ;;  %v4726_v52 = vld [vmem:[#allocation3 + $0x40] ss:$2 sm:$0xf] }
 0x2fc   : > { %v4744_v32 = vld [vmem:[#allocation3 + $0x61] ss:$2 sm:$0xf]  ;;  %v4728_v16 = vld [vmem:[#allocation3 + $0x60] ss:$2 sm:$0xf] }
 0x2fd   : > { %v4759_v57 = vcombine.low %v4742_v34, %v4744_v32  ;;  %8162 = vmatprep.mubr.msk.f32.mxu0 %vm402_vm6, %v4758_v29  ;;  %8181 = vmatprep.mubr.msk.f32.mxu1 %vm402_vm6, %v4843_v38  ;;  %v4844_v9 = vcombine.low %v4726_v52, %v4728_v16  ;;  %v4927_v43 = vld [vmem:[#allocation3 + $0x22] ss:$2 sm:$0xf]  ;;  %v5031_v3 = vld [vmem:[#allocation3 + $0x23] ss:$2 sm:$0xf] }
 0x2fe   : > { %v4945_v47 = vcombine.low %v4925_v31, %v4927_v43  ;;  %v5049_v54 = vcombine.low %v5029_v53, %v5031_v3  ;;  %v4929_v35 = vld [vmem:[#allocation3 + $0x42] ss:$2 sm:$0xf]  ;;  %v5033_v25 = vld [vmem:[#allocation3 + $0x43] ss:$2 sm:$0xf] }
 0x2ff   : > { %8163 = vmatmul.mubr.msk.f32.vlgmr.msra.gmra.mxu0 %vm402_vm6, %v4759_v57  ;;  %8182 = vmatmul.mubr.msk.f32.vlgmr.msra.gmra.mxu1 %vm402_vm6, %v4844_v9  ;;  %v4931_v41 = vld [vmem:[#allocation3 + $0x62] ss:$2 sm:$0xf]  ;;  %v5035_v12 = vld [vmem:[#allocation3 + $0x63] ss:$2 sm:$0xf] }
 0x300   : > { %8185 = vmatpush3.msra.mxu0 %v9817_v11  ;;  %8204 = vmatpush3.msra.mxu1 %v9822_v0  ;;  %v6991_v11 = vld [vmem:[%s10288_s5 + $0xa0] sm:$0xff]  ;;  %v4946_v21 = vcombine.low %v4929_v35, %v4931_v41  ;;  %v5050_v45 = vcombine.low %v5033_v25, %v5035_v12  ;;  %v7034_v63 = vld [vmem:[%s10288_s5 + $0x1b8] sm:$0xff]  ;;  %v7043_v57 = vld [vmem:[%s10288_s5 + $0x1f0] sm:$0xff] }
 0x301   : > { %8186 = vmatprep.subr.mxu0 %v6993_v20  ;;  %8200 = vmatprep.mubr.msk.f32.mxu0 %vm402_vm6, %v4945_v47  ;;  %v7001_v0 = vld [vmem:[%s10288_s5 + $0xe0] sm:$0xff]  ;;  %v7044_v51 = vld [vmem:[%s10288_s5 + $0x1f8] sm:$0xff]  ;;  %v7032_v52 = vld [vmem:[%s10288_s5 + $0x1a8] sm:$0xff] }
 0x302   : > { %8205 = vmatprep.subr.mxu1 %v7003_v30  ;;  %8219 = vmatprep.mubr.msk.f32.mxu1 %vm402_vm6, %v5049_v54  ;;  %v5134_v49 = vld [vmem:[#allocation3 + $0x30] ss:$2 sm:$0xf]  ;;  %v5238_v13 = vld [vmem:[#allocation3 + $0x31] ss:$2 sm:$0xf] }
 0x303   : > { %8187 = vmatpush3.msra.mxu0 %v6993_v20  ;;  %8206 = vmatpush3.msra.mxu1 %v7003_v30  ;;  %v5152_v61 = vcombine.low %v5132_v5, %v5134_v49  ;;  %v5256_v18 = vcombine.low %v5236_v48, %v5238_v13  ;;  %v5136_v2 = vld [vmem:[#allocation3 + $0x50] ss:$2 sm:$0xf]  ;;  %v5240_v62 = vld [vmem:[#allocation3 + $0x51] ss:$2 sm:$0xf] }
 0x304   : > { %8188 = vmatprep.subr.mxu0 %v6992_v59  ;;  %8207 = vmatprep.subr.mxu1 %v7002_v26  ;;  %v5138_v58 = vld [vmem:[#allocation3 + $0x70] ss:$2 sm:$0xf]  ;;  %v5242_v40 = vld [vmem:[#allocation3 + $0x71] ss:$2 sm:$0xf] }
 0x305   : > { %8189 = vmatpush3.msra.mxu0 %v6992_v59  ;;  %8208 = vmatpush3.msra.mxu1 %v7002_v26  ;;  %v5153_v19 = vcombine.low %v5136_v2, %v5138_v58  ;;  %v5340_v60 = vld [vmem:[#allocation3 + $0x12] ss:$2 sm:$0xf]  ;;  %v5257_v29 = vcombine.low %v5240_v62, %v5242_v40  ;;  %v5444_v38 = vld [vmem:[#allocation3 + $0x13] ss:$2 sm:$0xf] }
 0x306   : > { %8190 = vmatprep.subr.mxu0 %v6991_v11  ;;  %8209 = vmatprep.subr.mxu1 %v7001_v0  ;;  %v5342_v31 = vld [vmem:[#allocation3 + $0x32] ss:$2 sm:$0xf]  ;;  %v5446_v34 = vld [vmem:[#allocation3 + $0x33] ss:$2 sm:$0xf] }
 0x307   : > { %8191 = vmatpush3.msra.mxu0 %v6991_v11  ;;  %8210 = vmatpush3.msra.mxu1 %v7001_v0  ;;  %v5360_v32 = vcombine.low %v5340_v60, %v5342_v31  ;;  %v7033_v20 = vld [vmem:[%s10288_s5 + $0x1b0] sm:$0xff]  ;;  %v5464_v53 = vcombine.low %v5444_v38, %v5446_v34  ;;  %v7042_v16 = vld [vmem:[%s10288_s5 + $0x1e8] sm:$0xff]  ;;  %v7031_v9 = vld [vmem:[%s10288_s5 + $0x1a0] sm:$0xff] }
 0x308   : > { %8192 = vmatprep.subr.mxu0 %v6990_v37  ;;  %8211 = vmatprep.subr.mxu1 %v7000_v44  ;;  %v7041_v43 = vld [vmem:[%s10288_s5 + $0x1e0] sm:$0xff]  ;;  %v7030_v3 = vld [vmem:[%s10288_s5 + $0x198] sm:$0xff]  ;;  %v7029_v47 = vld [vmem:[%s10288_s5 + $0x190] sm:$0xff] }
 0x309   : > { %8193 = vmatpush3.msra.mxu0 %v6990_v37  ;;  %8212 = vmatpush3.msra.mxu1 %v7000_v44  ;;  %v7040_v30 = vld [vmem:[%s10288_s5 + $0x1d8] sm:$0xff]  ;;  %v7039_v54 = vld [vmem:[%s10288_s5 + $0x1d0] sm:$0xff]  ;;  %v7028_v59 = vld [vmem:[%s10288_s5 + $0x188] sm:$0xff] }
 0x30a   : > { %8194 = vmatprep.subr.mxu0 %v6989_v6  ;;  %8213 = vmatprep.subr.mxu1 %v6999_v17  ;;  %v7038_v26 = vld [vmem:[%s10288_s5 + $0x1c8] sm:$0xff]  ;;  %v7027_v11 = vld [vmem:[%s10288_s5 + $0x180] sm:$0xff]  ;;  %v5550_v35 = vld [vmem:[#allocation3 + $0x40] ss:$2 sm:$0xf] }
 0x30b   : > { %8195 = vmatpush3.msra.mxu0 %v6989_v6  ;;  %8214 = vmatpush3.msra.mxu1 %v6999_v17  ;;  %v7037_v0 = vld [vmem:[%s10288_s5 + $0x1c0] sm:$0xff]  ;;  %v5652_v25 = vld [vmem:[#allocation3 + $0x21] ss:$2 sm:$0xf]  ;;  %v7052_v49 = vld [vmem:[%s10288_s5 + $0x228] sm:$0xff] }
 0x30c   : > { %8196 = vmatprep.subr.mxu0 %v6988_v4  ;;  %8215 = vmatprep.subr.mxu1 %v6998_v46  ;;  %v5344_v37 = vld [vmem:[#allocation3 + $0x52] ss:$2 sm:$0xf]  ;;  %v5448_v6 = vld [vmem:[#allocation3 + $0x53] ss:$2 sm:$0xf] }
 0x30d   : > { %8197 = vmatpush3.msra.mxu0 %v6988_v4  ;;  %8216 = vmatpush3.msra.mxu1 %v6998_v46  ;;  %v5346_v44 = vld [vmem:[#allocation3 + $0x72] ss:$2 sm:$0xf]  ;;  %v5450_v17 = vld [vmem:[#allocation3 + $0x73] ss:$2 sm:$0xf] }
 0x30e   : > { %8198 = vmatprep.subr.mxu0 %v6987_v23  ;;  %8217 = vmatprep.subr.mxu1 %v6997_v7  ;;  %v7054_v4 = vld [vmem:[%s10288_s5 + $0x238] sm:$0xff]  ;;  %v5465_v41 = vcombine.low %v5448_v6, %v5450_v17  ;;  %v5654_v12 = vld [vmem:[#allocation3 + $0x41] ss:$2 sm:$0xf]  ;;  %v7051_v48 = vld [vmem:[%s10288_s5 + $0x220] sm:$0xff] }
 0x30f   : > { %8199 = vmatpush3.msra.mxu0 %v6987_v23  ;;  %8218 = vmatpush3.msra.mxu1 %v6997_v7  ;;  %v7064_v46 = vld [vmem:[%s10288_s5 + $0x278] sm:$0xff]  ;;  %v5361_v23 = vcombine.low %v5344_v37, %v5346_v44  ;;  %v5548_v7 = vld [vmem:[#allocation3 + $0x20] ss:$2 sm:$0xf]  ;;  %v7061_v13 = vld [vmem:[%s10288_s5 + $0x260] sm:$0xff] }
 0x310   : > { %8201 = vmatmul.mubr.msk.f32.vlgmr.msra.gmra.mxu0 %vm402_vm6, %v4946_v21  ;;  %8220 = vmatmul.mubr.msk.f32.vlgmr.msra.gmra.mxu1 %vm402_vm6, %v5050_v45  ;;  %v5672_v21 = vcombine.low %v5652_v25, %v5654_v12  ;;  %v7063_v5 = vld [vmem:[%s10288_s5 + $0x270] sm:$0xff]  ;;  %v7062_v45 = vld [vmem:[%s10288_s5 + $0x268] sm:$0xff]  ;;  %v7071_v38 = vld [vmem:[%s10288_s5 + $0x2a0] sm:$0xff] }
 0x311   : > { %8222 = vmatprep.subr.mxu0 %v7014_v27  ;;  %8241 = vmatprep.subr.mxu1 %v7024_v15  ;;  %v5758_v2 = vld [vmem:[#allocation3 + $0x42] ss:$2 sm:$0xf]  ;;  %v5860_v62 = vld [vmem:[#allocation3 + $0x23] ss:$2 sm:$0xf] }
 0x312   : > { %8223 = vmatpush3.msra.mxu0 %v7014_v27  ;;  %8238 = vmatprep.mubr.msk.f32.mxu0 %vm402_vm6, %v5152_v61  ;;  %v5568_v27 = vcombine.low %v5548_v7, %v5550_v35  ;;  %v7050_v61 = vld [vmem:[%s10288_s5 + $0x218] sm:$0xff]  ;;  %v7083_v60 = vld [vmem:[%s10288_s5 + $0x2f0] sm:$0xff]  ;;  %v7072_v31 = vld [vmem:[%s10288_s5 + $0x2a8] sm:$0xff] }
 0x313   : > { %8242 = vmatpush3.msra.mxu1 %v7024_v15  ;;  %8257 = vmatprep.mubr.msk.f32.mxu1 %vm402_vm6, %v5256_v18  ;;  %v7053_v15 = vld [vmem:[%s10288_s5 + $0x230] sm:$0xff]  ;;  %v7081_v34 = vld [vmem:[%s10288_s5 + $0x2e0] sm:$0xff]  ;;  %v7092_v35 = vld [vmem:[%s10288_s5 + $0x328] sm:$0xff] }
 0x314   : > { %8224 = vmatprep.subr.mxu0 %v7013_v55  ;;  %8243 = vmatprep.subr.mxu1 %v7023_v39  ;;  %v7049_v18 = vld [vmem:[%s10288_s5 + $0x210] sm:$0xff]  ;;  %v5966_v37 = vld [vmem:[#allocation3 + $0x50] ss:$2 sm:$0xf] }
 0x315   : > { %8225 = vmatpush3.msra.mxu0 %v7013_v55  ;;  %8244 = vmatpush3.msra.mxu1 %v7023_v39  ;;  %v7060_v55 = vld [vmem:[%s10288_s5 + $0x258] sm:$0xff]  ;;  %v7059_v39 = vld [vmem:[%s10288_s5 + $0x250] sm:$0xff]  ;;  %v6068_v6 = vld [vmem:[#allocation3 + $0x31] ss:$2 sm:$0xf] }
 0x316   : > { %8226 = vmatprep.subr.mxu0 %v7012_v33  ;;  %8245 = vmatprep.subr.mxu1 %v7022_v22  ;;  %v5862_v40 = vld [vmem:[#allocation3 + $0x43] ss:$2 sm:$0xf]  ;;  %v6070_v17 = vld [vmem:[#allocation3 + $0x51] ss:$2 sm:$0xf] }
 0x317   : > { %8227 = vmatpush3.msra.mxu0 %v7012_v33  ;;  %8246 = vmatpush3.msra.mxu1 %v7022_v22  ;;  %v7048_v33 = vld [vmem:[%s10288_s5 + $0x208] sm:$0xff]  ;;  %v7103_v7 = vld [vmem:[%s10288_s5 + $0x370] sm:$0xff]  ;;  %v7091_v25 = vld [vmem:[%s10288_s5 + $0x320] sm:$0xff] }
 0x318   : > { %8228 = vmatprep.subr.mxu0 %v7011_v8  ;;  %8247 = vmatprep.subr.mxu1 %v7021_v14  ;;  %v7058_v22 = vld [vmem:[%s10288_s5 + $0x248] sm:$0xff]  ;;  %v7101_v12 = vld [vmem:[%s10288_s5 + $0x360] sm:$0xff] }
 0x319   : > { %8229 = vmatpush3.msra.mxu0 %v7011_v8  ;;  %8248 = vmatpush3.msra.mxu1 %v7021_v14  ;;  %v7047_v8 = vld [vmem:[%s10288_s5 + $0x200] sm:$0xff] }
 0x31a   : > { %8230 = vmatprep.subr.mxu0 %v7010_v42  ;;  %8249 = vmatprep.subr.mxu1 %v7020_v50  ;;  %v7057_v14 = vld [vmem:[%s10288_s5 + $0x240] sm:$0xff] }
 0x31b   : > { %8231 = vmatpush3.msra.mxu0 %v7010_v42  ;;  %8250 = vmatpush3.msra.mxu1 %v7020_v50  ;;  %v5552_v42 = vld [vmem:[#allocation3 + $0x60] ss:$2 sm:$0xf] }
 0x31c   : > { %8232 = vmatprep.subr.mxu0 %v7009_v10  ;;  %8251 = vmatprep.subr.mxu1 %v7019_v1  ;;  %v5554_v50 = vld [vmem:[#allocation3 + $0x80] ss:$2 sm:$0xf] }
 0x31d   : > { %8233 = vmatpush3.msra.mxu0 %v7009_v10  ;;  %8252 = vmatpush3.msra.mxu1 %v7019_v1  ;;  %v5656_v10 = vld [vmem:[#allocation3 + $0x61] ss:$2 sm:$0xf] }
 0x31e   : > { %8234 = vmatprep.subr.mxu0 %v7008_v36  ;;  %8253 = vmatprep.subr.mxu1 %v7018_v56  ;;  %v5658_v1 = vld [vmem:[#allocation3 + $0x81] ss:$2 sm:$0xf] }
 0x31f   : > { %8235 = vmatpush3.msra.mxu0 %v7008_v36  ;;  %8254 = vmatpush3.msra.mxu1 %v7018_v56  ;;  %v7074_v36 = vld [vmem:[%s10288_s5 + $0x2b8] sm:$0xff]  ;;  %v5673_v58 = vcombine.low %v5656_v10, %v5658_v1  ;;  %v6276_v10 = vld [vmem:[#allocation3 + $0x33] ss:$2 sm:$0xf] }
 0x320   : > { %8236 = vmatprep.subr.mxu0 %v7007_v28  ;;  %8255 = vmatprep.subr.mxu1 %v7017_v24  ;;  %v7084_v56 = vld [vmem:[%s10288_s5 + $0x2f8] sm:$0xff]  ;;  %v6278_v1 = vld [vmem:[#allocation3 + $0x53] ss:$2 sm:$0xf] }
 0x321   : > { %8237 = vmatpush3.msra.mxu0 %v7007_v28  ;;  %8256 = vmatpush3.msra.mxu1 %v7017_v24  ;;  %v5569_v28 = vcombine.low %v5552_v42, %v5554_v50  ;;  %v5756_v24 = vld [vmem:[#allocation3 + $0x22] ss:$2 sm:$0xf]  ;;  %v6174_v42 = vld [vmem:[#allocation3 + $0x52] ss:$2 sm:$0xf] }
 0x322   : > { %8239 = vmatmul.mubr.msk.f32.vlgmr.msra.gmra.mxu0 %vm402_vm6, %v5153_v19  ;;  %8258 = vmatmul.mubr.msk.f32.vlgmr.msra.gmra.mxu1 %vm402_vm6, %v5257_v29  ;;  %v5880_v19 = vcombine.low %v5860_v62, %v5862_v40  ;;  %v7082_v29 = vld [vmem:[%s10288_s5 + $0x2e8] sm:$0xff]  ;;  %v7111_v62 = vld [vmem:[%s10288_s5 + $0x3a0] sm:$0xff] }
 0x323   : > { %8260 = vmatprep.subr.mxu0 %v7034_v63  ;;  %8279 = vmatprep.subr.mxu1 %v7044_v51  ;;  %v7121_v40 = vld [vmem:[%s10288_s5 + $0x3e0] sm:$0xff] }
 0x324   : > { %8261 = vmatpush3.msra.mxu0 %v7034_v63  ;;  %8276 = vmatprep.mubr.msk.f32.mxu0 %vm402_vm6, %v5360_v32  ;;  %v5776_v63 = vcombine.low %v5756_v24, %v5758_v2  ;;  %v7070_v32 = vld [vmem:[%s10288_s5 + $0x298] sm:$0xff]  ;;  %v7123_v24 = vld [vmem:[%s10288_s5 + $0x3f0] sm:$0xff]  ;;  %v7112_v2 = vld [vmem:[%s10288_s5 + $0x3a8] sm:$0xff] }
 0x325   : > { %8280 = vmatpush3.msra.mxu1 %v7044_v51  ;;  %8295 = vmatprep.mubr.msk.f32.mxu1 %vm402_vm6, %v5464_v53  ;;  %v7073_v51 = vld [vmem:[%s10288_s5 + $0x2b0] sm:$0xff] }
 0x326   : > { %8262 = vmatprep.subr.mxu0 %v7033_v20  ;;  %8281 = vmatprep.subr.mxu1 %v7043_v57  ;;  %v7069_v53 = vld [vmem:[%s10288_s5 + $0x290] sm:$0xff] }
 0x327   : > { %8263 = vmatpush3.msra.mxu0 %v7033_v20  ;;  %8282 = vmatpush3.msra.mxu1 %v7043_v57  ;;  %v7080_v20 = vld [vmem:[%s10288_s5 + $0x2d8] sm:$0xff]  ;;  %v7079_v57 = vld [vmem:[%s10288_s5 + $0x2d0] sm:$0xff] }
 0x328   : > { %8264 = vmatprep.subr.mxu0 %v7032_v52  ;;  %8283 = vmatprep.subr.mxu1 %v7042_v16 }
 0x329   : > { %8265 = vmatpush3.msra.mxu0 %v7032_v52  ;;  %8284 = vmatpush3.msra.mxu1 %v7042_v16  ;;  %v7068_v52 = vld [vmem:[%s10288_s5 + $0x288] sm:$0xff] }
 0x32a   : > { %8266 = vmatprep.subr.mxu0 %v7031_v9  ;;  %8285 = vmatprep.subr.mxu1 %v7041_v43  ;;  %v7078_v16 = vld [vmem:[%s10288_s5 + $0x2c8] sm:$0xff] }
 0x32b   : > { %8267 = vmatpush3.msra.mxu0 %v7031_v9  ;;  %8286 = vmatpush3.msra.mxu1 %v7041_v43  ;;  %v7067_v9 = vld [vmem:[%s10288_s5 + $0x280] sm:$0xff] }
 0x32c   : > { %8268 = vmatprep.subr.mxu0 %v7030_v3  ;;  %8287 = vmatprep.subr.mxu1 %v7040_v30  ;;  %v7077_v43 = vld [vmem:[%s10288_s5 + $0x2c0] sm:$0xff] }
 0x32d   : > { %8269 = vmatpush3.msra.mxu0 %v7030_v3  ;;  %8288 = vmatpush3.msra.mxu1 %v7040_v30  ;;  %v5760_v3 = vld [vmem:[#allocation3 + $0x62] ss:$2 sm:$0xf] }
 0x32e   : > { %8270 = vmatprep.subr.mxu0 %v7029_v47  ;;  %8289 = vmatprep.subr.mxu1 %v7039_v54  ;;  %v5762_v30 = vld [vmem:[#allocation3 + $0x82] ss:$2 sm:$0xf] }
 0x32f   : > { %8271 = vmatpush3.msra.mxu0 %v7029_v47  ;;  %8290 = vmatpush3.msra.mxu1 %v7039_v54  ;;  %v5864_v47 = vld [vmem:[#allocation3 + $0x63] ss:$2 sm:$0xf] }
 0x330   : > { %8272 = vmatprep.subr.mxu0 %v7028_v59  ;;  %8291 = vmatprep.subr.mxu1 %v7038_v26  ;;  %v5866_v54 = vld [vmem:[#allocation3 + $0x83] ss:$2 sm:$0xf] }
 0x331   : > { %8273 = vmatpush3.msra.mxu0 %v7028_v59  ;;  %8292 = vmatpush3.msra.mxu1 %v7038_v26  ;;  %v7094_v59 = vld [vmem:[%s10288_s5 + $0x338] sm:$0xff]  ;;  %v5881_v44 = vcombine.low %v5864_v47, %v5866_v54 }
 0x332   : > { %8274 = vmatprep.subr.mxu0 %v7027_v11  ;;  %8293 = vmatprep.subr.mxu1 %v7037_v0  ;;  %v7104_v26 = vld [vmem:[%s10288_s5 + $0x378] sm:$0xff] }
 0x333   : > { %8275 = vmatpush3.msra.mxu0 %v7027_v11  ;;  %8294 = vmatpush3.msra.mxu1 %v7037_v0  ;;  %v5777_v11 = vcombine.low %v5760_v3, %v5762_v30  ;;  %v5964_v0 = vld [vmem:[#allocation3 + $0x30] ss:$2 sm:$0xf] }
 0x334   : > { %8277 = vmatmul.mubr.msk.f32.vlgmr.msra.gmra.mxu0 %vm402_vm6, %v5361_v23  ;;  %8296 = vmatmul.mubr.msk.f32.vlgmr.msra.gmra.mxu1 %vm402_vm6, %v5465_v41  ;;  %v6088_v23 = vcombine.low %v6068_v6, %v6070_v17  ;;  %v7102_v41 = vld [vmem:[%s10288_s5 + $0x368] sm:$0xff] }
 0x335   : > { %8298 = vmatprep.subr.mxu0 %v7054_v4  ;;  %8317 = vmatprep.subr.mxu1 %v7064_v46 }
 0x336   : > { %8299 = vmatpush3.msra.mxu0 %v7054_v4  ;;  %8314 = vmatprep.mubr.msk.f32.mxu0 %vm402_vm6, %v5568_v27  ;;  %v5984_v4 = vcombine.low %v5964_v0, %v5966_v37  ;;  %v7090_v27 = vld [vmem:[%s10288_s5 + $0x318] sm:$0xff] }
 0x337   : > { %8318 = vmatpush3.msra.mxu1 %v7064_v46  ;;  %8333 = vmatprep.mubr.msk.f32.mxu1 %vm402_vm6, %v5672_v21  ;;  %v7093_v46 = vld [vmem:[%s10288_s5 + $0x330] sm:$0xff] }
 0x338   : > { %8300 = vmatprep.subr.mxu0 %v7053_v15  ;;  %8319 = vmatprep.subr.mxu1 %v7063_v5  ;;  %v7089_v21 = vld [vmem:[%s10288_s5 + $0x310] sm:$0xff] }
 0x339   : > { %8301 = vmatpush3.msra.mxu0 %v7053_v15  ;;  %8320 = vmatpush3.msra.mxu1 %v7063_v5  ;;  %v7100_v15 = vld [vmem:[%s10288_s5 + $0x358] sm:$0xff]  ;;  %v7099_v5 = vld [vmem:[%s10288_s5 + $0x350] sm:$0xff] }
 0x33a   : > { %8302 = vmatprep.subr.mxu0 %v7052_v49  ;;  %8321 = vmatprep.subr.mxu1 %v7062_v45 }
 0x33b   : > { %8303 = vmatpush3.msra.mxu0 %v7052_v49  ;;  %8322 = vmatpush3.msra.mxu1 %v7062_v45  ;;  %v7088_v49 = vld [vmem:[%s10288_s5 + $0x308] sm:$0xff]  ;;  %v5970_v45 = vld [vmem:[#allocation3 + $0x90] ss:$2 sm:$0xf] }
 0x33c   : > { %8304 = vmatprep.subr.mxu0 %v7051_v48  ;;  %8323 = vmatprep.subr.mxu1 %v7061_v13 }
 0x33d   : > { %8305 = vmatpush3.msra.mxu0 %v7051_v48  ;;  %8324 = vmatpush3.msra.mxu1 %v7061_v13  ;;  %v7098_v48 = vld [vmem:[%s10288_s5 + $0x348] sm:$0xff]  ;;  %v6074_v13 = vld [vmem:[#allocation3 + $0x91] ss:$2 sm:$0xf] }
 0x33e   : > { %8306 = vmatprep.subr.mxu0 %v7050_v61  ;;  %8325 = vmatprep.subr.mxu1 %v7060_v55 }
 0x33f   : > { %8307 = vmatpush3.msra.mxu0 %v7050_v61  ;;  %8326 = vmatpush3.msra.mxu1 %v7060_v55  ;;  %v7087_v61 = vld [vmem:[%s10288_s5 + $0x300] sm:$0xff] }
 0x340   : > { %8308 = vmatprep.subr.mxu0 %v7049_v18  ;;  %8327 = vmatprep.subr.mxu1 %v7059_v39  ;;  %v5968_v55 = vld [vmem:[#allocation3 + $0x70] ss:$2 sm:$0xf] }
 0x341   : > { %8309 = vmatpush3.msra.mxu0 %v7049_v18  ;;  %8328 = vmatpush3.msra.mxu1 %v7059_v39  ;;  %v7097_v18 = vld [vmem:[%s10288_s5 + $0x340] sm:$0xff] }
 0x342   : > { %8310 = vmatprep.subr.mxu0 %v7048_v33  ;;  %8329 = vmatprep.subr.mxu1 %v7058_v22  ;;  %v6072_v39 = vld [vmem:[#allocation3 + $0x71] ss:$2 sm:$0xf] }
 0x343   : > { %8311 = vmatpush3.msra.mxu0 %v7048_v33  ;;  %8330 = vmatpush3.msra.mxu1 %v7058_v22  ;;  %v7114_v33 = vld [vmem:[%s10288_s5 + $0x3b8] sm:$0xff]  ;;  %v6089_v50 = vcombine.low %v6072_v39, %v6074_v13 }
 0x344   : > { %8312 = vmatprep.subr.mxu0 %v7047_v8  ;;  %8331 = vmatprep.subr.mxu1 %v7057_v14  ;;  %v7124_v22 = vld [vmem:[%s10288_s5 + $0x3f8] sm:$0xff] }
 0x345   : > { %8313 = vmatpush3.msra.mxu0 %v7047_v8  ;;  %8332 = vmatpush3.msra.mxu1 %v7057_v14  ;;  %v5985_v8 = vcombine.low %v5968_v55, %v5970_v45  ;;  %v6172_v14 = vld [vmem:[#allocation3 + $0x32] ss:$2 sm:$0xf] }
 0x346   : > { %8315 = vmatmul.mubr.msk.f32.vlgmr.msra.gmra.mxu0 %vm402_vm6, %v5569_v28  ;;  %8334 = vmatmul.mubr.msk.f32.vlgmr.msra.gmra.mxu1 %vm402_vm6, %v5673_v58  ;;  %v6296_v28 = vcombine.low %v6276_v10, %v6278_v1  ;;  %v7122_v58 = vld [vmem:[%s10288_s5 + $0x3e8] sm:$0xff] }
 0x347   : > { %8336 = vmatprep.subr.mxu0 %v7074_v36  ;;  %8355 = vmatprep.subr.mxu1 %v7084_v56 }
 0x348   : > { %8337 = vmatpush3.msra.mxu0 %v7074_v36  ;;  %8352 = vmatprep.mubr.msk.f32.mxu0 %vm402_vm6, %v5776_v63  ;;  %v6192_v36 = vcombine.low %v6172_v14, %v6174_v42  ;;  %v7110_v63 = vld [vmem:[%s10288_s5 + $0x398] sm:$0xff] }
 0x349   : > { %8356 = vmatpush3.msra.mxu1 %v7084_v56  ;;  %8371 = vmatprep.mubr.msk.f32.mxu1 %vm402_vm6, %v5880_v19  ;;  %v7113_v56 = vld [vmem:[%s10288_s5 + $0x3b0] sm:$0xff] }
 0x34a   : > { %8338 = vmatprep.subr.mxu0 %v7073_v51  ;;  %8357 = vmatprep.subr.mxu1 %v7083_v60  ;;  %v7109_v19 = vld [vmem:[%s10288_s5 + $0x390] sm:$0xff] }
 0x34b   : > { %8339 = vmatpush3.msra.mxu0 %v7073_v51  ;;  %8358 = vmatpush3.msra.mxu1 %v7083_v60  ;;  %v7120_v51 = vld [vmem:[%s10288_s5 + $0x3d8] sm:$0xff]  ;;  %v7119_v60 = vld [vmem:[%s10288_s5 + $0x3d0] sm:$0xff] }
 0x34c   : > { %8340 = vmatprep.subr.mxu0 %v7072_v31  ;;  %8359 = vmatprep.subr.mxu1 %v7082_v29 }
 0x34d   : > { %8341 = vmatpush3.msra.mxu0 %v7072_v31  ;;  %8360 = vmatpush3.msra.mxu1 %v7082_v29  ;;  %v7108_v31 = vld [vmem:[%s10288_s5 + $0x388] sm:$0xff] }
 0x34e   : > { %8342 = vmatprep.subr.mxu0 %v7071_v38  ;;  %8361 = vmatprep.subr.mxu1 %v7081_v34  ;;  %v6178_v29 = vld [vmem:[#allocation3 + $0x92] ss:$2 sm:$0xf] }
 0x34f   : > { %8343 = vmatpush3.msra.mxu0 %v7071_v38  ;;  %8362 = vmatpush3.msra.mxu1 %v7081_v34  ;;  %v7118_v38 = vld [vmem:[%s10288_s5 + $0x3c8] sm:$0xff] }
 0x350   : > { %8344 = vmatprep.subr.mxu0 %v7070_v32  ;;  %8363 = vmatprep.subr.mxu1 %v7080_v20  ;;  %v6282_v34 = vld [vmem:[#allocation3 + $0x93] ss:$2 sm:$0xf] }
 0x351   : > { %8345 = vmatpush3.msra.mxu0 %v7070_v32  ;;  %8364 = vmatpush3.msra.mxu1 %v7080_v20  ;;  %v7107_v32 = vld [vmem:[%s10288_s5 + $0x380] sm:$0xff] }
 0x352   : > { %8346 = vmatprep.subr.mxu0 %v7069_v53  ;;  %8365 = vmatprep.subr.mxu1 %v7079_v57  ;;  %v6176_v20 = vld [vmem:[#allocation3 + $0x72] ss:$2 sm:$0xf] }
 0x353   : > { %8347 = vmatpush3.msra.mxu0 %v7069_v53  ;;  %8366 = vmatpush3.msra.mxu1 %v7079_v57  ;;  %v7117_v53 = vld [vmem:[%s10288_s5 + $0x3c0] sm:$0xff] }
 0x354   : > { %8348 = vmatprep.subr.mxu0 %v7068_v52  ;;  %8367 = vmatprep.subr.mxu1 %v7078_v16  ;;  %v6280_v57 = vld [vmem:[#allocation3 + $0x73] ss:$2 sm:$0xf] }
 0x355   : > { %8349 = vmatpush3.msra.mxu0 %v7068_v52  ;;  %8368 = vmatpush3.msra.mxu1 %v7078_v16  ;;  %v6193_v52 = vcombine.low %v6176_v20, %v6178_v29  ;;  %v6297_v16 = vcombine.low %v6280_v57, %v6282_v34 }
 0x356   : > { %8350 = vmatprep.subr.mxu0 %v7067_v9  ;;  %8369 = vmatprep.subr.mxu1 %v7077_v43 }
 0x357   : > { %8351 = vmatpush3.msra.mxu0 %v7067_v9  ;;  %8370 = vmatpush3.msra.mxu1 %v7077_v43 }
 0x358   : > { %8353 = vmatmul.mubr.msk.f32.vlgmr.msra.gmra.mxu0 %vm402_vm6, %v5777_v11  ;;  %8372 = vmatmul.mubr.msk.f32.vlgmr.msra.gmra.mxu1 %vm402_vm6, %v5881_v44 }
 0x359   : > { %8374 = vmatprep.subr.mxu0 %v7094_v59  ;;  %8393 = vmatprep.subr.mxu1 %v7104_v26 }
 0x35a   : > { %8375 = vmatpush3.msra.mxu0 %v7094_v59  ;;  %8390 = vmatprep.mubr.msk.f32.mxu0 %vm402_vm6, %v5984_v4 }
 0x35b   : > { %8394 = vmatpush3.msra.mxu1 %v7104_v26  ;;  %8409 = vmatprep.mubr.msk.f32.mxu1 %vm402_vm6, %v6088_v23 }
 0x35c   : > { %8376 = vmatprep.subr.mxu0 %v7093_v46  ;;  %8395 = vmatprep.subr.mxu1 %v7103_v7 }
 0x35d   : > { %8377 = vmatpush3.msra.mxu0 %v7093_v46  ;;  %8396 = vmatpush3.msra.mxu1 %v7103_v7 }
 0x35e   : > { %8378 = vmatprep.subr.mxu0 %v7092_v35  ;;  %8397 = vmatprep.subr.mxu1 %v7102_v41 }
 0x35f   : > { %8379 = vmatpush3.msra.mxu0 %v7092_v35  ;;  %8398 = vmatpush3.msra.mxu1 %v7102_v41 }
 0x360   : > { %8380 = vmatprep.subr.mxu0 %v7091_v25  ;;  %8399 = vmatprep.subr.mxu1 %v7101_v12 }
 0x361   : > { %8381 = vmatpush3.msra.mxu0 %v7091_v25  ;;  %8400 = vmatpush3.msra.mxu1 %v7101_v12 }
 0x362   : > { %8382 = vmatprep.subr.mxu0 %v7090_v27  ;;  %8401 = vmatprep.subr.mxu1 %v7100_v15 }
 0x363   : > { %8383 = vmatpush3.msra.mxu0 %v7090_v27  ;;  %8402 = vmatpush3.msra.mxu1 %v7100_v15 }
 0x364   : > { %8384 = vmatprep.subr.mxu0 %v7089_v21  ;;  %8403 = vmatprep.subr.mxu1 %v7099_v5 }
 0x365   : > { %8385 = vmatpush3.msra.mxu0 %v7089_v21  ;;  %8404 = vmatpush3.msra.mxu1 %v7099_v5 }
 0x366   : > { %8386 = vmatprep.subr.mxu0 %v7088_v49  ;;  %8405 = vmatprep.subr.mxu1 %v7098_v48 }
 0x367   : > { %8387 = vmatpush3.msra.mxu0 %v7088_v49  ;;  %8406 = vmatpush3.msra.mxu1 %v7098_v48 }
 0x368   : > { %8388 = vmatprep.subr.mxu0 %v7087_v61  ;;  %8407 = vmatprep.subr.mxu1 %v7097_v18 }
 0x369   : > { %8389 = vmatpush3.msra.mxu0 %v7087_v61  ;;  %8408 = vmatpush3.msra.mxu1 %v7097_v18 }
 0x36a   : > { %8391 = vmatmul.mubr.msk.f32.vlgmr.msra.gmra.mxu0 %vm402_vm6, %v5985_v8  ;;  %8410 = vmatmul.mubr.msk.f32.vlgmr.msra.gmra.mxu1 %vm402_vm6, %v6089_v50 }
 0x36b   : > { %8412 = vmatprep.subr.mxu0 %v7114_v33  ;;  %8431 = vmatprep.subr.mxu1 %v7124_v22 }
 0x36c   : > { %8413 = vmatpush3.msra.mxu0 %v7114_v33  ;;  %8428 = vmatprep.mubr.msk.f32.mxu0 %vm402_vm6, %v6192_v36 }
 0x36d   : > { %8432 = vmatpush3.msra.mxu1 %v7124_v22  ;;  %8447 = vmatprep.mubr.msk.f32.mxu1 %vm402_vm6, %v6296_v28 }
 0x36e   : > { %8414 = vmatprep.subr.mxu0 %v7113_v56  ;;  %8433 = vmatprep.subr.mxu1 %v7123_v24 }
 0x36f   : > { %8415 = vmatpush3.msra.mxu0 %v7113_v56  ;;  %8434 = vmatpush3.msra.mxu1 %v7123_v24 }
 0x370   : > { %8416 = vmatprep.subr.mxu0 %v7112_v2  ;;  %8435 = vmatprep.subr.mxu1 %v7122_v58 }
 0x371   : > { %8417 = vmatpush3.msra.mxu0 %v7112_v2  ;;  %8436 = vmatpush3.msra.mxu1 %v7122_v58 }
 0x372   : > { %8418 = vmatprep.subr.mxu0 %v7111_v62  ;;  %8437 = vmatprep.subr.mxu1 %v7121_v40 }
 0x373   : > { %8419 = vmatpush3.msra.mxu0 %v7111_v62  ;;  %8438 = vmatpush3.msra.mxu1 %v7121_v40 }
 0x374   : > { %8420 = vmatprep.subr.mxu0 %v7110_v63  ;;  %8439 = vmatprep.subr.mxu1 %v7120_v51 }
 0x375   : > { %8421 = vmatpush3.msra.mxu0 %v7110_v63  ;;  %8440 = vmatpush3.msra.mxu1 %v7120_v51 }
 0x376   : > { %8422 = vmatprep.subr.mxu0 %v7109_v19  ;;  %8441 = vmatprep.subr.mxu1 %v7119_v60 }
 0x377   : > { %8423 = vmatpush3.msra.mxu0 %v7109_v19  ;;  %8442 = vmatpush3.msra.mxu1 %v7119_v60 }
 0x378   : > { %8424 = vmatprep.subr.mxu0 %v7108_v31  ;;  %8443 = vmatprep.subr.mxu1 %v7118_v38 }
 0x379   : > { %8425 = vmatpush3.msra.mxu0 %v7108_v31  ;;  %8444 = vmatpush3.msra.mxu1 %v7118_v38 }
 0x37a   : > { %8426 = vmatprep.subr.mxu0 %v7107_v32  ;;  %8445 = vmatprep.subr.mxu1 %v7117_v53 }
 0x37b   : > { %8427 = vmatpush3.msra.mxu0 %v7107_v32  ;;  %8446 = vmatpush3.msra.mxu1 %v7117_v53  ;;  %v7127_v53 = vld [vmem:[%s10289_s6] ss:$0 sm:$0xff] }
 0x37c   : > { %8429 = vmatmul.mubr.msk.f32.vlgmr.msra.gmra.mxu0 %vm402_vm6, %v6193_v52  ;;  %8448 = vmatmul.mubr.msk.f32.vlgmr.msra.gmra.mxu1 %vm402_vm6, %v6297_v16 }
 0x3bf   : > { %v8164_v9 = vpop.f32.mrf.mxu0  ;;  %v8183_v43 = vpop.f32.mrf.mxu1 }
 0x3c0   : > { %v4921_v54 = vadd.f32 %v8183_v43, %v8164_v9 }
 0x3c1   : > { %v4830_v3 = vpop.f32.mrf.mxu0  ;;  %v4915_v47 = vpop.f32.mrf.mxu1 }
 0x3c2   : > { %v4916_v26 = vadd.f32 %v4915_v47, %v4830_v3 }
 0x3d0   : > { %v8202_v30 = vpop.f32.mrf.mxu0  ;;  %v8221_v0 = vpop.f32.mrf.mxu1 }
 0x3d1   : > { %v5027_v11 = vadd.f32 %v8202_v30, %v4921_v54 }
 0x3d2   : > { %v5017_v59 = vpop.f32.mrf.mxu0  ;;  %v5121_v17 = vpop.f32.mrf.mxu1 }
 0x3d3   : > { %v5026_v44 = vadd.f32 %v5017_v59, %v4916_v26  ;;  %v5131_v6 = vadd.f32 %v8221_v0, %v5027_v11 }
 0x3d5   : > { %v5130_v46 = vadd.f32 %v5121_v17, %v5026_v44 }
 0x3e2   : > { %v8240_v37 = vpop.f32.mrf.mxu0  ;;  %v8259_v7 = vpop.f32.mrf.mxu1 }
 0x3e3   : > { %v5234_v23 = vadd.f32 %v8240_v37, %v5131_v6 }
 0x3e4   : > { %v5224_v4 = vpop.f32.mrf.mxu0  ;;  %v5328_v12 = vpop.f32.mrf.mxu1 }
 0x3e5   : > { %v5233_v41 = vadd.f32 %v5224_v4, %v5130_v46  ;;  %v5338_v25 = vadd.f32 %v8259_v7, %v5234_v23 }
 0x3e7   : > { %v5337_v15 = vadd.f32 %v5328_v12, %v5233_v41 }
 0x3f4   : > { %v8278_v35 = vpop.f32.mrf.mxu0  ;;  %v8297_v5 = vpop.f32.mrf.mxu1 }
 0x3f5   : > { %v5442_v21 = vadd.f32 %v8278_v35, %v5338_v25 }
 0x3f6   : > { %v5432_v27 = vpop.f32.mrf.mxu0  ;;  %v5536_v13 = vpop.f32.mrf.mxu1 }
 0x3f7   : > { %v5441_v45 = vadd.f32 %v5432_v27, %v5337_v15  ;;  %v5546_v48 = vadd.f32 %v8297_v5, %v5442_v21 }
 0x3f9   : > { %v5545_v55 = vadd.f32 %v5536_v13, %v5441_v45 }
 0x406   : > { %v8316_v49 = vpop.f32.mrf.mxu0  ;;  %v8335_v39 = vpop.f32.mrf.mxu1 }
 0x407   : > { %v5650_v18 = vadd.f32 %v8316_v49, %v5546_v48  ;;  %v6419_v49 = vld [vmem:[%s10290_s7] sm:$0xff] }
 0x408   : > { %v5640_v61 = vpop.f32.mrf.mxu0  ;;  %v5744_v14 = vpop.f32.mrf.mxu1 }
 0x409   : > { %v5649_v22 = vadd.f32 %v5640_v61, %v5545_v55  ;;  %v5754_v8 = vadd.f32 %v8335_v39, %v5650_v18  ;;  %v6420_v55 = vld [vmem:[%s10290_s7 + $0x8] sm:$0xff] }
 0x40b   : > { %v5753_v50 = vadd.f32 %v5744_v14, %v5649_v22 }
 0x418   : > { %v8354_v33 = vpop.f32.mrf.mxu0  ;;  %v8373_v1 = vpop.f32.mrf.mxu1 }
 0x419   : > { %v5858_v10 = vadd.f32 %v8354_v33, %v5754_v8 }
 0x41a   : > { %v5848_v42 = vpop.f32.mrf.mxu0  ;;  %v5952_v24 = vpop.f32.mrf.mxu1 }
 0x41b   : > { %v5857_v56 = vadd.f32 %v5848_v42, %v5753_v50  ;;  %v5962_v28 = vadd.f32 %v8373_v1, %v5858_v10  ;;  %v6434_v1 = vld [vmem:[#allocation4] sm:$0x1] }
 0x41d   : > { %v5961_v58 = vadd.f32 %v5952_v24, %v5857_v56 }
 0x42a   : > { %v8392_v36 = vpop.f32.mrf.mxu0  ;;  %v8411_v40 = vpop.f32.mrf.mxu1 }
 0x42b   : > { %v6066_v62 = vadd.f32 %v8392_v36, %v5962_v28 }
 0x42c   : > { %v6056_v2 = vpop.f32.mrf.mxu0  ;;  %v6160_v19 = vpop.f32.mrf.mxu1 }
 0x42d   : > { %v6065_v63 = vadd.f32 %v6056_v2, %v5961_v58  ;;  %v6170_v51 = vadd.f32 %v8411_v40, %v6066_v62 }
 0x42f   : > { %v6169_v31 = vadd.f32 %v6160_v19, %v6065_v63 }
 0x43c   : > { %v8430_v60 = vpop.f32.mrf.mxu0  ;;  %v8449_v38 = vpop.f32.mrf.mxu1 }
 0x43d   : > { %v6274_v29 = vadd.f32 %v8430_v60, %v6170_v51 }
 0x43e   : > { %v6264_v34 = vpop.f32.mrf.mxu0  ;;  %v6368_v57 = vpop.f32.mrf.mxu1 }
 0x43f   : > { %v6378_v32 = vadd.f32 %v8449_v38, %v6274_v29  ;;  %v6273_v20 = vadd.f32 %v6264_v34, %v6169_v31 }
 0x441   : > { %v6377_v52 = vadd.f32 %v6368_v57, %v6273_v20  ;;  %v6387_v16 = vadd.f32 %v7127_v53, %v6378_v32 }
 0x443   : > { %v6386_v9 = vadd.f32 %v7127_v53, %v6377_v52 }
 0x445   : > { %v6388_v43 = vadd.f32 %v6387_v16, %v6386_v9 }
 0x447   : > { %v6389_v3 = vrot.slane %v6388_v43, 4 }
 0x449   : > { %v6390_v30 = vadd.f32 %v6389_v3, %v6388_v43 }
 0x44b   : > { %v6391_v47 = vrot.slane %v6390_v30, 2 }
 0x44d   : > { %v6392_v54 = vadd.f32 %v6391_v47, %v6390_v30 }
 0x44f   : > { %v6393_v59 = vrot.slane %v6392_v54, 1 }
 0x451   : > { %v6394_v26 = vadd.f32 %v6393_v59, %v6392_v54 }
 0x453   : > { %v6396_v11 = vmul.f32 0.0625, %v6394_v26 }
 0x455   : > { %v6397_v0 = vsub.f32 %v6386_v9, %v6396_v11  ;;  %v6398_v37 = vsub.f32 %v6387_v16, %v6396_v11 }
 0x457   : > { %v6399_v44 = vmul.f32 %v6397_v0, %v6397_v0  ;;  %v6400_v6 = vmul.f32 %v6398_v37, %v6398_v37 }
 0x459   : > { %v6401_v17 = vadd.f32 %v6400_v6, %v6399_v44 }
 0x45b   : > { %v6402_v4 = vrot.slane %v6401_v17, 4 }
 0x45d   : > { %v6403_v46 = vadd.f32 %v6402_v4, %v6401_v17 }
 0x45f   : > { %v6404_v23 = vrot.slane %v6403_v46, 2 }
 0x461   : > { %v6405_v7 = vadd.f32 %v6404_v23, %v6403_v46 }
 0x463   : > { %v6406_v35 = vrot.slane %v6405_v7, 1 }
 0x465   : > { %v6407_v41 = vadd.f32 %v6406_v35, %v6405_v7 }
 0x467   : > { %v6408_v25 = vmul.f32 0.0625, %v6407_v41 }
 0x469   : > { %v6409_v12 = vadd.f32 1e-05, %v6408_v25 }
 0x46b   : > { %8475 = vrsqrt.f32 %v6409_v12 }
 0x478   : > { %v8476_v27 = vpop.eup %8475 }
 0x479   : > { %v6411_v15 = vmul.f32 %v8476_v27, %v6397_v0  ;;  %v6412_v21 = vmul.f32 %v8476_v27, %v6398_v37 }
 0x47b   : > { %vm6413_vm15 = vcmp.ge.f32.partialorder %v6411_v15, 0.0  ;;  %v6415_v5 = vmul.f32 0.2, %v6411_v15  ;;  %v6416_v45 = vmul.f32 0.2, %v6412_v21  ;;  %vm6414_vm0 = vcmp.ge.f32.partialorder %v6412_v21, 0.0 }
 0x47d   : > { %v6417_v48 = vsel %vm6413_vm15, %v6411_v15, %v6415_v5  ;;  %v6418_v61 = vsel %vm6414_vm0, %v6412_v21, %v6416_v45 }
 0x47e   : > { %v6421_v13 = vmul.f32 %v6419_v49, %v6417_v48  ;;  %v6422_v18 = vmul.f32 %v6420_v55, %v6418_v61 }
 0x480   : > { %6423 = vadd.xlane.f32.xlu0 %v6421_v13 }
 0x484   : > { %6425 = vadd.xlane.f32.xlu0 %v6422_v18 }
 0x509   : > { %v6424_v39 = vpop.xlane.xlu0 %6423 }
 0x50d   : > { %v6426_v33 = vpop.xlane.xlu0 %6425 }
 0x50e   : > { %v6427_v22 = vadd.f32 %v6426_v33, %v6424_v39 }
 0x510   : > { %v6428_v8 = vrot.slane %v6427_v22, 4 }
 0x512   : > { %v6429_v14 = vadd.f32 %v6428_v8, %v6427_v22 }
 0x514   : > { %v6430_v42 = vrot.slane %v6429_v14, 2 }
 0x516   : > { %v6431_v50 = vadd.f32 %v6430_v42, %v6429_v14 }
 0x518   : > { %v6432_v10 = vrot.slane %v6431_v50, 1 }
 0x51a   : > { %v6433_v36 = vadd.f32 %v6432_v10, %v6431_v50 }
 0x51c   : > { %v6435_v56 = vadd.f32 %v6434_v1, %v6433_v36 }
 0x51e   : > { %6437 = vst.msk [vmem:[%s345_s28] sm:$0x1] %vm6436_vm1, %v6435_v56 }
 0x51f PF: > { %s22_s11 = sadd.s32 1, %s8513_s11  }
 0x520   : > { %p19_p1 = scmp.ge.s32.totalorder %s22_s11, 4  }
 0x522   :  { %21 = sbr.rel (!%p19_p1) target bundleno = 4 (0x4), region = 315 }
 0x527   :  { %6455 = vsyncpa [#allocation6], 1 }
 0x528   :  { %6457 = vsyncpa [#allocation6 + $0x1], 1 }

</bundles_post_ra>
